<compile_context>
chip_gen: v6e
topology: v6e:2x2x1
jax: 0.10.0
libtpu: 0.0.40
codegen_flags: <defaults>
</compile_context>

<pallas_src>
import jax
import jax.numpy as jnp
from jax import lax
from jax.experimental import pallas as pl
from jax.experimental.pallas import tpu as pltpu


NEG_BIAS = -1e30  # finite "no edge" additive bias (bf16-representable, no NaNs)


def _round_up(x, m):
    return (x + m - 1) // m * m


def _pad_last(x, target, value=0.0):
    d = x.shape[-1]
    if d == target:
        return x
    pad = [(0, 0)] * (x.ndim - 1) + [(0, target - d)]
    return jnp.pad(x, pad, constant_values=value)


def make_gat_encoder_kernel(heads1, heads2, d1p, d2, *, neg_slope=0.2,
                            eps=1e-5, exact=False):
    """Fused 2-layer GAT encoder; single grid step, everything VMEM-resident."""

    def _attend(er, el, adjb, hf_bf):
        # logits[i, j] = LeakyReLU(er[i] + el[j]) + adj_bias[i, j]
        logits = er + el
        logits = jnp.where(logits > 0, logits, neg_slope * logits)
        logits = logits + adjb                      # bf16 bias promotes to f32
        m = jnp.max(logits, axis=1, keepdims=True)
        p = jnp.exp(logits - m)
        denom = jnp.sum(p, axis=1, keepdims=True)   # >= 1 (self-loops present)
        if exact:
            agg = jnp.dot(p, hf_bf.astype(jnp.float32),
                          preferred_element_type=jnp.float32)
            return agg / denom
        # Fast path: bf16 MXU aggregation, EUP reciprocal off the VPU path.
        agg = jnp.dot(p.astype(jnp.bfloat16), hf_bf,
                      preferred_element_type=jnp.float32)
        return agg * pl.reciprocal(denom, approx=True)

    def _layer(x_bf, w, wa_dst, wa_src, adjb, num_heads, dp):
        # One wide projection matmul covering ALL heads -> (N, H*dp) f32.
        hf = jnp.dot(x_bf, w, preferred_element_type=jnp.float32)
        # Attention terms via precomputed W@a vectors (independent of hf):
        #   er[i] = <x_i, W_h a_dst_h>,  el[j] = <x_j, W_h a_src_h>
        er_all = jnp.dot(x_bf, wa_dst,
                         preferred_element_type=jnp.float32)          # (N, H)
        el_all = lax.dot_general(wa_src, x_bf, (((1,), (1,)), ((), ())),
                                 preferred_element_type=jnp.float32)  # (H, N)
        inv_h = 1.0 / num_heads
        acc = None
        for h in range(num_heads):                  # unrolled at trace time
            out_h = _attend(er_all[:, h:h + 1], el_all[h:h + 1, :], adjb,
                            hf[:, h * dp:(h + 1) * dp].astype(jnp.bfloat16))
            out_h = out_h * inv_h if num_heads > 1 else out_h
            acc = out_h if acc is None else acc + out_h
        return acc                                   # head-mean, (N, dp) f32

    def kernel(feat_ref, w1_ref, wadst1_ref, wasrc1_ref, adjb1_ref,
               bias1_ref, gamma_ref, beta_ref, prelu_ref,
               w2_ref, wadst2_ref, wasrc2_ref, adjb2_ref, bias2_ref,
               o_ref):
        feat = feat_ref[...]                         # (N, F) bf16, loaded once

        # ---- Layer 1: GAT + BatchNorm1d (batch stats) + PReLU --------------
        h1 = _layer(feat, w1_ref[...], wadst1_ref[...], wasrc1_ref[...],
                    adjb1_ref[...], heads1, d1p)
        h1 = h1 + bias1_ref[...]
        mu = jnp.mean(h1, axis=0, keepdims=True)
        var = jnp.mean((h1 - mu) ** 2, axis=0, keepdims=True)
        h1 = (h1 - mu) * lax.rsqrt(var + eps)
        h1 = h1 * gamma_ref[...] + beta_ref[...]
        alpha = prelu_ref[...]                       # (1, 1), broadcasts
        h1 = jnp.where(h1 > 0, h1, alpha * h1)

        # ---- Layer 2: plain GAT (no norm / no activation), fused in-VMEM ---
        h1_bf = h1.astype(jnp.bfloat16)
        z = _layer(h1_bf, w2_ref[...], wadst2_ref[...], wasrc2_ref[...],
                   adjb2_ref[...], heads2, d2)
        o_ref[...] = (z + bias2_ref[...]).astype(o_ref.dtype)

    return kernel


def _pack_layer(params, in_dim, num_heads, head_dim, head_dim_pad):
    """W slab + precomputed W@a attention vectors + head-mean bias."""
    W = params["W"].reshape(in_dim, num_heads, head_dim)
    a_src = params["a_src"].reshape(num_heads, head_dim)
    a_dst = params["a_dst"].reshape(num_heads, head_dim)
    wa_dst = jnp.einsum("fhd,hd->fh", W, a_dst)        # (in_dim, H)
    wa_src = jnp.einsum("fhd,hd->hf", W, a_src)        # (H, in_dim)
    W = _pad_last(W, head_dim_pad).reshape(in_dim, num_heads * head_dim_pad)
    bias = jnp.mean(params["bias"], axis=0)            # (1, head_dim) head-mean
    return (W.astype(jnp.bfloat16), wa_dst.astype(jnp.bfloat16),
            wa_src.astype(jnp.bfloat16), bias)


def adj_to_bias(adj):
    """0/1 adjacency (adj[i, j]=1 => edge j -> i) -> additive attention bias."""
    return jnp.where(adj > 0, 0.0, NEG_BIAS).astype(jnp.bfloat16)


def gat_encoder(g_block, feat, params1, params2, *, heads1, heads2, d1, d2,
                exact=False):
    """Mirrors GATEncoder.forward (single adjacency or a list of two)."""
    if isinstance(g_block, (list, tuple)):
        adj1, adj2 = g_block[0], g_block[1]
    else:
        adj1 = adj2 = g_block
    adjb1 = adj_to_bias(adj1)
    adjb2 = adjb1 if adj2 is adj1 else adj_to_bias(adj2)

    N, F = feat.shape
    d1p = _round_up(d1, 128)     # lane-dense layer-1 slab (per-head width)

    # Layer-1 packing.
    w1, wadst1, wasrc1, bias1 = _pack_layer(params1, F, heads1, d1, d1p)
    bias1 = _pad_last(bias1, d1p)
    gamma = _pad_last(params1["gamma"], d1p, 1.0)
    beta = _pad_last(params1["beta"], d1p)
    prelu = params1["prelu"].reshape(1, 1).astype(jnp.float32)

    # Layer-2 packing (head dim kept at natural width; padding to 128 would
    # double the dominant (N,N)x(N,d2) aggregation matmul and the writeback).
    w2, wadst2, wasrc2, bias2 = _pack_layer(params2, d1, heads2, d2, d2)
    if d1p != d1:   # extend layer-2 input rows over padded (always-zero) feats
        w2 = jnp.pad(w2, ((0, d1p - d1), (0, 0)))
        wadst2 = jnp.pad(wadst2, ((0, d1p - d1), (0, 0)))
        wasrc2 = jnp.pad(wasrc2, ((0, 0), (0, d1p - d1)))

    feat_bf = feat.astype(jnp.bfloat16)

    inputs = (feat_bf, w1, wadst1, wasrc1, adjb1,
              bias1, gamma, beta, prelu,
              w2, wadst2, wasrc2, adjb2, bias2)

    def _spec(shape):
        return pl.BlockSpec(shape, lambda i: (0,) * len(shape))

    in_specs = [_spec(x.shape) for x in inputs]
    out_spec = _spec((N, d2))

    # Explicit VMEM budget from the actual block sizes (+ intermediates).
    in_bytes = sum(int(x.size) * x.dtype.itemsize for x in inputs)
    out_bytes = N * d2 * 4
    inter_bytes = 4 * (N * heads1 * d1p + 3 * N * N + 2 * N * d1p
                       + N * heads2 * d2 + 2 * N * d2)
    vmem_limit = int(min(max(in_bytes + out_bytes + inter_bytes + (2 << 20),
                             8 << 20), 64 << 20))

    # Advisory cost estimate (3 matmul groups + N^2 transcendentals).
    flops = 2 * N * F * (heads1 * d1p + 2 * heads1)
    flops += heads1 * (2 * N * N * d1p + 8 * N * N)
    flops += 2 * N * d1p * (heads2 * d2 + 2 * heads2)
    flops += heads2 * (2 * N * N * d2 + 8 * N * N)
    flops += 12 * N * d1p
    transcendentals = (heads1 + heads2) * N * N + (heads1 + heads2) * N + d1p
    cost = pl.CostEstimate(flops=int(flops),
                           transcendentals=int(transcendentals),
                           bytes_accessed=int(in_bytes + out_bytes))

    kernel = make_gat_encoder_kernel(heads1, heads2, d1p, d2, exact=exact)

    return pl.pallas_call(
        kernel,
        out_shape=jax.ShapeDtypeStruct((N, d2), jnp.float32),
        grid_spec=pltpu.PrefetchScalarGridSpec(
            num_scalar_prefetch=0,
            grid=(1,),                      # single fused step; head loop is
            in_specs=in_specs,              # unrolled inside the kernel body
            out_specs=out_spec,
        ),
        compiler_params=pltpu.CompilerParams(
            dimension_semantics=("arbitrary",),
            vmem_limit_bytes=vmem_limit),
        cost_estimate=cost,
    )(*inputs)


def init_gat_params(key, in_dim, out_dim, num_heads):
    """Deterministic synthetic parameter init (Xavier-ish scaled normals)."""
    k_w, k_s, k_d = jax.random.split(key, 3)
    scale = 1.0 / jnp.sqrt(jnp.float32(in_dim))
    return {
        "W": jax.random.normal(k_w, (in_dim, num_heads * out_dim), jnp.float32) * scale,
        "a_src": jax.random.normal(k_s, (num_heads, 1, out_dim), jnp.float32) * 0.1,
        "a_dst": jax.random.normal(k_d, (num_heads, 1, out_dim), jnp.float32) * 0.1,
        "bias": jnp.zeros((num_heads, 1, out_dim), jnp.float32),
        "gamma": jnp.ones((1, out_dim), jnp.float32),
        "beta": jnp.zeros((1, out_dim), jnp.float32),
        "prelu": jnp.full((1, 1), 0.25, jnp.float32),
    }


if __name__ == "__main__":
    # Small shapes consistent with the module (scaled down from 512/256 hidden).
    N = 128          # number of nodes
    IN_DIM = 64
    OUT_DIM = [128, 64]
    NHEADS = [4, 1]

    key = jax.random.PRNGKey(0)
    k_feat, k_adj, k_p1, k_p2 = jax.random.split(key, 4)

    feat = jax.random.normal(k_feat, (N, IN_DIM), jnp.float32)

    # Deterministic sparse-ish adjacency with self-loops (adj[i, j]=1 => j -> i).
    adj = (jax.random.uniform(k_adj, (N, N)) < 0.1).astype(jnp.float32)
    adj = jnp.maximum(adj, jnp.eye(N, dtype=jnp.float32))

    params1 = init_gat_params(k_p1, IN_DIM, OUT_DIM[0], NHEADS[0])
    params2 = init_gat_params(k_p2, OUT_DIM[0], OUT_DIM[1], NHEADS[1])

    z = gat_encoder([adj, adj], feat, params1, params2,
                    heads1=NHEADS[0], heads2=NHEADS[1],
                    d1=OUT_DIM[0], d2=OUT_DIM[1])
    z = jax.block_until_ready(z)

    assert z.shape == (N, OUT_DIM[1]), z.shape
    assert bool(jnp.all(jnp.isfinite(z)))
    print("KERNEL_OK")
</pallas_src>

<mosaic_0001>
module attributes {stable_mosaic.version = 11 : i64} {
  func.func @kernel(%arg0: i32, %arg1: memref<128x64xbf16, #tpu.memory_space<vmem>>, %arg2: memref<64x512xbf16, #tpu.memory_space<vmem>>, %arg3: memref<64x4xbf16, #tpu.memory_space<vmem>>, %arg4: memref<4x64xbf16, #tpu.memory_space<vmem>>, %arg5: memref<128x128xbf16, #tpu.memory_space<vmem>>, %arg6: memref<1x128xf32, #tpu.memory_space<vmem>>, %arg7: memref<1x128xf32, #tpu.memory_space<vmem>>, %arg8: memref<1x128xf32, #tpu.memory_space<vmem>>, %arg9: memref<1x1xf32, #tpu.memory_space<vmem>>, %arg10: memref<128x64xbf16, #tpu.memory_space<vmem>>, %arg11: memref<128x1xbf16, #tpu.memory_space<vmem>>, %arg12: memref<1x128xbf16, #tpu.memory_space<vmem>>, %arg13: memref<128x128xbf16, #tpu.memory_space<vmem>>, %arg14: memref<1x64xf32, #tpu.memory_space<vmem>>, %arg15: memref<128x64xf32, #tpu.memory_space<vmem>>) attributes {dimension_semantics = [#tpu.dimension_semantics<arbitrary>], iteration_bounds = array<i64: 1>, scalar_prefetch = 0 : i64, scratch_operands = 0 : i64, tpu.core_type = #tpu.core_type<tc>, window_params = [{pipeline_mode = #tpu.pipeline_mode<synchronous>, transform_indices = @transform_0, window_bounds = array<i64: 128, 64>}, {pipeline_mode = #tpu.pipeline_mode<synchronous>, transform_indices = @transform_1, window_bounds = array<i64: 64, 512>}, {pipeline_mode = #tpu.pipeline_mode<synchronous>, transform_indices = @transform_2, window_bounds = array<i64: 64, 4>}, {pipeline_mode = #tpu.pipeline_mode<synchronous>, transform_indices = @transform_3, window_bounds = array<i64: 4, 64>}, {pipeline_mode = #tpu.pipeline_mode<synchronous>, transform_indices = @transform_4, window_bounds = array<i64: 128, 128>}, {pipeline_mode = #tpu.pipeline_mode<synchronous>, transform_indices = @transform_5, window_bounds = array<i64: 1, 128>}, {pipeline_mode = #tpu.pipeline_mode<synchronous>, transform_indices = @transform_6, window_bounds = array<i64: 1, 128>}, {pipeline_mode = #tpu.pipeline_mode<synchronous>, transform_indices = @transform_7, window_bounds = array<i64: 1, 128>}, {pipeline_mode = #tpu.pipeline_mode<synchronous>, transform_indices = @transform_8, window_bounds = array<i64: 1, 1>}, {pipeline_mode = #tpu.pipeline_mode<synchronous>, transform_indices = @transform_9, window_bounds = array<i64: 128, 64>}, {pipeline_mode = #tpu.pipeline_mode<synchronous>, transform_indices = @transform_10, window_bounds = array<i64: 128, 1>}, {pipeline_mode = #tpu.pipeline_mode<synchronous>, transform_indices = @transform_11, window_bounds = array<i64: 1, 128>}, {pipeline_mode = #tpu.pipeline_mode<synchronous>, transform_indices = @transform_12, window_bounds = array<i64: 128, 128>}, {pipeline_mode = #tpu.pipeline_mode<synchronous>, transform_indices = @transform_13, window_bounds = array<i64: 1, 64>}, {pipeline_mode = #tpu.pipeline_mode<synchronous>, transform_indices = @transform_14, window_bounds = array<i64: 128, 64>}]} {
    %c0 = arith.constant 0 : index
    %c0_0 = arith.constant 0 : index
    %0 = vector.load %arg1[%c0, %c0_0] : memref<128x64xbf16, #tpu.memory_space<vmem>>, vector<128x64xbf16>
    %c0_1 = arith.constant 0 : index
    %c0_2 = arith.constant 0 : index
    %1 = vector.load %arg2[%c0_1, %c0_2] : memref<64x512xbf16, #tpu.memory_space<vmem>>, vector<64x512xbf16>
    %c0_3 = arith.constant 0 : index
    %c0_4 = arith.constant 0 : index
    %2 = vector.load %arg3[%c0_3, %c0_4] : memref<64x4xbf16, #tpu.memory_space<vmem>>, vector<64x4xbf16>
    %c0_5 = arith.constant 0 : index
    %c0_6 = arith.constant 0 : index
    %3 = vector.load %arg4[%c0_5, %c0_6] : memref<4x64xbf16, #tpu.memory_space<vmem>>, vector<4x64xbf16>
    %c0_7 = arith.constant 0 : index
    %c0_8 = arith.constant 0 : index
    %4 = vector.load %arg5[%c0_7, %c0_8] : memref<128x128xbf16, #tpu.memory_space<vmem>>, vector<128x128xbf16>
    %cst = arith.constant dense<0.000000e+00> : vector<128x512xf32>
    %5 = tpu.matmul %0, %1, %cst {dimension_numbers = #tpu.dot_dimension_numbers<[1], [0], [0], [1], [0, 0, 1, 1], [], []>} : vector<128x64xbf16>, vector<64x512xbf16>, vector<128x512xf32> -> vector<128x512xf32>
    %cst_9 = arith.constant dense<0.000000e+00> : vector<128x4xf32>
    %6 = tpu.matmul %0, %2, %cst_9 {dimension_numbers = #tpu.dot_dimension_numbers<[1], [0], [0], [1], [0, 0, 1, 1], [], []>} : vector<128x64xbf16>, vector<64x4xbf16>, vector<128x4xf32> -> vector<128x4xf32>
    %cst_10 = arith.constant dense<0.000000e+00> : vector<4x128xf32>
    %7 = tpu.matmul %3, %0, %cst_10 {dimension_numbers = #tpu.dot_dimension_numbers<[1], [1], [0], [0], [0, 0, 1, 0], [], []>} : vector<4x64xbf16>, vector<128x64xbf16>, vector<4x128xf32> -> vector<4x128xf32>
    %8 = vector.extract_strided_slice %6 {offsets = [0, 0], sizes = [128, 1], strides = [1, 1]} : vector<128x4xf32> to vector<128x1xf32>
    %9 = vector.extract_strided_slice %7 {offsets = [0, 0], sizes = [1, 128], strides = [1, 1]} : vector<4x128xf32> to vector<1x128xf32>
    %10 = vector.extract_strided_slice %5 {offsets = [0, 0], sizes = [128, 128], strides = [1, 1]} : vector<128x512xf32> to vector<128x128xf32>
    %11 = arith.truncf %10 : vector<128x128xf32> to vector<128x128xbf16>
    %12 = vector.broadcast %8 : vector<128x1xf32> to vector<128x128xf32>
    %13 = vector.broadcast %9 : vector<1x128xf32> to vector<128x128xf32>
    %14 = arith.addf %12, %13 : vector<128x128xf32>
    %cst_11 = arith.constant 0.000000e+00 : f32
    %15 = vector.broadcast %cst_11 : f32 to vector<128x128xf32>
    %16 = arith.cmpf ogt, %14, %15 : vector<128x128xf32>
    %cst_12 = arith.constant 2.000000e-01 : f32
    %17 = vector.broadcast %cst_12 : f32 to vector<128x128xf32>
    %18 = arith.mulf %17, %14 : vector<128x128xf32>
    %19 = arith.select %16, %14, %18 : vector<128x128xi1>, vector<128x128xf32>
    %20 = arith.extf %4 : vector<128x128xbf16> to vector<128x128xf32>
    %21 = arith.addf %19, %20 : vector<128x128xf32>
    %cst_13 = arith.constant dense<0xFF800000> : vector<128xf32>
    %22 = vector.multi_reduction <maximumf>, %21, %cst_13 [1] : vector<128x128xf32> to vector<128xf32>
    %23 = vector.shape_cast %22 : vector<128xf32> to vector<128x1xf32>
    %24 = vector.broadcast %23 : vector<128x1xf32> to vector<128x128xf32>
    %25 = arith.subf %21, %24 : vector<128x128xf32>
    %26 = math.exp %25 : vector<128x128xf32>
    %cst_14 = arith.constant dense<0.000000e+00> : vector<128xf32>
    %27 = vector.multi_reduction <add>, %26, %cst_14 [1] : vector<128x128xf32> to vector<128xf32>
    %28 = vector.shape_cast %27 : vector<128xf32> to vector<128x1xf32>
    %29 = arith.truncf %26 : vector<128x128xf32> to vector<128x128xbf16>
    %cst_15 = arith.constant dense<0.000000e+00> : vector<128x128xf32>
    %30 = tpu.matmul %29, %11, %cst_15 {dimension_numbers = #tpu.dot_dimension_numbers<[1], [0], [0], [1], [0, 0, 1, 1], [], []>} : vector<128x128xbf16>, vector<128x128xbf16>, vector<128x128xf32> -> vector<128x128xf32>
    %31 = tpu.reciprocal %28 {approx = true} : vector<128x1xf32> -> vector<128x1xf32>
    %32 = vector.broadcast %31 : vector<128x1xf32> to vector<128x128xf32>
    %33 = arith.mulf %30, %32 : vector<128x128xf32>
    %cst_16 = arith.constant 2.500000e-01 : f32
    %34 = vector.broadcast %cst_16 : f32 to vector<128x128xf32>
    %35 = arith.mulf %33, %34 : vector<128x128xf32>
    %36 = vector.extract_strided_slice %6 {offsets = [0, 1], sizes = [128, 1], strides = [1, 1]} : vector<128x4xf32> to vector<128x1xf32>
    %37 = vector.extract_strided_slice %7 {offsets = [1, 0], sizes = [1, 128], strides = [1, 1]} : vector<4x128xf32> to vector<1x128xf32>
    %38 = vector.extract_strided_slice %5 {offsets = [0, 128], sizes = [128, 128], strides = [1, 1]} : vector<128x512xf32> to vector<128x128xf32>
    %39 = arith.truncf %38 : vector<128x128xf32> to vector<128x128xbf16>
    %40 = vector.broadcast %36 : vector<128x1xf32> to vector<128x128xf32>
    %41 = vector.broadcast %37 : vector<1x128xf32> to vector<128x128xf32>
    %42 = arith.addf %40, %41 : vector<128x128xf32>
    %cst_17 = arith.constant 0.000000e+00 : f32
    %43 = vector.broadcast %cst_17 : f32 to vector<128x128xf32>
    %44 = arith.cmpf ogt, %42, %43 : vector<128x128xf32>
    %cst_18 = arith.constant 2.000000e-01 : f32
    %45 = vector.broadcast %cst_18 : f32 to vector<128x128xf32>
    %46 = arith.mulf %45, %42 : vector<128x128xf32>
    %47 = arith.select %44, %42, %46 : vector<128x128xi1>, vector<128x128xf32>
    %48 = arith.extf %4 : vector<128x128xbf16> to vector<128x128xf32>
    %49 = arith.addf %47, %48 : vector<128x128xf32>
    %cst_19 = arith.constant dense<0xFF800000> : vector<128xf32>
    %50 = vector.multi_reduction <maximumf>, %49, %cst_19 [1] : vector<128x128xf32> to vector<128xf32>
    %51 = vector.shape_cast %50 : vector<128xf32> to vector<128x1xf32>
    %52 = vector.broadcast %51 : vector<128x1xf32> to vector<128x128xf32>
    %53 = arith.subf %49, %52 : vector<128x128xf32>
    %54 = math.exp %53 : vector<128x128xf32>
    %cst_20 = arith.constant dense<0.000000e+00> : vector<128xf32>
    %55 = vector.multi_reduction <add>, %54, %cst_20 [1] : vector<128x128xf32> to vector<128xf32>
    %56 = vector.shape_cast %55 : vector<128xf32> to vector<128x1xf32>
    %57 = arith.truncf %54 : vector<128x128xf32> to vector<128x128xbf16>
    %cst_21 = arith.constant dense<0.000000e+00> : vector<128x128xf32>
    %58 = tpu.matmul %57, %39, %cst_21 {dimension_numbers = #tpu.dot_dimension_numbers<[1], [0], [0], [1], [0, 0, 1, 1], [], []>} : vector<128x128xbf16>, vector<128x128xbf16>, vector<128x128xf32> -> vector<128x128xf32>
    %59 = tpu.reciprocal %56 {approx = true} : vector<128x1xf32> -> vector<128x1xf32>
    %60 = vector.broadcast %59 : vector<128x1xf32> to vector<128x128xf32>
    %61 = arith.mulf %58, %60 : vector<128x128xf32>
    %cst_22 = arith.constant 2.500000e-01 : f32
    %62 = vector.broadcast %cst_22 : f32 to vector<128x128xf32>
    %63 = arith.mulf %61, %62 : vector<128x128xf32>
    %64 = arith.addf %35, %63 : vector<128x128xf32>
    %65 = vector.extract_strided_slice %6 {offsets = [0, 2], sizes = [128, 1], strides = [1, 1]} : vector<128x4xf32> to vector<128x1xf32>
    %66 = vector.extract_strided_slice %7 {offsets = [2, 0], sizes = [1, 128], strides = [1, 1]} : vector<4x128xf32> to vector<1x128xf32>
    %67 = vector.extract_strided_slice %5 {offsets = [0, 256], sizes = [128, 128], strides = [1, 1]} : vector<128x512xf32> to vector<128x128xf32>
    %68 = arith.truncf %67 : vector<128x128xf32> to vector<128x128xbf16>
    %69 = vector.broadcast %65 : vector<128x1xf32> to vector<128x128xf32>
    %70 = vector.broadcast %66 : vector<1x128xf32> to vector<128x128xf32>
    %71 = arith.addf %69, %70 : vector<128x128xf32>
    %cst_23 = arith.constant 0.000000e+00 : f32
    %72 = vector.broadcast %cst_23 : f32 to vector<128x128xf32>
    %73 = arith.cmpf ogt, %71, %72 : vector<128x128xf32>
    %cst_24 = arith.constant 2.000000e-01 : f32
    %74 = vector.broadcast %cst_24 : f32 to vector<128x128xf32>
    %75 = arith.mulf %74, %71 : vector<128x128xf32>
    %76 = arith.select %73, %71, %75 : vector<128x128xi1>, vector<128x128xf32>
    %77 = arith.extf %4 : vector<128x128xbf16> to vector<128x128xf32>
    %78 = arith.addf %76, %77 : vector<128x128xf32>
    %cst_25 = arith.constant dense<0xFF800000> : vector<128xf32>
    %79 = vector.multi_reduction <maximumf>, %78, %cst_25 [1] : vector<128x128xf32> to vector<128xf32>
    %80 = vector.shape_cast %79 : vector<128xf32> to vector<128x1xf32>
    %81 = vector.broadcast %80 : vector<128x1xf32> to vector<128x128xf32>
    %82 = arith.subf %78, %81 : vector<128x128xf32>
    %83 = math.exp %82 : vector<128x128xf32>
    %cst_26 = arith.constant dense<0.000000e+00> : vector<128xf32>
    %84 = vector.multi_reduction <add>, %83, %cst_26 [1] : vector<128x128xf32> to vector<128xf32>
    %85 = vector.shape_cast %84 : vector<128xf32> to vector<128x1xf32>
    %86 = arith.truncf %83 : vector<128x128xf32> to vector<128x128xbf16>
    %cst_27 = arith.constant dense<0.000000e+00> : vector<128x128xf32>
    %87 = tpu.matmul %86, %68, %cst_27 {dimension_numbers = #tpu.dot_dimension_numbers<[1], [0], [0], [1], [0, 0, 1, 1], [], []>} : vector<128x128xbf16>, vector<128x128xbf16>, vector<128x128xf32> -> vector<128x128xf32>
    %88 = tpu.reciprocal %85 {approx = true} : vector<128x1xf32> -> vector<128x1xf32>
    %89 = vector.broadcast %88 : vector<128x1xf32> to vector<128x128xf32>
    %90 = arith.mulf %87, %89 : vector<128x128xf32>
    %cst_28 = arith.constant 2.500000e-01 : f32
    %91 = vector.broadcast %cst_28 : f32 to vector<128x128xf32>
    %92 = arith.mulf %90, %91 : vector<128x128xf32>
    %93 = arith.addf %64, %92 : vector<128x128xf32>
    %94 = vector.extract_strided_slice %6 {offsets = [0, 3], sizes = [128, 1], strides = [1, 1]} : vector<128x4xf32> to vector<128x1xf32>
    %95 = vector.extract_strided_slice %7 {offsets = [3, 0], sizes = [1, 128], strides = [1, 1]} : vector<4x128xf32> to vector<1x128xf32>
    %96 = vector.extract_strided_slice %5 {offsets = [0, 384], sizes = [128, 128], strides = [1, 1]} : vector<128x512xf32> to vector<128x128xf32>
    %97 = arith.truncf %96 : vector<128x128xf32> to vector<128x128xbf16>
    %98 = vector.broadcast %94 : vector<128x1xf32> to vector<128x128xf32>
    %99 = vector.broadcast %95 : vector<1x128xf32> to vector<128x128xf32>
    %100 = arith.addf %98, %99 : vector<128x128xf32>
    %cst_29 = arith.constant 0.000000e+00 : f32
    %101 = vector.broadcast %cst_29 : f32 to vector<128x128xf32>
    %102 = arith.cmpf ogt, %100, %101 : vector<128x128xf32>
    %cst_30 = arith.constant 2.000000e-01 : f32
    %103 = vector.broadcast %cst_30 : f32 to vector<128x128xf32>
    %104 = arith.mulf %103, %100 : vector<128x128xf32>
    %105 = arith.select %102, %100, %104 : vector<128x128xi1>, vector<128x128xf32>
    %106 = arith.extf %4 : vector<128x128xbf16> to vector<128x128xf32>
    %107 = arith.addf %105, %106 : vector<128x128xf32>
    %cst_31 = arith.constant dense<0xFF800000> : vector<128xf32>
    %108 = vector.multi_reduction <maximumf>, %107, %cst_31 [1] : vector<128x128xf32> to vector<128xf32>
    %109 = vector.shape_cast %108 : vector<128xf32> to vector<128x1xf32>
    %110 = vector.broadcast %109 : vector<128x1xf32> to vector<128x128xf32>
    %111 = arith.subf %107, %110 : vector<128x128xf32>
    %112 = math.exp %111 : vector<128x128xf32>
    %cst_32 = arith.constant dense<0.000000e+00> : vector<128xf32>
    %113 = vector.multi_reduction <add>, %112, %cst_32 [1] : vector<128x128xf32> to vector<128xf32>
    %114 = vector.shape_cast %113 : vector<128xf32> to vector<128x1xf32>
    %115 = arith.truncf %112 : vector<128x128xf32> to vector<128x128xbf16>
    %cst_33 = arith.constant dense<0.000000e+00> : vector<128x128xf32>
    %116 = tpu.matmul %115, %97, %cst_33 {dimension_numbers = #tpu.dot_dimension_numbers<[1], [0], [0], [1], [0, 0, 1, 1], [], []>} : vector<128x128xbf16>, vector<128x128xbf16>, vector<128x128xf32> -> vector<128x128xf32>
    %117 = tpu.reciprocal %114 {approx = true} : vector<128x1xf32> -> vector<128x1xf32>
    %118 = vector.broadcast %117 : vector<128x1xf32> to vector<128x128xf32>
    %119 = arith.mulf %116, %118 : vector<128x128xf32>
    %cst_34 = arith.constant 2.500000e-01 : f32
    %120 = vector.broadcast %cst_34 : f32 to vector<128x128xf32>
    %121 = arith.mulf %119, %120 : vector<128x128xf32>
    %122 = arith.addf %93, %121 : vector<128x128xf32>
    %c0_35 = arith.constant 0 : index
    %c0_36 = arith.constant 0 : index
    %123 = vector.load %arg6[%c0_35, %c0_36] : memref<1x128xf32, #tpu.memory_space<vmem>>, vector<1x128xf32>
    %124 = vector.broadcast %123 : vector<1x128xf32> to vector<128x128xf32>
    %125 = arith.addf %122, %124 : vector<128x128xf32>
    %cst_37 = arith.constant dense<0.000000e+00> : vector<128xf32>
    %126 = vector.multi_reduction <add>, %125, %cst_37 [0] : vector<128x128xf32> to vector<128xf32>
    %127 = vector.shape_cast %126 : vector<128xf32> to vector<1x128xf32>
    %cst_38 = arith.constant 1.280000e+02 : f32
    %128 = vector.broadcast %cst_38 : f32 to vector<1x128xf32>
    %129 = arith.divf %127, %128 : vector<1x128xf32>
    %130 = vector.broadcast %129 : vector<1x128xf32> to vector<128x128xf32>
    %131 = arith.subf %125, %130 : vector<128x128xf32>
    %132 = arith.mulf %131, %131 : vector<128x128xf32>
    %cst_39 = arith.constant dense<0.000000e+00> : vector<128xf32>
    %133 = vector.multi_reduction <add>, %132, %cst_39 [0] : vector<128x128xf32> to vector<128xf32>
    %134 = vector.shape_cast %133 : vector<128xf32> to vector<1x128xf32>
    %cst_40 = arith.constant 1.280000e+02 : f32
    %135 = vector.broadcast %cst_40 : f32 to vector<1x128xf32>
    %136 = arith.divf %134, %135 : vector<1x128xf32>
    %137 = vector.broadcast %129 : vector<1x128xf32> to vector<128x128xf32>
    %138 = arith.subf %125, %137 : vector<128x128xf32>
    %cst_41 = arith.constant 9.99999974E-6 : f32
    %139 = vector.broadcast %cst_41 : f32 to vector<1x128xf32>
    %140 = arith.addf %136, %139 : vector<1x128xf32>
    %141 = math.rsqrt %140 : vector<1x128xf32>
    %142 = vector.broadcast %141 : vector<1x128xf32> to vector<128x128xf32>
    %143 = arith.mulf %138, %142 : vector<128x128xf32>
    %c0_42 = arith.constant 0 : index
    %c0_43 = arith.constant 0 : index
    %144 = vector.load %arg7[%c0_42, %c0_43] : memref<1x128xf32, #tpu.memory_space<vmem>>, vector<1x128xf32>
    %145 = vector.broadcast %144 : vector<1x128xf32> to vector<128x128xf32>
    %146 = arith.mulf %143, %145 : vector<128x128xf32>
    %c0_44 = arith.constant 0 : index
    %c0_45 = arith.constant 0 : index
    %147 = vector.load %arg8[%c0_44, %c0_45] : memref<1x128xf32, #tpu.memory_space<vmem>>, vector<1x128xf32>
    %148 = vector.broadcast %147 : vector<1x128xf32> to vector<128x128xf32>
    %149 = arith.addf %146, %148 : vector<128x128xf32>
    %c0_46 = arith.constant 0 : index
    %c0_47 = arith.constant 0 : index
    %150 = vector.load %arg9[%c0_46, %c0_47] : memref<1x1xf32, #tpu.memory_space<vmem>>, vector<1x1xf32>
    %cst_48 = arith.constant 0.000000e+00 : f32
    %151 = vector.broadcast %cst_48 : f32 to vector<128x128xf32>
    %152 = arith.cmpf ogt, %149, %151 : vector<128x128xf32>
    %153 = vector.broadcast %150 : vector<1x1xf32> to vector<128x128xf32>
    %154 = arith.mulf %153, %149 : vector<128x128xf32>
    %155 = arith.select %152, %149, %154 : vector<128x128xi1>, vector<128x128xf32>
    %156 = arith.truncf %155 : vector<128x128xf32> to vector<128x128xbf16>
    %c0_49 = arith.constant 0 : index
    %c0_50 = arith.constant 0 : index
    %157 = vector.load %arg10[%c0_49, %c0_50] : memref<128x64xbf16, #tpu.memory_space<vmem>>, vector<128x64xbf16>
    %c0_51 = arith.constant 0 : index
    %c0_52 = arith.constant 0 : index
    %158 = vector.load %arg11[%c0_51, %c0_52] : memref<128x1xbf16, #tpu.memory_space<vmem>>, vector<128x1xbf16>
    %c0_53 = arith.constant 0 : index
    %c0_54 = arith.constant 0 : index
    %159 = vector.load %arg12[%c0_53, %c0_54] : memref<1x128xbf16, #tpu.memory_space<vmem>>, vector<1x128xbf16>
    %c0_55 = arith.constant 0 : index
    %c0_56 = arith.constant 0 : index
    %160 = vector.load %arg13[%c0_55, %c0_56] : memref<128x128xbf16, #tpu.memory_space<vmem>>, vector<128x128xbf16>
    %cst_57 = arith.constant dense<0.000000e+00> : vector<128x64xf32>
    %161 = tpu.matmul %156, %157, %cst_57 {dimension_numbers = #tpu.dot_dimension_numbers<[1], [0], [0], [1], [0, 0, 1, 1], [], []>} : vector<128x128xbf16>, vector<128x64xbf16>, vector<128x64xf32> -> vector<128x64xf32>
    %cst_58 = arith.constant dense<0.000000e+00> : vector<128x1xf32>
    %162 = tpu.matmul %156, %158, %cst_58 {dimension_numbers = #tpu.dot_dimension_numbers<[1], [0], [0], [1], [0, 0, 1, 1], [], []>} : vector<128x128xbf16>, vector<128x1xbf16>, vector<128x1xf32> -> vector<128x1xf32>
    %cst_59 = arith.constant dense<0.000000e+00> : vector<1x128xf32>
    %163 = tpu.matmul %159, %156, %cst_59 {dimension_numbers = #tpu.dot_dimension_numbers<[1], [1], [0], [0], [0, 0, 1, 0], [], []>} : vector<1x128xbf16>, vector<128x128xbf16>, vector<1x128xf32> -> vector<1x128xf32>
    %164 = arith.truncf %161 : vector<128x64xf32> to vector<128x64xbf16>
    %165 = vector.broadcast %162 : vector<128x1xf32> to vector<128x128xf32>
    %166 = vector.broadcast %163 : vector<1x128xf32> to vector<128x128xf32>
    %167 = arith.addf %165, %166 : vector<128x128xf32>
    %cst_60 = arith.constant 0.000000e+00 : f32
    %168 = vector.broadcast %cst_60 : f32 to vector<128x128xf32>
    %169 = arith.cmpf ogt, %167, %168 : vector<128x128xf32>
    %cst_61 = arith.constant 2.000000e-01 : f32
    %170 = vector.broadcast %cst_61 : f32 to vector<128x128xf32>
    %171 = arith.mulf %170, %167 : vector<128x128xf32>
    %172 = arith.select %169, %167, %171 : vector<128x128xi1>, vector<128x128xf32>
    %173 = arith.extf %160 : vector<128x128xbf16> to vector<128x128xf32>
    %174 = arith.addf %172, %173 : vector<128x128xf32>
    %cst_62 = arith.constant dense<0xFF800000> : vector<128xf32>
    %175 = vector.multi_reduction <maximumf>, %174, %cst_62 [1] : vector<128x128xf32> to vector<128xf32>
    %176 = vector.shape_cast %175 : vector<128xf32> to vector<128x1xf32>
    %177 = vector.broadcast %176 : vector<128x1xf32> to vector<128x128xf32>
    %178 = arith.subf %174, %177 : vector<128x128xf32>
    %179 = math.exp %178 : vector<128x128xf32>
    %cst_63 = arith.constant dense<0.000000e+00> : vector<128xf32>
    %180 = vector.multi_reduction <add>, %179, %cst_63 [1] : vector<128x128xf32> to vector<128xf32>
    %181 = vector.shape_cast %180 : vector<128xf32> to vector<128x1xf32>
    %182 = arith.truncf %179 : vector<128x128xf32> to vector<128x128xbf16>
    %cst_64 = arith.constant dense<0.000000e+00> : vector<128x64xf32>
    %183 = tpu.matmul %182, %164, %cst_64 {dimension_numbers = #tpu.dot_dimension_numbers<[1], [0], [0], [1], [0, 0, 1, 1], [], []>} : vector<128x128xbf16>, vector<128x64xbf16>, vector<128x64xf32> -> vector<128x64xf32>
    %184 = tpu.reciprocal %181 {approx = true} : vector<128x1xf32> -> vector<128x1xf32>
    %185 = vector.broadcast %184 : vector<128x1xf32> to vector<128x64xf32>
    %186 = arith.mulf %183, %185 : vector<128x64xf32>
    %c0_65 = arith.constant 0 : index
    %c0_66 = arith.constant 0 : index
    %187 = vector.load %arg14[%c0_65, %c0_66] : memref<1x64xf32, #tpu.memory_space<vmem>>, vector<1x64xf32>
    %188 = vector.broadcast %187 : vector<1x64xf32> to vector<128x64xf32>
    %189 = arith.addf %186, %188 : vector<128x64xf32>
    %c0_67 = arith.constant 0 : index
    %c0_68 = arith.constant 0 : index
    %190 = vector.load %arg15[%c0_67, %c0_68] : memref<128x64xf32, #tpu.memory_space<vmem>>, vector<128x64xf32>
    tpu.vector_store %arg15[%c0_67, %c0_68], %189 {strides = array<i32>} : memref<128x64xf32, #tpu.memory_space<vmem>>, vector<128x64xf32>,
    return
  }
  func.func @transform_0(%arg0: i32) -> (i32, i32) {
    %c0_i32 = arith.constant 0 : i32
    %c0_i32_0 = arith.constant 0 : i32
    %c0_i32_1 = arith.constant 0 : i32
    return %c0_i32, %c0_i32_0 : i32, i32
  }
  func.func @transform_1(%arg0: i32) -> (i32, i32) {
    %c0_i32 = arith.constant 0 : i32
    %c0_i32_0 = arith.constant 0 : i32
    %c0_i32_1 = arith.constant 0 : i32
    return %c0_i32, %c0_i32_0 : i32, i32
  }
  func.func @transform_2(%arg0: i32) -> (i32, i32) {
    %c0_i32 = arith.constant 0 : i32
    %c0_i32_0 = arith.constant 0 : i32
    %c0_i32_1 = arith.constant 0 : i32
    return %c0_i32, %c0_i32_0 : i32, i32
  }
  func.func @transform_3(%arg0: i32) -> (i32, i32) {
    %c0_i32 = arith.constant 0 : i32
    %c0_i32_0 = arith.constant 0 : i32
    %c0_i32_1 = arith.constant 0 : i32
    return %c0_i32, %c0_i32_0 : i32, i32
  }
  func.func @transform_4(%arg0: i32) -> (i32, i32) {
    %c0_i32 = arith.constant 0 : i32
    %c0_i32_0 = arith.constant 0 : i32
    %c0_i32_1 = arith.constant 0 : i32
    return %c0_i32, %c0_i32_0 : i32, i32
  }
  func.func @transform_5(%arg0: i32) -> (i32, i32) {
    %c0_i32 = arith.constant 0 : i32
    %c0_i32_0 = arith.constant 0 : i32
    %c0_i32_1 = arith.constant 0 : i32
    return %c0_i32, %c0_i32_0 : i32, i32
  }
  func.func @transform_6(%arg0: i32) -> (i32, i32) {
    %c0_i32 = arith.constant 0 : i32
    %c0_i32_0 = arith.constant 0 : i32
    %c0_i32_1 = arith.constant 0 : i32
    return %c0_i32, %c0_i32_0 : i32, i32
  }
  func.func @transform_7(%arg0: i32) -> (i32, i32) {
    %c0_i32 = arith.constant 0 : i32
    %c0_i32_0 = arith.constant 0 : i32
    %c0_i32_1 = arith.constant 0 : i32
    return %c0_i32, %c0_i32_0 : i32, i32
  }
  func.func @transform_8(%arg0: i32) -> (i32, i32) {
    %c0_i32 = arith.constant 0 : i32
    %c0_i32_0 = arith.constant 0 : i32
    %c0_i32_1 = arith.constant 0 : i32
    return %c0_i32, %c0_i32_0 : i32, i32
  }
  func.func @transform_9(%arg0: i32) -> (i32, i32) {
    %c0_i32 = arith.constant 0 : i32
    %c0_i32_0 = arith.constant 0 : i32
    %c0_i32_1 = arith.constant 0 : i32
    return %c0_i32, %c0_i32_0 : i32, i32
  }
  func.func @transform_10(%arg0: i32) -> (i32, i32) {
    %c0_i32 = arith.constant 0 : i32
    %c0_i32_0 = arith.constant 0 : i32
    %c0_i32_1 = arith.constant 0 : i32
    return %c0_i32, %c0_i32_0 : i32, i32
  }
  func.func @transform_11(%arg0: i32) -> (i32, i32) {
    %c0_i32 = arith.constant 0 : i32
    %c0_i32_0 = arith.constant 0 : i32
    %c0_i32_1 = arith.constant 0 : i32
    return %c0_i32, %c0_i32_0 : i32, i32
  }
  func.func @transform_12(%arg0: i32) -> (i32, i32) {
    %c0_i32 = arith.constant 0 : i32
    %c0_i32_0 = arith.constant 0 : i32
    %c0_i32_1 = arith.constant 0 : i32
    return %c0_i32, %c0_i32_0 : i32, i32
  }
  func.func @transform_13(%arg0: i32) -> (i32, i32) {
    %c0_i32 = arith.constant 0 : i32
    %c0_i32_0 = arith.constant 0 : i32
    %c0_i32_1 = arith.constant 0 : i32
    return %c0_i32, %c0_i32_0 : i32, i32
  }
  func.func @transform_14(%arg0: i32) -> (i32, i32) {
    %c0_i32 = arith.constant 0 : i32
    %c0_i32_0 = arith.constant 0 : i32
    %c0_i32_1 = arith.constant 0 : i32
    return %c0_i32, %c0_i32_0 : i32, i32
  }
}

</mosaic_0001>

<bundles_post_ra>
// kernel: tpu_custom_call.1
= control target key start
LH: loop header
LB: loop body
LE: loop exit
PB: predicated region body
PF: predicated region fallthrough
CT: control target
= control target key end

     0   :  { %v4523_v1 = vmov 0   ;;  %vm227_vm0 = vcmask 523264   ;;  %v6574_v25 = vmov 0.0   ;;  %vm4525_vm1 = vmmov 0   ;;  %s6558_s1 = inlined_call_operand.vmem [shape: bf16[64,512], index: 1, kind: input, shape index: {}]   ;;  %s6559_s0 = inlined_call_operand.vmem [shape: bf16[128,64], index: 0, kind: input, shape index: {}]   ;;  %s6560_s2 = inlined_call_operand.vmem [shape: bf16[64,4], index: 2, kind: input, shape index: {}]   ;;  %s6561_s3 = inlined_call_operand.vmem [shape: bf16[4,64], index: 3, kind: input, shape index: {}]   ;;  %s6562_s4 = inlined_call_operand.vmem [shape: bf16[128,128], index: 4, kind: input, shape index: {}]   ;;  %s6563_s8 = inlined_call_operand.<no memory space> [shape: f32[1,1], index: 8, kind: input, shape index: {}]   ;;  %s6564_s9 = inlined_call_operand.vmem [shape: bf16[128,64], index: 9, kind: input, shape index: {}]   ;;  %s6565_s10 = inlined_call_operand.vmem [shape: bf16[128,1], index: 10, kind: input, shape index: {}]   ;;  %s6566_s5 = inlined_call_operand.vmem [shape: f32[1,128], index: 5, kind: input, shape index: {}]   ;;  %s6567_s6 = inlined_call_operand.vmem [shape: f32[1,128], index: 6, kind: input, shape index: {}]   ;;  %s6568_s7 = inlined_call_operand.vmem [shape: f32[1,128], index: 7, kind: input, shape index: {}]   ;;  %s6569_s11 = inlined_call_operand.vmem [shape: bf16[1,128], index: 11, kind: input, shape index: {}]   ;;  %s6570_s12 = inlined_call_operand.vmem [shape: bf16[128,128], index: 12, kind: input, shape index: {}]   ;;  %s6571_s13 = inlined_call_operand.vmem [shape: f32[1,64], index: 13, kind: input, shape index: {}]   ;;  %s6572_s14 = inlined_call_operand.vmem [shape: f32[128,64], index: 14, kind: output, shape index: {}]  }
   0x1   :  { %v4149_v0 = vld [vmem:[%s6558_s1 + $0x64] ss:$16 sps:$4 sm:$0xff]   ;;  %284 = vmatprep.mubr.bf16.mxu0 %v4523_v1  ;;  %397 = vmatprep.mubr.bf16.mxu1 %v4523_v1  ;;  %v4151_v2 = vld [vmem:[%s6558_s1 + $0x60] ss:$16 sps:$4 sm:$0xff]   ;;  %v4162_v9 = vld [vmem:[%s6560_s2 + $0x18] sm:$0xff]  }
   0x2   :  { %4083 = vset.pattern.permute.xlu1 %v4523_v1  ;;  %4087 = vset.pattern.permute.xlu0 %v4523_v1  ;;  %v4152_v3 = vld [vmem:[%s6558_s1 + $0x44] ss:$16 sps:$4 sm:$0xff]   ;;  %v4154_v4 = vld [vmem:[%s6558_s1 + $0x40] ss:$16 sps:$4 sm:$0xff]   ;;  %v4173_v12 = vld [vmem:[%s6558_s1 + $0x6c] ss:$16 sps:$4 sm:$0xff]  }
   0x3   :  { %260 = vmatprep.subr.bf16.mxu0 %v4149_v0  ;;  %v4155_v5 = vld [vmem:[%s6558_s1 + $0x24] ss:$16 sps:$4 sm:$0xff]   ;;  %v4157_v6 = vld [vmem:[%s6558_s1 + $0x20] ss:$16 sps:$4 sm:$0xff]   ;;  %v4175_v13 = vld [vmem:[%s6558_s1 + $0x68] ss:$16 sps:$4 sm:$0xff]   ;;  %373 = vmatprep.subr.bf16.mxu1 %v4173_v12 }
   0x4   :  { %261 = vmatpush1.bf16.msra.mxu0 %v4151_v2  ;;  %v4158_v7 = vld [vmem:[%s6558_s1 + $0x4] ss:$16 sps:$4 sm:$0xff]   ;;  %v4160_v8 = vld [vmem:[%s6558_s1] ss:$16 sps:$4 sm:$0xff]   ;;  %v4176_v14 = vld [vmem:[%s6558_s1 + $0x4c] ss:$16 sps:$4 sm:$0xff]   ;;  %374 = vmatpush1.bf16.msra.mxu1 %v4175_v13 }
   0x5   :  { %262 = vmatprep.subr.bf16.mxu0 %v4152_v3  ;;  %v4638_v10 = vld [vmem:[%s6559_s0] sm:$0xff]   ;;  %v4165_v11 = vld [vmem:[%s6560_s2 + $0x10] sm:$0xff]   ;;  %v4168_v15 = vld [vmem:[%s6560_s2 + $0x8] sm:$0xff]   ;;  %375 = vmatprep.subr.bf16.mxu1 %v4176_v14 }
   0x6   :  { %v4178_v16 = vld [vmem:[%s6558_s1 + $0x48] ss:$16 sps:$4 sm:$0xff]   ;;  %v4179_v18 = vld [vmem:[%s6558_s1 + $0x2c] ss:$16 sps:$4 sm:$0xff]   ;;  %v4171_v19 = vld [vmem:[%s6560_s2] sm:$0xff]   ;;  %v229_v37 = vsel %vm227_vm0, %v4638_v10, 0 }
   0x7   :  { %v4664_v17 = vld [vmem:[%s6559_s0 + $0x8] sm:$0xff]   ;;  %v4164_v23 = vld [vmem:[%s6559_s0 + $0x10] sm:$0xff]   ;;  %v4690_v24 = vld [vmem:[%s6559_s0 + $0x38] sm:$0xff]  }
   0x8   :  { %263 = vmatpush1.bf16.msra.mxu0 %v4154_v4  ;;  %376 = vmatpush1.bf16.msra.mxu1 %v4178_v16  ;;  %v4181_v20 = vld [vmem:[%s6558_s1 + $0x28] ss:$16 sps:$4 sm:$0xff]   ;;  %v4182_v21 = vld [vmem:[%s6558_s1 + $0xc] ss:$16 sps:$4 sm:$0xff]   ;;  %v250_v26 = vsel %vm227_vm0, %v4690_v24, 0  ;;  %v4170_v28 = vld [vmem:[%s6559_s0 + $0x30] sm:$0xff]  }
   0x9   :  { %264 = vmatprep.subr.bf16.mxu0 %v4155_v5  ;;  %377 = vmatprep.subr.bf16.mxu1 %v4179_v18  ;;  %v4184_v22 = vld [vmem:[%s6558_s1 + $0x8] ss:$16 sps:$4 sm:$0xff]   ;;  %v247_v29 = vsel %vm227_vm0, %v4170_v28, 0  ;;  %v4167_v30 = vld [vmem:[%s6559_s0 + $0x20] sm:$0xff]   ;;  %v235_v35 = vsel %vm227_vm0, %v4164_v23, 0  ;;  %v232_v36 = vsel %vm227_vm0, %v4664_v17, 0 }
   0xa   :  { %v4166_v27 = vld [vmem:[%s6559_s0 + $0x18] sm:$0xff]   ;;  %v4169_v31 = vld [vmem:[%s6559_s0 + $0x28] sm:$0xff]   ;;  %v241_v33 = vsel %vm227_vm0, %v4167_v30, 0  ;;  %v90_v38 = vld [vmem:[%s6561_s3] sm:$0x3] }
   0xb   :  { %v244_v32 = vsel %vm227_vm0, %v4169_v31, 0  ;;  %v238_v34 = vsel %vm227_vm0, %v4166_v27, 0 }
   0xc   :  { %265 = vmatpush1.bf16.msra.mxu0 %v4157_v6  ;;  %378 = vmatpush1.bf16.msra.mxu1 %v4181_v20 }
   0xd   :  { %266 = vmatprep.subr.bf16.mxu0 %v4158_v7  ;;  %379 = vmatprep.subr.bf16.mxu1 %v4182_v21 }
  0x10   :  { %267 = vmatpush1.bf16.msra.mxu0 %v4160_v8  ;;  %380 = vmatpush1.bf16.msra.mxu1 %v4184_v22 }
  0x11   :  { %3789 = vmatprep.subr.bf16.mxu0 %v4162_v9  ;;  %3813 = vmatprep.subr.bf16.mxu1 %v6574_v25 }
  0x13   :  { %3519 = vmatmul.mubr.msk.bf16.vlgmr.msra.gmra.mxu0 %vm227_vm0, %v4638_v10  ;;  %3527 = vmatmul.mubr.msk.bf16.vlgmr.msra.gmra.mxu1 %vm227_vm0, %v4638_v10 }
  0x14   :  { %3790 = vmatpush3.bf16.msra.mxu0 %v4162_v9  ;;  %294 = vmatprep.mubr.bf16.mxu0 %v4523_v1 }
  0x15   :  { %3791 = vmatprep.subr.bf16.mxu0 %v4165_v11  ;;  %3814 = vmatpush3.bf16.xpose.msra.mxu1 %v250_v26 }
  0x16   :  { %407 = vmatprep.mubr.bf16.mxu1 %v4523_v1  ;;  %3815 = vmatprep.subr.bf16.mxu1 %v6574_v25 }
  0x18   :  { %3792 = vmatpush3.bf16.msra.mxu0 %v4165_v11 }
  0x19   :  { %3793 = vmatprep.subr.bf16.mxu0 %v4168_v15 }
  0x1b   :  { %3520 = vmatmul.mubr.msk.bf16.gmra.mxu0 %vm227_vm0, %v4664_v17  ;;  %3528 = vmatmul.mubr.msk.bf16.gmra.mxu1 %vm227_vm0, %v4664_v17 }
  0x1c   :  { %304 = vmatprep.mubr.bf16.mxu0 %v4523_v1  ;;  %3794 = vmatpush3.bf16.msra.mxu0 %v4168_v15 }
  0x1d   :  { %3795 = vmatprep.subr.bf16.mxu0 %v4171_v19  ;;  %3816 = vmatpush3.bf16.xpose.msra.mxu1 %v247_v29 }
  0x1e   :  { %417 = vmatprep.mubr.bf16.mxu1 %v4523_v1  ;;  %3817 = vmatprep.subr.bf16.mxu1 %v6574_v25 }
  0x20   :  { %3796 = vmatpush3.bf16.msra.mxu0 %v4171_v19 }
  0x23   :  { %3521 = vmatmul.mubr.msk.bf16.gmra.mxu0 %vm227_vm0, %v4164_v23  ;;  %3529 = vmatmul.mubr.msk.bf16.gmra.mxu1 %vm227_vm0, %v4164_v23 }
  0x24   :  { %314 = vmatprep.mubr.bf16.mxu0 %v4523_v1  ;;  %427 = vmatprep.mubr.bf16.mxu1 %v4523_v1 }
  0x25   :  { %3818 = vmatpush3.bf16.xpose.msra.mxu1 %v244_v32 }
  0x26   :  { %3819 = vmatprep.subr.bf16.mxu1 %v6574_v25 }
  0x2b   :  { %3522 = vmatmul.mubr.msk.bf16.gmra.mxu0 %vm227_vm0, %v4166_v27  ;;  %3530 = vmatmul.mubr.msk.bf16.gmra.mxu1 %vm227_vm0, %v4166_v27 }
  0x2c   :  { %324 = vmatprep.mubr.bf16.mxu0 %v4523_v1  ;;  %437 = vmatprep.mubr.bf16.mxu1 %v4523_v1 }
  0x2d   :  { %3820 = vmatpush3.bf16.xpose.msra.mxu1 %v241_v33 }
  0x2e   :  { %3821 = vmatprep.subr.bf16.mxu1 %v6574_v25 }
  0x33   :  { %3523 = vmatmul.mubr.msk.bf16.gmra.mxu0 %vm227_vm0, %v4167_v30  ;;  %3531 = vmatmul.mubr.msk.bf16.gmra.mxu1 %vm227_vm0, %v4167_v30 }
  0x34   :  { %334 = vmatprep.mubr.bf16.mxu0 %v4523_v1  ;;  %447 = vmatprep.mubr.bf16.mxu1 %v4523_v1 }
  0x35   :  { %3822 = vmatpush3.bf16.xpose.msra.mxu1 %v238_v34 }
  0x36   :  { %3823 = vmatprep.subr.bf16.mxu1 %v6574_v25 }
  0x3b   :  { %3524 = vmatmul.mubr.msk.bf16.gmra.mxu0 %vm227_vm0, %v4169_v31  ;;  %3532 = vmatmul.mubr.msk.bf16.gmra.mxu1 %vm227_vm0, %v4169_v31 }
  0x3c   :  { %344 = vmatprep.mubr.bf16.mxu0 %v4523_v1  ;;  %457 = vmatprep.mubr.bf16.mxu1 %v4523_v1 }
  0x3d   :  { %3824 = vmatpush3.bf16.xpose.msra.mxu1 %v235_v35 }
  0x3e   :  { %3825 = vmatprep.subr.bf16.mxu1 %v6574_v25 }
  0x43   :  { %3525 = vmatmul.mubr.msk.bf16.gmra.mxu0 %vm227_vm0, %v4170_v28  ;;  %3533 = vmatmul.mubr.msk.bf16.gmra.mxu1 %vm227_vm0, %v4170_v28 }
  0x44   :  { %354 = vmatprep.mubr.bf16.mxu0 %v4523_v1  ;;  %467 = vmatprep.mubr.bf16.mxu1 %v4523_v1 }
  0x45   :  { %3826 = vmatpush3.bf16.xpose.msra.mxu1 %v232_v36 }
  0x46   :  { %3827 = vmatprep.subr.bf16.mxu1 %v6574_v25 }
  0x4b   :  { %3526 = vmatmul.mubr.msk.bf16.gmra.mxu0 %vm227_vm0, %v4690_v24  ;;  %3534 = vmatmul.mubr.msk.bf16.gmra.mxu1 %vm227_vm0, %v4690_v24 }
  0x4c   :  { %3797 = vmatprep.mubr.msk.bf16.mxu0 %vm227_vm0, %v4638_v10  ;;  %3829 = vmatprep.mubr.msk.bf16.mxu1 %vm4525_vm1, %v6574_v25 }
  0x4d   :  { %3828 = vmatpush3.bf16.xpose.msra.mxu1 %v229_v37 }
  0x53   :  { %3798 = vmatmul.mubr.msk.bf16.vlgmr.msra.gmra.mxu0 %vm227_vm0, %v4664_v17 }
  0x54   :  { %3801 = vmatprep.mubr.msk.bf16.mxu0 %vm227_vm0, %v4164_v23  ;;  %3830 = vmatmul.mubr.msk.bf16.vlgmr.msra.gmra.mxu1 %vm227_vm0, %v90_v38 }
  0x5b   :  { %3802 = vmatmul.mubr.msk.bf16.gmra.mxu0 %vm227_vm0, %v4166_v27 }
  0x5c   :  { %3805 = vmatprep.mubr.msk.bf16.mxu0 %vm227_vm0, %v4167_v30 }
  0x63   :  { %3806 = vmatmul.mubr.msk.bf16.gmra.mxu0 %vm227_vm0, %v4169_v31 }
  0x64   :  { %3809 = vmatprep.mubr.msk.bf16.mxu0 %vm227_vm0, %v4170_v28 }
  0x6b   :  { %3810 = vmatmul.mubr.msk.bf16.gmra.mxu0 %vm227_vm0, %v4690_v24 }
  0xd3   :  { %v286_v39 = vpop.f32.mrf.mxu0  ;;  %v399_v53 = vpop.f32.mrf.mxu1 }
  0xd5   :  { %v288_v40 = vpop.f32.mrf.mxu0  ;;  %v401_v55 = vpop.f32.mrf.mxu1 }
  0xd7   :  { %v290_v41 = vpop.f32.mrf.mxu0  ;;  %v403_v57 = vpop.f32.mrf.mxu1 }
  0xd8   :  { %v4770_v42 = vpack.c.bf16 %v290_v41, %v286_v39  ;;  %v4786_v58 = vpack.c.bf16 %v403_v57, %v399_v53 }
  0xd9   :  { %v292_v43 = vpop.f32.mrf.mxu0  ;;  %v405_v60 = vpop.f32.mrf.mxu1 }
  0xda   :  { %v4772_v44 = vpack.c.bf16 %v292_v43, %v288_v40  ;;  %6617 = vst [vmem:[#allocation3_spill] sm:$0xff] %v4786_v58  ;;  %v4790_v61 = vpack.c.bf16 %v405_v60, %v401_v55 }
  0xdb   :  { %v296_v45 = vpop.f32.mrf.mxu0  ;;  %v409_v63 = vpop.f32.mrf.mxu1 }
  0xdc   :  { %6618 = vst [vmem:[#allocation4_spill] sm:$0xff] %v4790_v61 }
  0xdd   :  { %v298_v46 = vpop.f32.mrf.mxu0  ;;  %v411_v2 = vpop.f32.mrf.mxu1 }
  0xdf   :  { %v300_v47 = vpop.f32.mrf.mxu0  ;;  %v413_v4 = vpop.f32.mrf.mxu1 }
  0xe0   :  { %v4774_v48 = vpack.c.bf16 %v300_v47, %v296_v45  ;;  %v4798_v5 = vpack.c.bf16 %v413_v4, %v409_v63 }
  0xe1   :  { %v302_v49 = vpop.f32.mrf.mxu0  ;;  %v415_v7 = vpop.f32.mrf.mxu1 }
  0xe2   :  { %v4776_v50 = vpack.c.bf16 %v302_v49, %v298_v46  ;;  %6619 = vst [vmem:[#allocation5_spill] sm:$0xff] %v4798_v5  ;;  %v4802_v8 = vpack.c.bf16 %v415_v7, %v411_v2 }
  0xe3   :  { %v4778_v51 = vpop.f32.mrf.mxu0  ;;  %v419_v10 = vpop.f32.mrf.mxu1 }
  0xe4   :  { %6620 = vst [vmem:[#allocation6_spill] sm:$0xff] %v4802_v8 }
  0xe5   :  { %v4780_v52 = vpop.f32.mrf.mxu0  ;;  %v421_v12 = vpop.f32.mrf.mxu1 }
  0xe7   :  { %v4782_v54 = vpop.f32.mrf.mxu0  ;;  %v423_v14 = vpop.f32.mrf.mxu1 }
  0xe8   :  { %v4808_v15 = vpack.c.bf16 %v423_v14, %v419_v10 }
  0xe9   :  { %v4784_v56 = vpop.f32.mrf.mxu0  ;;  %v425_v17 = vpop.f32.mrf.mxu1 }
  0xea   :  { %6621 = vst [vmem:[#allocation7_spill] sm:$0xff] %v4808_v15  ;;  %v4810_v18 = vpack.c.bf16 %v425_v17, %v421_v12  ;;  %v4526_v17 = vmov 1  }
  0xeb   :  { %v4788_v59 = vpop.f32.mrf.mxu0  ;;  %v429_v20 = vpop.f32.mrf.mxu1 }
  0xec   :  { %6622 = vst [vmem:[#allocation8_spill] sm:$0xff] %v4810_v18 }
  0xed   :  { %v4792_v62 = vpop.f32.mrf.mxu0  ;;  %v431_v22 = vpop.f32.mrf.mxu1 }
  0xef   :  { %v4794_v0 = vpop.f32.mrf.mxu0  ;;  %v433_v24 = vpop.f32.mrf.mxu1 }
  0xf0   :  { %v4812_v26 = vpack.c.bf16 %v433_v24, %v429_v20 }
  0xf1   :  { %v4796_v3 = vpop.f32.mrf.mxu0  ;;  %v435_v28 = vpop.f32.mrf.mxu1 }
  0xf2   :  { %6623 = vst [vmem:[#allocation9_spill] sm:$0xff] %v4812_v26  ;;  %v4814_v29 = vpack.c.bf16 %v435_v28, %v431_v22 }
  0xf3   :  { %v4800_v6 = vpop.f32.mrf.mxu0  ;;  %v439_v31 = vpop.f32.mrf.mxu1 }
  0xf4   :  { %6624 = vst [vmem:[#allocation10_spill] sm:$0xff] %v4814_v29 }
  0xf5   :  { %v4804_v9 = vpop.f32.mrf.mxu0  ;;  %v441_v33 = vpop.f32.mrf.mxu1 }
  0xf7   :  { %v330_v11 = vpop.f32.mrf.mxu0  ;;  %v443_v35 = vpop.f32.mrf.mxu1 }
  0xf8   :  { %v4816_v36 = vpack.c.bf16 %v443_v35, %v439_v31  ;;  %v646_v24 = vpack.c.bf16 %v330_v11, %v4800_v6  ;;  %v645_v6 = vpack.c.bf16 %v4794_v0, %v4788_v59  ;;  %v1098_v31 = vpack.c.bf16 %v4796_v3, %v4792_v62 }
  0xf9   :  { %v4806_v13 = vpop.f32.mrf.mxu0  ;;  %v445_v38 = vpop.f32.mrf.mxu1  ;;  %v1097_v0 = vpack.c.bf16 %v4784_v56, %v4780_v52 }
  0xfa   :  { %6625 = vst [vmem:[#allocation11_spill] sm:$0xff] %v4816_v36  ;;  %v4818_v39 = vpack.c.bf16 %v445_v38, %v441_v33  ;;  %v1099_v28 = vpack.c.bf16 %v4806_v13, %v4804_v9  ;;  %v644_v13 = vpack.c.bf16 %v4782_v54, %v4778_v51 }
  0xfb   :  { %v336_v16 = vpop.f32.mrf.mxu0  ;;  %v449_v41 = vpop.f32.mrf.mxu1 }
  0xfc   :  { %6626 = vst [vmem:[#allocation12_spill] sm:$0xff] %v4818_v39 }
  0xfd   :  { %v338_v19 = vpop.f32.mrf.mxu0  ;;  %v451_v45 = vpop.f32.mrf.mxu1 }
  0xff   :  { %v340_v21 = vpop.f32.mrf.mxu0  ;;  %v453_v49 = vpop.f32.mrf.mxu1 }
 0x100   :  { %v4820_v57 = vpack.c.bf16 %v453_v49, %v449_v41  ;;  %v647_v12 = vpack.c.bf16 %v340_v21, %v336_v16 }
 0x101   :  { %v342_v23 = vpop.f32.mrf.mxu0  ;;  %v455_v63 = vpop.f32.mrf.mxu1 }
 0x102   :  { %6627 = vst [vmem:[#allocation13_spill] sm:$0xff] %v4820_v57  ;;  %v4822_v2 = vpack.c.bf16 %v455_v63, %v451_v45  ;;  %v1100_v20 = vpack.c.bf16 %v342_v23, %v338_v19  ;;  %v4527_v19 = vmov 2  }
 0x103   :  { %v346_v27 = vpop.f32.mrf.mxu0  ;;  %v459_v10 = vpop.f32.mrf.mxu1 }
 0x104   :  { %6628 = vst [vmem:[#allocation14_spill] sm:$0xff] %v4822_v2 }
 0x105   :  { %v348_v30 = vpop.f32.mrf.mxu0  ;;  %v461_v14 = vpop.f32.mrf.mxu1 }
 0x107   :  { %v350_v32 = vpop.f32.mrf.mxu0  ;;  %v463_v22 = vpop.f32.mrf.mxu1 }
 0x108   :  { %v648_v53 = vpack.c.bf16 %v350_v32, %v346_v27  ;;  %v4827_v27 = vpack.c.bf16 %v463_v22, %v459_v10 }
 0x109   :  { %v352_v34 = vpop.f32.mrf.mxu0  ;;  %v465_v16 = vpop.f32.mrf.mxu1 }
 0x10a   :  { %v1101_v4 = vpack.c.bf16 %v352_v34, %v348_v30  ;;  %v4829_v21 = vpack.c.bf16 %v465_v16, %v461_v14  ;;  %v4528_v30 = vmov 3  }
 0x10b   :  { %v356_v37 = vpop.f32.mrf.mxu0  ;;  %v469_v23 = vpop.f32.mrf.mxu1 }
 0x10c   :  { %6629 = vst [vmem:[#allocation15_spill] sm:$0xff] %v4829_v21 }
 0x10d   :  { %v358_v40 = vpop.f32.mrf.mxu0  ;;  %v471_v11 = vpop.f32.mrf.mxu1 }
 0x10f   :  { %v360_v43 = vpop.f32.mrf.mxu0  ;;  %v473_v9 = vpop.f32.mrf.mxu1 }
 0x110   :  { %v649_v46 = vpack.c.bf16 %v360_v43, %v356_v37  ;;  %v4854_v56 = vpack.c.bf16 %v473_v9, %v469_v23 }
 0x111   :  { %v362_v47 = vpop.f32.mrf.mxu0  ;;  %v475_v59 = vpop.f32.mrf.mxu1 }
 0x112   :  { %v1102_v55 = vpack.c.bf16 %v362_v47, %v358_v40  ;;  %3833 = vmatprep.subr.bf16.mxu0 %v649_v46  ;;  %v4859_v33 = vpack.c.bf16 %v475_v59, %v471_v11  ;;  %v730_v47 = vlaneseq }
 0x113   :  { %v3799_v60 = vpop.f32.mrf.mxu0  ;;  %3834 = vmatpush3.bf16.msra.mxu0 %v649_v46 }
 0x114   :  { %3835 = vmatprep.subr.bf16.mxu0 %v648_v53  ;;  %662 = vperm.xlu1 %4083, %v3799_v60   ;;  %v4845_v62 = vpop.f32.mrf.mxu1  ;;  %6630 = vst [vmem:[#allocation16_spill] sm:$0xff] %v4859_v33 }
 0x115   :  { %3865 = vmatprep.subr.bf16.mxu1 %v1102_v55  ;;  %v536_v7 = vpop.f32.mrf.mxu0 }
 0x116   :  { %3866 = vmatpush3.bf16.msra.mxu1 %v1102_v55  ;;  %652 = vperm.xlu0 %4087, %v536_v7   ;;  %v3831_v51 = vpop.f32.mrf.mxu1 }
 0x117   :  { %3867 = vmatprep.subr.bf16.mxu1 %v1101_v4  ;;  %3836 = vmatpush3.bf16.msra.mxu0 %v648_v53  ;;  %v3800_v32 = vpop.f32.mrf.mxu0  ;;  %v4919_v53 = vshrl.u32 %v730_v47, 7 }
 0x118   :  { %3837 = vmatprep.subr.bf16.mxu0 %v647_v12  ;;  %4084 = vset.pattern.permute.xlu1 %v4526_v17  ;;  %v639_v54 = vpop.f32.mrf.mxu1 }
 0x119   :  { %1112 = vperm.xlu1 %4084, %v3799_v60   ;;  %v539_v3 = vpop.f32.mrf.mxu0  ;;  %6631 = vst [vmem:[#allocation17_spill] sm:$0xff] %v4919_v53  ;;  %v6573_v55 = vsub.s32 0, %v4919_v53  ;;  %v1606_v14 = vsub.s32 2, %v4919_v53  ;;  %v2043_v11 = vsub.s32 3, %v4919_v53 }
 0x11a   :  { %3868 = vmatpush3.bf16.msra.mxu1 %v1101_v4  ;;  %4088 = vset.pattern.permute.xlu0 %v4526_v17  ;;  %v3832_v52 = vpop.f32.mrf.mxu1 }
 0x11b   :  { %3869 = vmatprep.subr.bf16.mxu1 %v1100_v20  ;;  %3838 = vmatpush3.bf16.msra.mxu0 %v647_v12  ;;  %v4929_v4 = vrot.slane %v4845_v62, %v6573_v55  ;;  %v4939_v16 = vrot.slane %v4845_v62, %v1606_v14  ;;  %v4956_v51 = vrot.slane %v4845_v62, %v2043_v11 }
 0x11c   :  { %1104 = vperm.xlu0 %4088, %v536_v7   ;;  %3839 = vmatprep.subr.bf16.mxu0 %v646_v24 }
 0x11d   :  { %4085 = vset.pattern.permute.xlu1 %v4527_v19 }
 0x11e   :  { %3870 = vmatpush3.bf16.msra.mxu1 %v1100_v20  ;;  %1549 = vperm.xlu1 %4085, %v3799_v60  }
 0x11f   :  { %3871 = vmatprep.subr.bf16.mxu1 %v1099_v28  ;;  %3840 = vmatpush3.bf16.msra.mxu0 %v646_v24 }
 0x120   :  { %4090 = vset.pattern.permute.xlu0 %v4528_v30  ;;  %3841 = vmatprep.subr.bf16.mxu0 %v645_v6 }
 0x121   :  { %1978 = vperm.xlu0 %4090, %v536_v7  }
 0x122   :  { %3872 = vmatpush3.bf16.msra.mxu1 %v1099_v28  ;;  %4086 = vset.pattern.permute.xlu1 %v4528_v30 }
 0x123   :  { %3873 = vmatprep.subr.bf16.mxu1 %v1098_v31  ;;  %3842 = vmatpush3.bf16.msra.mxu0 %v645_v6  ;;  %v4946_v6 = vld [vmem:[%s6562_s4 + $0x8] sm:$0xff]  }
 0x124   :  { %1986 = vperm.xlu1 %4086, %v3799_v60   ;;  %3843 = vmatprep.subr.bf16.mxu0 %v644_v13  ;;  %v3575_v9 = vunpack.c.l.bf16 %v4946_v6 }
 0x125   :  { %4092 = vset.pattern.permute.xlu0 %v4526_v17 }
 0x126   :  { %1116 = vperm.xlu0 %4092, %v3800_v32   ;;  %3874 = vmatpush3.bf16.msra.mxu1 %v1098_v31 }
 0x127   :  { %3875 = vmatprep.subr.bf16.mxu1 %v1097_v0  ;;  %3844 = vmatpush3.bf16.msra.mxu0 %v644_v13 }
 0x128   :  { %4089 = vset.pattern.permute.xlu1 %v4527_v19  ;;  %3845 = vmatprep.subr.bf16.mxu0 %v4774_v48 }
 0x129   :  { %1541 = vperm.xlu1 %4089, %v536_v7   ;;  %v1169_v7 = vsub.s32 1, %v4919_v53 }
 0x12a   :  { %4094 = vset.pattern.permute.xlu0 %v4528_v30  ;;  %3876 = vmatpush3.bf16.msra.mxu1 %v1097_v0 }
 0x12b   :  { %1990 = vperm.xlu0 %4094, %v3800_v32   ;;  %3877 = vmatprep.subr.bf16.mxu1 %v4776_v50  ;;  %v4934_v12 = vrot.slane %v4845_v62, %v1169_v7  ;;  %v3570_v7 = vld [vmem:[%s6562_s4] sm:$0xff]  }
 0x12c   :  { %3846 = vmatpush3.bf16.msra.mxu0 %v4774_v48  ;;  %v3803_v48 = vpop.f32.mrf.mxu0 }
 0x12d   :  { %3847 = vmatprep.subr.bf16.mxu0 %v4770_v42  ;;  %4091 = vset.pattern.permute.xlu1 %v4523_v1 }
 0x12e   :  { %667 = vperm.xlu1 %4091, %v3800_v32   ;;  %3878 = vmatpush3.bf16.msra.mxu1 %v4776_v50  ;;  %v552_v50 = vpop.f32.mrf.mxu0 }
 0x12f   :  { %4095 = vset.pattern.permute.xlu0 %v4523_v1  ;;  %3879 = vmatprep.subr.bf16.mxu1 %v4772_v44 }
 0x130   :  { %3848 = vmatpush3.bf16.msra.mxu0 %v4770_v42  ;;  %657 = vperm.xlu0 %4095, %v539_v3   ;;  %v3804_v42 = vpop.f32.mrf.mxu0 }
 0x131   :  { %3897 = vmatprep.subr.bf16.mxu0 %v4854_v56 }
 0x132   :  { %4093 = vset.pattern.permute.xlu1 %v4527_v19  ;;  %3880 = vmatpush3.bf16.msra.mxu1 %v4772_v44  ;;  %v555_v44 = vpop.f32.mrf.mxu0 }
 0x133   :  { %1553 = vperm.xlu1 %4093, %v3800_v32   ;;  %3929 = vmatprep.subr.bf16.mxu1 %v4859_v33 }
 0x134   :  { %4097 = vset.pattern.permute.xlu0 %v4527_v19  ;;  %v3807_v34 = vpop.f32.mrf.mxu0 }
 0x135   :  { %1545 = vperm.xlu0 %4097, %v539_v3  }
 0x136   :  { %v568_v35 = vpop.f32.mrf.mxu0 }
 0x137   :  { %4096 = vset.pattern.permute.xlu1 %v4526_v17 }
 0x138   :  { %1108 = vperm.xlu1 %4096, %v539_v3   ;;  %v3808_v37 = vpop.f32.mrf.mxu0 }
 0x139   :  { %4104 = vset.pattern.permute.xlu0 %v4526_v17 }
 0x13a   :  { %1120 = vperm.xlu0 %4104, %v552_v50   ;;  %v571_v38 = vpop.f32.mrf.mxu0 }
 0x13c   :  { %4098 = vset.pattern.permute.xlu1 %v4528_v30  ;;  %v4890_v40 = vpop.f32.mrf.mxu0 }
 0x13d   :  { %1982 = vperm.xlu1 %4098, %v539_v3  }
 0x13e   :  { %4106 = vset.pattern.permute.xlu0 %v4528_v30  ;;  %v4894_v41 = vpop.f32.mrf.mxu0 }
 0x13f   :  { %1994 = vperm.xlu0 %4106, %v552_v50  }
 0x140   :  { %v4902_v43 = vpop.f32.mrf.mxu0 }
 0x141   :  { %4099 = vset.pattern.permute.xlu1 %v4523_v1 }
 0x142   :  { %682 = vperm.xlu1 %4099, %v3803_v48   ;;  %v4910_v45 = vpop.f32.mrf.mxu0 }
 0x143   :  { %4108 = vset.pattern.permute.xlu0 %v4526_v17 }
 0x144   :  { %1132 = vperm.xlu0 %4108, %v3804_v42  }
 0x146   :  { %4100 = vset.pattern.permute.xlu1 %v4526_v17 }
 0x147   :  { %1128 = vperm.xlu1 %4100, %v3803_v48  }
 0x148   :  { %4110 = vset.pattern.permute.xlu0 %v4528_v30 }
 0x149   :  { %2006 = vperm.xlu0 %4110, %v3804_v42  }
 0x14b   :  { %4101 = vset.pattern.permute.xlu1 %v4527_v19 }
 0x14c   :  { %1565 = vperm.xlu1 %4101, %v3803_v48  }
 0x14d   :  { %4111 = vset.pattern.permute.xlu0 %v4523_v1 }
 0x14e   :  { %677 = vperm.xlu0 %4111, %v555_v44  }
 0x150   :  { %4102 = vset.pattern.permute.xlu1 %v4528_v30 }
 0x151   :  { %2002 = vperm.xlu1 %4102, %v3803_v48  }
 0x152   :  { %4113 = vset.pattern.permute.xlu0 %v4527_v19 }
 0x153   :  { %1561 = vperm.xlu0 %4113, %v555_v44  }
 0x155   :  { %4103 = vset.pattern.permute.xlu1 %v4523_v1 }
 0x156   :  { %672 = vperm.xlu1 %4103, %v552_v50  }
 0x157   :  { %4120 = vset.pattern.permute.xlu0 %v4526_v17 }
 0x158   :  { %1136 = vperm.xlu0 %4120, %v568_v35  }
 0x15a   :  { %4105 = vset.pattern.permute.xlu1 %v4527_v19 }
 0x15b   :  { %1557 = vperm.xlu1 %4105, %v552_v50  }
 0x15c   :  { %4122 = vset.pattern.permute.xlu0 %v4528_v30 }
 0x15d   :  { %2010 = vperm.xlu0 %4122, %v568_v35  }
 0x15f   :  { %4107 = vset.pattern.permute.xlu1 %v4523_v1 }
 0x160   :  { %687 = vperm.xlu1 %4107, %v3804_v42  }
 0x161   :  { %4124 = vset.pattern.permute.xlu0 %v4526_v17 }
 0x162   :  { %1148 = vperm.xlu0 %4124, %v3808_v37  }
 0x164   :  { %4109 = vset.pattern.permute.xlu1 %v4527_v19 }
 0x165   :  { %1569 = vperm.xlu1 %4109, %v3804_v42  }
 0x166   :  { %4126 = vset.pattern.permute.xlu0 %v4528_v30 }
 0x167   :  { %2022 = vperm.xlu0 %4126, %v3808_v37  }
 0x169   :  { %4112 = vset.pattern.permute.xlu1 %v4526_v17 }
 0x16a   :  { %1124 = vperm.xlu1 %4112, %v555_v44  }
 0x16b   :  { %4127 = vset.pattern.permute.xlu0 %v4523_v1 }
 0x16c   :  { %697 = vperm.xlu0 %4127, %v571_v38  }
 0x16e   :  { %4114 = vset.pattern.permute.xlu1 %v4528_v30 }
 0x16f   :  { %1998 = vperm.xlu1 %4114, %v555_v44  }
 0x170   :  { %4129 = vset.pattern.permute.xlu0 %v4527_v19 }
 0x171   :  { %1577 = vperm.xlu0 %4129, %v571_v38  }
 0x173   :  { %4115 = vset.pattern.permute.xlu1 %v4523_v1 }
 0x174   :  { %702 = vperm.xlu1 %4115, %v3807_v34  }
 0x175   :  { %4136 = vset.pattern.permute.xlu0 %v4526_v17 }
 0x176   :  { %1152 = vperm.xlu0 %4136, %v4894_v41  }
 0x178   :  { %4116 = vset.pattern.permute.xlu1 %v4526_v17 }
 0x179   :  { %1144 = vperm.xlu1 %4116, %v3807_v34  }
 0x17a   :  { %4138 = vset.pattern.permute.xlu0 %v4528_v30 }
 0x17b   :  { %2026 = vperm.xlu0 %4138, %v4894_v41  }
 0x17d   :  { %4117 = vset.pattern.permute.xlu1 %v4527_v19 }
 0x17e   :  { %1581 = vperm.xlu1 %4117, %v3807_v34  }
 0x17f   :  { %4140 = vset.pattern.permute.xlu0 %v4526_v17 }
 0x180   :  { %1164 = vperm.xlu0 %4140, %v4902_v43  }
 0x182   :  { %4118 = vset.pattern.permute.xlu1 %v4528_v30 }
 0x183   :  { %2018 = vperm.xlu1 %4118, %v3807_v34  }
 0x184   :  { %4142 = vset.pattern.permute.xlu0 %v4528_v30 }
 0x185   :  { %2038 = vperm.xlu0 %4142, %v4902_v43  }
 0x187   :  { %4119 = vset.pattern.permute.xlu1 %v4523_v1 }
 0x188   :  { %692 = vperm.xlu1 %4119, %v568_v35  }
 0x189   :  { %4143 = vset.pattern.permute.xlu0 %v4523_v1 }
 0x18a   :  { %717 = vperm.xlu0 %4143, %v4910_v45  }
 0x18c   :  { %4121 = vset.pattern.permute.xlu1 %v4527_v19 }
 0x18d   :  { %1573 = vperm.xlu1 %4121, %v568_v35  }
 0x18e   :  { %4145 = vset.pattern.permute.xlu0 %v4527_v19 }
 0x18f   :  { %1593 = vperm.xlu0 %4145, %v4910_v45   ;;  %v663_v46 = vpop.permute.xlu1 %662 }
 0x190   :  { %v736_v20 = vadd.f32 %v4929_v4, %v663_v46 }
 0x191   :  { %4123 = vset.pattern.permute.xlu1 %v4523_v1  ;;  %v4924_v63 = vpop.permute.xlu0 %652 }
 0x192   :  { %707 = vperm.xlu1 %4123, %v3808_v37   ;;  %v768_v28 = vmul.f32 0.2, %v736_v20  ;;  %vm752_vm2 = vcmp.gt.f32.partialorder %v736_v20, 0.0 }
 0x193   :  { %4147 = vset.pattern.permute.xlu0 %v4523_v1 }
 0x194   :  { %v1113_v49 = vpop.permute.xlu1 %1112  ;;  %v784_v32 = vsel %vm752_vm2, %v736_v20, %v768_v28 }
 0x195   :  { %v1173_v23 = vadd.f32 %v4934_v12, %v1113_v49  ;;  %v4959_v54 = vadd.f32 %v3575_v9, %v784_v32 }
 0x196   :  { %4125 = vset.pattern.permute.xlu1 %v4527_v19 }
 0x197   :  { %1585 = vperm.xlu1 %4125, %v3808_v37   ;;  %v1105_v22 = vpop.permute.xlu0 %1104  ;;  %v1205_v13 = vmul.f32 0.2, %v1173_v23  ;;  %vm1189_vm3 = vcmp.gt.f32.partialorder %v1173_v23, 0.0 }
 0x198   :  { %v1171_v44 = vadd.f32 %v4934_v12, %v1105_v22 }
 0x199   :  { %v1550_v60 = vpop.permute.xlu1 %1549  ;;  %v1221_v48 = vsel %vm1189_vm3, %v1173_v23, %v1205_v13 }
 0x19a   :  { %v1610_v59 = vadd.f32 %v4939_v16, %v1550_v60  ;;  %v4969_v62 = vadd.f32 %v3575_v9, %v1221_v48  ;;  %v1203_v47 = vmul.f32 0.2, %v1171_v44  ;;  %vm1187_vm6 = vcmp.gt.f32.partialorder %v1171_v44, 0.0 }
 0x19b   :  { %4128 = vset.pattern.permute.xlu1 %v4526_v17 }
 0x19c   :  { %1140 = vperm.xlu1 %4128, %v571_v38   ;;  %v1979_v31 = vpop.permute.xlu0 %1978  ;;  %v1642_v52 = vmul.f32 0.2, %v1610_v59  ;;  %vm1626_vm4 = vcmp.gt.f32.partialorder %v1610_v59, 0.0 }
 0x19d   :  { %v2045_v20 = vadd.f32 %v4956_v51, %v1979_v31 }
 0x19e   :  { %v1658_v35 = vsel %vm1626_vm4, %v1610_v59, %v1642_v52 }
 0x19f   :  { %v1987_v10 = vpop.permute.xlu1 %1986  ;;  %v4978_v46 = vadd.f32 %v3575_v9, %v1658_v35  ;;  %v2077_v11 = vmul.f32 0.2, %v2045_v20  ;;  %vm2061_vm8 = vcmp.gt.f32.partialorder %v2045_v20, 0.0 }
 0x1a0   :  { %4130 = vset.pattern.permute.xlu1 %v4528_v30  ;;  %v2047_v3 = vadd.f32 %v4956_v51, %v1987_v10 }
 0x1a1   :  { %2014 = vperm.xlu1 %4130, %v571_v38   ;;  %v4962_v50 = vpop.permute.xlu0 %1116 }
 0x1a2   :  { %v2079_v34 = vmul.f32 0.2, %v2047_v3  ;;  %vm2063_vm5 = vcmp.gt.f32.partialorder %v2047_v3, 0.0  ;;  %v1174_v53 = vadd.f32 %v4934_v12, %v4962_v50 }
 0x1a4   :  { %v1542_v24 = vpop.permute.xlu1 %1541  ;;  %v2095_v60 = vsel %vm2063_vm5, %v2047_v3, %v2079_v34  ;;  %v2093_v3 = vsel %vm2061_vm8, %v2045_v20, %v2077_v11  ;;  %v5013_v34 = vunpack.c.h.bf16 %v3570_v7 }
 0x1a5   :  { %4131 = vset.pattern.permute.xlu1 %v4523_v1  ;;  %v1608_v49 = vadd.f32 %v4939_v16, %v1542_v24  ;;  %v4988_v14 = vadd.f32 %v3575_v9, %v2095_v60  ;;  %v1219_v24 = vsel %vm1187_vm6, %v1171_v44, %v1203_v47 }
 0x1a6   :  { %722 = vperm.xlu1 %4131, %v4890_v40   ;;  %v4975_v38 = vpop.permute.xlu0 %1990 }
 0x1a7   :  { %v1640_v22 = vmul.f32 0.2, %v1608_v49  ;;  %vm1624_vm7 = vcmp.gt.f32.partialorder %v1608_v49, 0.0 }
 0x1a9   :  { %v4952_v0 = vpop.permute.xlu1 %667  ;;  %v1656_v31 = vsel %vm1624_vm7, %v1608_v49, %v1640_v22  ;;  %v5019_v49 = vld [vmem:[%s6562_s4 + $0x18] sm:$0xff]   ;;  %vm1190_vm7 = vcmp.gt.f32.partialorder %v1174_v53, 0.0 }
 0x1aa   :  { %4132 = vset.pattern.permute.xlu1 %v4526_v17 }
 0x1ab   :  { %1160 = vperm.xlu1 %4132, %v4890_v40   ;;  %v658_v28 = vpop.permute.xlu0 %657 }
 0x1ac   :  { %v735_v9 = vadd.f32 %v4929_v4, %v658_v28 }
 0x1ae   :  { %v4964_v42 = vpop.permute.xlu1 %1553  ;;  %834 = vmax.xlane.f32.xlu0 %v4959_v54  ;;  %v767_v32 = vmul.f32 0.2, %v735_v9  ;;  %vm751_vm9 = vcmp.gt.f32.partialorder %v735_v9, 0.0 }
 0x1af   :  { %4133 = vset.pattern.permute.xlu1 %v4527_v19  ;;  %v1611_v50 = vadd.f32 %v4939_v16, %v4964_v42  ;;  %v2048_v42 = vadd.f32 %v4956_v51, %v4975_v38 }
 0x1b0   :  { %1597 = vperm.xlu1 %4133, %v4890_v40   ;;  %v783_v47 = vsel %vm751_vm9, %v735_v9, %v767_v32  ;;  %v5032_v11 = vpop.permute.xlu0 %1545 }
 0x1b1   :  { %v5024_v20 = vadd.f32 %v5013_v34, %v783_v47  ;;  %vm1627_vm8 = vcmp.gt.f32.partialorder %v1611_v50, 0.0  ;;  %vm2064_vm9 = vcmp.gt.f32.partialorder %v2048_v42, 0.0 }
 0x1b2   :  { %1255 = vmax.xlane.f32.xlu0 %v4969_v62 }
 0x1b3   :  { %v4973_v37 = vpop.permute.xlu1 %1108 }
 0x1b4   :  { %4134 = vset.pattern.permute.xlu1 %v4528_v30 }
 0x1b5   :  { %2034 = vperm.xlu1 %4134, %v4890_v40   ;;  %v4994_v40 = vunpack.c.l.bf16 %v3570_v7  ;;  %v5027_v7 = vunpack.c.l.bf16 %v5019_v49 }
 0x1b6   :  { %1692 = vmax.xlane.f32.xlu0 %v4978_v46 }
 0x1b7   :  { %v4997_v23 = vadd.f32 %v4994_v40, %v1219_v24  ;;  %v5004_v59 = vadd.f32 %v4994_v40, %v1656_v31  ;;  %v5011_v44 = vadd.f32 %v4994_v40, %v2093_v3 }
 0x1b8   :  { %v4986_v10 = vpop.permute.xlu1 %1982 }
 0x1b9   :  { %4135 = vset.pattern.permute.xlu1 %v4523_v1 }
 0x1ba   :  { %712 = vperm.xlu1 %4135, %v4894_v41   ;;  %2129 = vmax.xlane.f32.xlu0 %v4988_v14 }
 0x1bd   :  { %v683_v13 = vpop.permute.xlu1 %682 }
 0x1be   :  { %4137 = vset.pattern.permute.xlu1 %v4527_v19  ;;  %1251 = vmax.xlane.f32.xlu0 %v4997_v23  ;;  %v740_v52 = vadd.f32 %v4929_v4, %v683_v13 }
 0x1bf   :  { %1589 = vperm.xlu1 %4137, %v4894_v41  }
 0x1c0   :  { %v772_v41 = vmul.f32 0.2, %v740_v52  ;;  %vm756_vm10 = vcmp.gt.f32.partialorder %v740_v52, 0.0 }
 0x1c2   :  { %v1129_v48 = vpop.permute.xlu1 %1128  ;;  %1688 = vmax.xlane.f32.xlu0 %v5004_v59  ;;  %v788_v28 = vsel %vm756_vm10, %v740_v52, %v772_v41 }
 0x1c3   :  { %4139 = vset.pattern.permute.xlu1 %v4523_v1  ;;  %v1177_v35 = vadd.f32 %v4934_v12, %v1129_v48 }
 0x1c4   :  { %727 = vperm.xlu1 %4139, %v4902_v43  }
 0x1c5   :  { %v1209_v22 = vmul.f32 0.2, %v1177_v35  ;;  %vm1193_vm11 = vcmp.gt.f32.partialorder %v1177_v35, 0.0 }
 0x1c6   :  { %2125 = vmax.xlane.f32.xlu0 %v5011_v44 }
 0x1c7   :  { %v1566_v60 = vpop.permute.xlu1 %1565  ;;  %v1225_v31 = vsel %vm1193_vm11, %v1177_v35, %v1209_v22 }
 0x1c8   :  { %4141 = vset.pattern.permute.xlu1 %v4527_v19  ;;  %v1614_v24 = vadd.f32 %v4939_v16, %v1566_v60  ;;  %v5037_v19 = vadd.f32 %v5027_v7, %v788_v28  ;;  %v5043_v32 = vadd.f32 %v5027_v7, %v1225_v31 }
 0x1c9   :  { %1601 = vperm.xlu1 %4141, %v4902_v43   ;;  %v1121_v43 = vpop.permute.xlu0 %1120 }
 0x1ca   :  { %832 = vmax.xlane.f32.xlu0 %v5024_v20  ;;  %v1646_v13 = vmul.f32 0.2, %v1614_v24  ;;  %vm1630_vm12 = vcmp.gt.f32.partialorder %v1614_v24, 0.0  ;;  %6632 = vst [vmem:[#allocation18_spill] sm:$0xff] %v5043_v32  ;;  %v1175_v52 = vadd.f32 %v4934_v12, %v1121_v43 }
 0x1cc   :  { %v5034_v9 = vpop.permute.xlu1 %2002  ;;  %v1662_v48 = vsel %vm1630_vm12, %v1614_v24, %v1646_v13  ;;  %v1207_v60 = vmul.f32 0.2, %v1175_v52  ;;  %vm1191_vm14 = vcmp.gt.f32.partialorder %v1175_v52, 0.0 }
 0x1cd   :  { %4144 = vset.pattern.permute.xlu1 %v4526_v17  ;;  %v5052_v17 = vld [vmem:[%s6562_s4 + $0x10] sm:$0xff]   ;;  %v5056_v47 = vadd.f32 %v5027_v7, %v1662_v48  ;;  %v1995_v24 = vpop.permute.xlu0 %1994 }
 0x1ce   :  { %1156 = vperm.xlu1 %4144, %v4910_v45   ;;  %842 = vmax.xlane.f32.xlu0 %v5037_v19  ;;  %v3579_v22 = vunpack.c.l.bf16 %v5052_v17 }
 0x1cf   :  { %6633 = vst [vmem:[#allocation19_spill] sm:$0xff] %v5056_v47 }
 0x1d1   :  { %v673_v3 = vpop.permute.xlu1 %672 }
 0x1d2   :  { %v738_v41 = vadd.f32 %v4929_v4, %v673_v3  ;;  %4146 = vset.pattern.permute.xlu1 %v4528_v30  ;;  %1263 = vmax.xlane.f32.xlu0 %v5043_v32  ;;  %v1223_v3 = vsel %vm1191_vm14, %v1175_v52, %v1207_v60 }
 0x1d3   :  { %2030 = vperm.xlu1 %4146, %v4910_v45   ;;  %v2049_v45 = vadd.f32 %v4956_v51, %v1995_v24  ;;  %v5068_v55 = vadd.f32 %v3579_v22, %v1223_v3  ;;  %v5080_v24 = vpop.permute.xlu0 %1132 }
 0x1d4   :  { %v770_v35 = vmul.f32 0.2, %v738_v41  ;;  %vm754_vm13 = vcmp.gt.f32.partialorder %v738_v41, 0.0 }
 0x1d5   :  { %6635 = vst [vmem:[#allocation21_spill] sm:$0xff] %v5068_v55  ;;  %v2081_v25 = vmul.f32 0.2, %v2049_v45  ;;  %vm2065_vm2 = vcmp.gt.f32.partialorder %v2049_v45, 0.0 }
 0x1d6   :  { %v1558_v28 = vpop.permute.xlu1 %1557  ;;  %1700 = vmax.xlane.f32.xlu0 %v5056_v47  ;;  %v786_v30 = vsel %vm754_vm13, %v738_v41, %v770_v35 }
 0x1d7   :  { %v1612_v13 = vadd.f32 %v4939_v16, %v1558_v28  ;;  %v5061_v31 = vadd.f32 %v3579_v22, %v786_v30  ;;  %4148 = vset.pattern.permute.xlu1 %v4523_v1  ;;  %v2097_v1 = vsel %vm2065_vm2, %v2049_v45, %v2081_v25  ;;  %v734_v30 = vadd.f32 %v4929_v4, %v4924_v63 }
 0x1d8   :  { %v5076_v52 = vadd.f32 %v3579_v22, %v2097_v1  ;;  %v737_v25 = vadd.f32 %v4929_v4, %v4952_v0 }
 0x1d9   :  { %6634 = vst [vmem:[#allocation20_spill] sm:$0xff] %v5061_v31  ;;  %v1644_v43 = vmul.f32 0.2, %v1612_v13  ;;  %vm1628_vm15 = vcmp.gt.f32.partialorder %v1612_v13, 0.0  ;;  %v766_v3 = vmul.f32 0.2, %v734_v30 }
 0x1da   :  { %838 = vmax.xlane.f32.xlu0 %v5061_v31  ;;  %6637 = vst [vmem:[#allocation23_spill] sm:$0xff] %v5076_v52  ;;  %vm750_vm3 = vcmp.gt.f32.partialorder %v734_v30, 0.0  ;;  %vm753_vm5 = vcmp.gt.f32.partialorder %v737_v25, 0.0 }
 0x1db   :  { %v5066_v48 = vpop.permute.xlu1 %687  ;;  %v1660_v41 = vsel %vm1628_vm15, %v1612_v13, %v1644_v43  ;;  %v5087_v43 = vpop.permute.xlu0 %2006  ;;  %v782_v63 = vsel %vm750_vm3, %v734_v30, %v766_v3  ;;  %v1206_v30 = vmul.f32 0.2, %v1174_v53 }
 0x1dc   :  { %v5073_v28 = vadd.f32 %v3579_v22, %v1660_v41  ;;  %v5095_v41 = vld [vmem:[%s6562_s4 + $0x28] sm:$0xff]   ;;  %v5109_v39 = vadd.f32 %v4994_v40, %v782_v63 }
 0x1dd   :  { %v5098_v1 = vunpack.c.l.bf16 %v5095_v41 }
 0x1de   :  { %1259 = vmax.xlane.f32.xlu0 %v5068_v55  ;;  %6636 = vst [vmem:[#allocation22_spill] sm:$0xff] %v5073_v28 }
 0x1df   :  { %v5102_v61 = vpop.permute.xlu0 %677 }
 0x1e0   :  { %v5071_v35 = vpop.permute.xlu1 %1569 }
 0x1e2   :  { %1696 = vmax.xlane.f32.xlu0 %v5073_v28 }
 0x1e5   :  { %v5078_v60 = vpop.permute.xlu1 %1124 }
 0x1e6   :  { %2133 = vmax.xlane.f32.xlu0 %v5076_v52  ;;  %v769_v52 = vmul.f32 0.2, %v737_v25 }
 0x1e8   :  { %v785_v3 = vsel %vm753_vm5, %v737_v25, %v769_v52  ;;  %v1643_v52 = vmul.f32 0.2, %v1611_v50 }
 0x1ea   :  { %v5085_v13 = vpop.permute.xlu1 %1998  ;;  %v1659_v38 = vsel %vm1627_vm8, %v1611_v50, %v1643_v52  ;;  %v5148_v52 = vld [vmem:[%s6562_s4 + $0x20] sm:$0xff]  }
 0x1eb   :  { %v2050_v36 = vadd.f32 %v4956_v51, %v5085_v13 }
 0x1ed   :  { %vm2066_vm8 = vcmp.gt.f32.partialorder %v2050_v36, 0.0 }
 0x1ef   :  { %v703_v22 = vpop.permute.xlu1 %702 }
 0x1f0   :  { %v744_v45 = vadd.f32 %v4929_v4, %v703_v22 }
 0x1f2   :  { %v776_v0 = vmul.f32 0.2, %v744_v45  ;;  %vm760_vm4 = vcmp.gt.f32.partialorder %v744_v45, 0.0 }
 0x1f4   :  { %v1145_v8 = vpop.permute.xlu1 %1144  ;;  %v792_v22 = vsel %vm760_vm4, %v744_v45, %v776_v0  ;;  %v3576_v45 = vunpack.c.h.bf16 %v4946_v6 }
 0x1f5   :  { %v1181_v18 = vadd.f32 %v4934_v12, %v1145_v8  ;;  %v5106_v29 = vadd.f32 %v5098_v1, %v792_v22  ;;  %v5116_v8 = vpop.permute.xlu0 %1561  ;;  %v1222_v22 = vsel %vm1190_vm7, %v1174_v53, %v1206_v30  ;;  %v1609_v53 = vadd.f32 %v4939_v16, %v5032_v11 }
 0x1f6   :  { %v5120_v40 = vadd.f32 %v3576_v45, %v785_v3  ;;  %v5131_v3 = vadd.f32 %v3576_v45, %v1222_v22 }
 0x1f7   :  { %6638 = vst [vmem:[#allocation24_spill] sm:$0xff] %v5106_v29  ;;  %v1213_v58 = vmul.f32 0.2, %v1181_v18  ;;  %850 = vmax.xlane.f32.xlu0 %v5106_v29  ;;  %830 = vmax.xlane.f32.xlu1 %v5109_v39  ;;  %vm1197_vm6 = vcmp.gt.f32.partialorder %v1181_v18, 0.0  ;;  %v1172_v29 = vadd.f32 %v4934_v12, %v4973_v37  ;;  %v1641_v11 = vmul.f32 0.2, %v1609_v53 }
 0x1f8   :  { %vm1625_vm13 = vcmp.gt.f32.partialorder %v1609_v53, 0.0 }
 0x1f9   :  { %v5118_v0 = vpop.permute.xlu1 %1581  ;;  %v1229_v63 = vsel %vm1197_vm6, %v1181_v18, %v1213_v58  ;;  %v1137_v6 = vpop.permute.xlu0 %1136  ;;  %v2080_v58 = vmul.f32 0.2, %v2048_v42  ;;  %v1204_v30 = vmul.f32 0.2, %v1172_v29  ;;  %vm1188_vm10 = vcmp.gt.f32.partialorder %v1172_v29, 0.0 }
 0x1fa   :  { %v5125_v25 = vadd.f32 %v5098_v1, %v1229_v63  ;;  %v5138_v63 = vadd.f32 %v3576_v45, %v1659_v38  ;;  %v1657_v55 = vsel %vm1625_vm13, %v1609_v53, %v1641_v11 }
 0x1fb   :  { %836 = vmax.xlane.f32.xlu1 %v5120_v40  ;;  %v2096_v37 = vsel %vm2064_vm9, %v2048_v42, %v2080_v58  ;;  %v1220_v38 = vsel %vm1188_vm10, %v1172_v29, %v1204_v30  ;;  %v5156_v58 = vunpack.c.l.bf16 %v5148_v52 }
 0x1fc   :  { %6639 = vst [vmem:[#allocation25_spill] sm:$0xff] %v5125_v25  ;;  %1271 = vmax.xlane.f32.xlu0 %v5125_v25  ;;  %v1179_v25 = vadd.f32 %v4934_v12, %v1137_v6  ;;  %v5150_v5 = vadd.f32 %v3576_v45, %v2096_v37  ;;  %v2046_v6 = vadd.f32 %v4956_v51, %v4986_v10 }
 0x1fd   :  { %v5141_v2 = vpop.permute.xlu0 %2010  ;;  %v5166_v10 = vadd.f32 %v5013_v34, %v1220_v38  ;;  %v741_v37 = vadd.f32 %v4929_v4, %v5066_v48  ;;  %v1178_v38 = vadd.f32 %v4934_v12, %v5080_v24  ;;  %v5193_v24 = vunpack.c.h.bf16 %v5019_v49 }
 0x1fe   :  { %v5133_v18 = vpop.permute.xlu1 %2018  ;;  %v1211_v21 = vmul.f32 0.2, %v1179_v25  ;;  %vm1195_vm12 = vcmp.gt.f32.partialorder %v1179_v25, 0.0  ;;  %v2078_v30 = vmul.f32 0.2, %v2046_v6  ;;  %vm2062_vm14 = vcmp.gt.f32.partialorder %v2046_v6, 0.0 }
 0x1ff   :  { %1257 = vmax.xlane.f32.xlu1 %v5131_v3  ;;  %vm757_vm15 = vcmp.gt.f32.partialorder %v741_v37, 0.0  ;;  %vm1194_vm2 = vcmp.gt.f32.partialorder %v1178_v38, 0.0 }
 0x200   :  { %v1227_v15 = vsel %vm1195_vm12, %v1179_v25, %v1211_v21  ;;  %v2094_v21 = vsel %vm2062_vm14, %v2046_v6, %v2078_v30 }
 0x201   :  { %v5185_v48 = vadd.f32 %v5013_v34, %v2094_v21 }
 0x203   :  { %v693_v22 = vpop.permute.xlu1 %692  ;;  %1694 = vmax.xlane.f32.xlu1 %v5138_v63  ;;  %6642 = vst [vmem:[#allocation28_spill] sm:$0xff] %v5185_v48 }
 0x204   :  { %v742_v50 = vadd.f32 %v4929_v4, %v693_v22  ;;  %v5158_v22 = vpop.permute.xlu0 %1148 }
 0x206   :  { %v774_v42 = vmul.f32 0.2, %v742_v50  ;;  %vm758_vm11 = vcmp.gt.f32.partialorder %v742_v50, 0.0 }
 0x207   :  { %2131 = vmax.xlane.f32.xlu1 %v5150_v5 }
 0x208   :  { %v5160_v33 = vpop.permute.xlu1 %1573  ;;  %v790_v45 = vsel %vm758_vm11, %v742_v50, %v774_v42  ;;  %v5173_v50 = vadd.f32 %v5156_v58, %v1227_v15  ;;  %v5176_v42 = vadd.f32 %v5013_v34, %v1657_v55  ;;  %v5180_v28 = vpop.permute.xlu0 %2022  ;;  %v1210_v15 = vmul.f32 0.2, %v1178_v38 }
 0x209   :  { %v5163_v29 = vadd.f32 %v5156_v58, %v790_v45  ;;  %v773_v45 = vmul.f32 0.2, %v741_v37  ;;  %v1615_v55 = vadd.f32 %v4939_v16, %v5071_v35  ;;  %v739_v34 = vadd.f32 %v4929_v4, %v5102_v61 }
 0x20a   :  { %6641 = vst [vmem:[#allocation27_spill] sm:$0xff] %v5173_v50  ;;  %v1226_v21 = vsel %vm1194_vm2, %v1178_v38, %v1210_v15  ;;  %v3580_v38 = vunpack.c.h.bf16 %v5052_v17 }
 0x20b   :  { %6640 = vst [vmem:[#allocation26_spill] sm:$0xff] %v5163_v29  ;;  %846 = vmax.xlane.f32.xlu0 %v5163_v29  ;;  %1253 = vmax.xlane.f32.xlu1 %v5166_v10  ;;  %v789_v53 = vsel %vm757_vm15, %v741_v37, %v773_v45  ;;  %v1647_v30 = vmul.f32 0.2, %v1615_v55  ;;  %vm1631_vm3 = vcmp.gt.f32.partialorder %v1615_v55, 0.0  ;;  %v5204_v37 = vadd.f32 %v5193_v24, %v1226_v21 }
 0x20c   :  { %v698_v11 = vpop.permute.xlu0 %697  ;;  %v5196_v6 = vadd.f32 %v5193_v24, %v789_v53  ;;  %v771_v49 = vmul.f32 0.2, %v739_v34  ;;  %v1176_v45 = vadd.f32 %v4934_v12, %v5078_v60  ;;  %vm755_vm4 = vcmp.gt.f32.partialorder %v739_v34, 0.0 }
 0x20d   :  { %v708_v26 = vpop.permute.xlu1 %707  ;;  %6644 = vst [vmem:[#allocation30_spill] sm:$0xff] %v5204_v37  ;;  %v1663_v53 = vsel %vm1631_vm3, %v1615_v55, %v1647_v30  ;;  %v1613_v21 = vadd.f32 %v4939_v16, %v5116_v8  ;;  %v5228_v8 = vld [vmem:[%s6562_s4 + $0x38] sm:$0xff]  }
 0x20e   :  { %6643 = vst [vmem:[#allocation29_spill] sm:$0xff] %v5196_v6  ;;  %v5215_v15 = vadd.f32 %v5193_v24, %v1663_v53  ;;  %v1208_v29 = vmul.f32 0.2, %v1176_v45  ;;  %vm1192_vm5 = vcmp.gt.f32.partialorder %v1176_v45, 0.0 }
 0x20f   :  { %1267 = vmax.xlane.f32.xlu0 %v5173_v50  ;;  %1690 = vmax.xlane.f32.xlu1 %v5176_v42  ;;  %vm1629_vm6 = vcmp.gt.f32.partialorder %v1613_v21, 0.0 }
 0x210   :  { %v5208_v50 = vpop.permute.xlu0 %1577  ;;  %6645 = vst [vmem:[#allocation31_spill] sm:$0xff] %v5215_v15  ;;  %v1224_v53 = vsel %vm1192_vm5, %v1176_v45, %v1208_v29  ;;  %v745_v29 = vadd.f32 %v4929_v4, %v708_v26  ;;  %v1182_v26 = vadd.f32 %v4934_v12, %v5158_v22 }
 0x212   :  { %v5189_v25 = vpop.permute.xlu1 %1585  ;;  %vm761_vm10 = vcmp.gt.f32.partialorder %v745_v29, 0.0  ;;  %vm1198_vm11 = vcmp.gt.f32.partialorder %v1182_v26, 0.0 }
 0x213   :  { %2127 = vmax.xlane.f32.xlu1 %v5185_v48  ;;  %v777_v48 = vmul.f32 0.2, %v745_v29 }
 0x214   :  { %v1153_v60 = vpop.permute.xlu0 %1152 }
 0x215   :  { %v793_v22 = vsel %vm761_vm10, %v745_v29, %v777_v48  ;;  %v5275_v48 = vunpack.c.h.bf16 %v5148_v52 }
 0x217   :  { %v5200_v35 = vpop.permute.xlu1 %1140  ;;  %844 = vmax.xlane.f32.xlu1 %v5196_v6  ;;  %v787_v6 = vsel %vm755_vm4, %v739_v34, %v771_v49  ;;  %v5232_v34 = vunpack.c.l.bf16 %v5228_v8  ;;  %v5234_v49 = vadd.f32 %v3580_v38, %v1224_v53 }
 0x218   :  { %v5220_v30 = vadd.f32 %v3580_v38, %v787_v6  ;;  %v5236_v13 = vpop.permute.xlu0 %2026 }
 0x219   :  { %6647 = vst [vmem:[#allocation33_spill] sm:$0xff] %v5234_v49 }
 0x21a   :  { %6646 = vst [vmem:[#allocation32_spill] sm:$0xff] %v5220_v30 }
 0x21b   :  { %1265 = vmax.xlane.f32.xlu1 %v5204_v37  ;;  %v1645_v37 = vmul.f32 0.2, %v1613_v21 }
 0x21c   :  { %v5211_v61 = vpop.permute.xlu1 %2014 }
 0x21d   :  { %v1661_v31 = vsel %vm1629_vm6, %v1613_v21, %v1645_v37 }
 0x21e   :  { %v5245_v53 = vadd.f32 %v3580_v38, %v1661_v31  ;;  %v1214_v31 = vmul.f32 0.2, %v1182_v26 }
 0x21f   :  { %1702 = vmax.xlane.f32.xlu1 %v5215_v15  ;;  %v2082_v15 = vmul.f32 0.2, %v2050_v36 }
 0x220   :  { %6649 = vst [vmem:[#allocation35_spill] sm:$0xff] %v5245_v53 }
 0x221   :  { %v723_v55 = vpop.permute.xlu1 %722 }
 0x222   :  { %v748_v17 = vadd.f32 %v4929_v4, %v723_v55 }
 0x223   :  { %840 = vmax.xlane.f32.xlu1 %v5220_v30 }
 0x224   :  { %v780_v6 = vmul.f32 0.2, %v748_v17  ;;  %vm764_vm7 = vcmp.gt.f32.partialorder %v748_v17, 0.0 }
 0x226   :  { %v1161_v45 = vpop.permute.xlu1 %1160  ;;  %v796_v55 = vsel %vm764_vm7, %v748_v17, %v780_v6  ;;  %v2098_v17 = vsel %vm2066_vm8, %v2050_v36, %v2082_v15  ;;  %v1165_v6 = vpop.permute.xlu0 %1164  ;;  %v5260_v36 = vunpack.c.h.bf16 %v5095_v41  ;;  %v1183_v41 = vadd.f32 %v4934_v12, %v1153_v60 }
 0x227   :  { %v1185_v57 = vadd.f32 %v4934_v12, %v1161_v45  ;;  %1261 = vmax.xlane.f32.xlu1 %v5234_v49  ;;  %v5242_v30 = vadd.f32 %v5232_v34, %v796_v55  ;;  %v5255_v55 = vadd.f32 %v3580_v38, %v2098_v17  ;;  %v1230_v17 = vsel %vm1198_vm11, %v1182_v26, %v1214_v31 }
 0x228   :  { %v2051_v60 = vadd.f32 %v4956_v51, %v5034_v9  ;;  %v1215_v52 = vmul.f32 0.2, %v1183_v41  ;;  %vm1199_vm15 = vcmp.gt.f32.partialorder %v1183_v41, 0.0  ;;  %v1616_v9 = vadd.f32 %v4939_v16, %v5160_v33 }
 0x229   :  { %6648 = vst [vmem:[#allocation34_spill] sm:$0xff] %v5242_v30  ;;  %v1217_v47 = vmul.f32 0.2, %v1185_v57  ;;  %858 = vmax.xlane.f32.xlu0 %v5242_v30  ;;  %vm1201_vm9 = vcmp.gt.f32.partialorder %v1185_v57, 0.0  ;;  %6651 = vst [vmem:[#allocation37_spill] sm:$0xff] %v5255_v55  ;;  %v743_v30 = vadd.f32 %v4929_v4, %v698_v11  ;;  %v1180_v11 = vadd.f32 %v4934_v12, %v5200_v35  ;;  %v3638_v35 = vld [vmem:[%s6562_s4 + $0x30] sm:$0xff]  }
 0x22a   :  { %v5268_v38 = vpop.permute.xlu0 %2038  ;;  %v1231_v49 = vsel %vm1199_vm15, %v1183_v41, %v1215_v52  ;;  %vm2067_vm2 = vcmp.gt.f32.partialorder %v2051_v60, 0.0  ;;  %v1186_v32 = vadd.f32 %v4934_v12, %v1165_v6  ;;  %v1618_v33 = vadd.f32 %v4939_v16, %v5118_v0 }
 0x22b   :  { %v5249_v37 = vpop.permute.xlu1 %1597  ;;  %1698 = vmax.xlane.f32.xlu1 %v5245_v53  ;;  %v1233_v21 = vsel %vm1201_vm9, %v1185_v57, %v1217_v47  ;;  %v5266_v57 = vadd.f32 %v5260_v36, %v793_v22  ;;  %v775_v47 = vmul.f32 0.2, %v743_v30  ;;  %vm759_vm12 = vcmp.gt.f32.partialorder %v743_v30, 0.0 }
 0x22c   :  { %v5253_v45 = vadd.f32 %v5232_v34, %v1233_v21  ;;  %v5278_v21 = vadd.f32 %v5260_v36, %v1230_v17  ;;  %v1212_v22 = vmul.f32 0.2, %v1180_v11  ;;  %vm1196_vm13 = vcmp.gt.f32.partialorder %v1180_v11, 0.0 }
 0x22d   :  { %6652 = vst [vmem:[#allocation38_spill] sm:$0xff] %v5266_v57  ;;  %v2083_v53 = vmul.f32 0.2, %v2051_v60  ;;  %v1648_v41 = vmul.f32 0.2, %v1616_v9  ;;  %vm1632_vm3 = vcmp.gt.f32.partialorder %v1616_v9, 0.0  ;;  %v5319_v0 = vunpack.c.h.bf16 %v5228_v8 }
 0x22e   :  { %6650 = vst [vmem:[#allocation36_spill] sm:$0xff] %v5253_v45  ;;  %1279 = vmax.xlane.f32.xlu0 %v5253_v45  ;;  %6653 = vst [vmem:[#allocation39_spill] sm:$0xff] %v5278_v21  ;;  %v791_v45 = vsel %vm759_vm12, %v743_v30, %v775_v47  ;;  %v718_v26 = vpop.permute.xlu0 %717  ;;  %vm1202_vm5 = vcmp.gt.f32.partialorder %v1186_v32, 0.0  ;;  %vm1634_vm6 = vcmp.gt.f32.partialorder %v1618_v33, 0.0  ;;  %v2055_v8 = vadd.f32 %v4956_v51, %v5133_v18 }
 0x22f   :  { %2135 = vmax.xlane.f32.xlu1 %v5255_v55  ;;  %v5288_v17 = vadd.f32 %v5275_v48, %v791_v45  ;;  %v747_v6 = vadd.f32 %v4929_v4, %v718_v26 }
 0x230   :  { %v5263_v15 = vpop.permute.xlu1 %2034  ;;  %vm2071_vm10 = vcmp.gt.f32.partialorder %v2055_v8, 0.0 }
 0x231   :  { %6654 = vst [vmem:[#allocation40_spill] sm:$0xff] %v5288_v17  ;;  %v779_v26 = vmul.f32 0.2, %v747_v6  ;;  %vm763_vm7 = vcmp.gt.f32.partialorder %v747_v6, 0.0 }
 0x233   :  { %852 = vmax.xlane.f32.xlu1 %v5266_v57  ;;  %v5290_v57 = vunpack.c.l.bf16 %v3638_v35 }
 0x235   :  { %v713_v29 = vpop.permute.xlu1 %712 }
 0x236   :  { %v746_v55 = vadd.f32 %v4929_v4, %v713_v29  ;;  %v1228_v29 = vsel %vm1196_vm13, %v1180_v11, %v1212_v22  ;;  %v5307_v22 = vadd.f32 %v5290_v57, %v1231_v49  ;;  %v2053_v49 = vadd.f32 %v4956_v51, %v5141_v2 }
 0x237   :  { %1273 = vmax.xlane.f32.xlu1 %v5278_v21  ;;  %v5300_v45 = vadd.f32 %v5275_v48, %v1228_v29 }
 0x238   :  { %v778_v31 = vmul.f32 0.2, %v746_v55  ;;  %vm762_vm14 = vcmp.gt.f32.partialorder %v746_v55, 0.0  ;;  %6657 = vst [vmem:[#allocation43_spill] sm:$0xff] %v5307_v22  ;;  %vm2069_vm8 = vcmp.gt.f32.partialorder %v2053_v49, 0.0 }
 0x239   :  { %6656 = vst [vmem:[#allocation42_spill] sm:$0xff] %v5300_v45 }
 0x23a   :  { %v1590_v30 = vpop.permute.xlu1 %1589  ;;  %v794_v47 = vsel %vm762_vm14, %v746_v55, %v778_v31  ;;  %v5303_v55 = vpop.permute.xlu0 %1593  ;;  %v2099_v31 = vsel %vm2067_vm2, %v2051_v60, %v2083_v53  ;;  %v1650_v53 = vmul.f32 0.2, %v1618_v33 }
 0x23b   :  { %848 = vmax.xlane.f32.xlu1 %v5288_v17  ;;  %v5294_v21 = vadd.f32 %v5290_v57, %v794_v47  ;;  %v1218_v47 = vmul.f32 0.2, %v1186_v32  ;;  %v2085_v17 = vmul.f32 0.2, %v2053_v49 }
 0x23d   :  { %6655 = vst [vmem:[#allocation41_spill] sm:$0xff] %v5294_v21  ;;  %854 = vmax.xlane.f32.xlu0 %v5294_v21  ;;  %v1234_v2 = vsel %vm1202_vm5, %v1186_v32, %v1218_v47  ;;  %v1620_v47 = vadd.f32 %v4939_v16, %v1590_v30  ;;  %v1622_v30 = vadd.f32 %v4939_v16, %v5249_v37 }
 0x23e   :  { %v5314_v29 = vpop.xlane.xlu0 %834  ;;  %v5342_v32 = vadd.f32 %v5319_v0, %v1234_v2 }
 0x23f   :  { %v728_v11 = vpop.permute.xlu1 %727  ;;  %1269 = vmax.xlane.f32.xlu1 %v5300_v45  ;;  %v1664_v45 = vsel %vm1632_vm3, %v1616_v9, %v1648_v41  ;;  %v1666_v9 = vsel %vm1634_vm6, %v1618_v33, %v1650_v53  ;;  %v5338_v41 = vunpack.c.h.bf16 %v3638_v35  ;;  %v2101_v33 = vsel %vm2069_vm8, %v2053_v49, %v2085_v17 }
 0x240   :  { %v749_v52 = vadd.f32 %v4929_v4, %v728_v11  ;;  %v5322_v11 = vadd.f32 %v5027_v7, %v2099_v31  ;;  %v5332_v7 = vadd.f32 %v5156_v58, %v1664_v45  ;;  %v795_v31 = vsel %vm763_vm7, %v747_v6, %v779_v26 }
 0x241   :  { %1275 = vmax.xlane.f32.xlu0 %v5307_v22  ;;  %v5349_v18 = vadd.f32 %v5098_v1, %v1666_v9  ;;  %v2087_v35 = vmul.f32 0.2, %v2055_v8  ;;  %v5354_v2 = vadd.f32 %v5338_v41, %v795_v31  ;;  %v5360_v17 = vadd.f32 %v5156_v58, %v2101_v33 }
 0x242   :  { %vm765_vm4 = vcmp.gt.f32.partialorder %v749_v52, 0.0  ;;  %v781_v21 = vmul.f32 0.2, %v749_v52  ;;  %v1652_v49 = vmul.f32 0.2, %v1620_v47  ;;  %vm1636_vm12 = vcmp.gt.f32.partialorder %v1620_v47, 0.0 }
 0x243   :  { %v2103_v9 = vsel %vm2071_vm10, %v2055_v8, %v2087_v35  ;;  %v864_v58 = vsub.f32 %v4959_v54, %v5314_v29  ;;  %v2057_v8 = vadd.f32 %v4956_v51, %v5236_v13  ;;  %v1654_v33 = vmul.f32 0.2, %v1622_v30 }
 0x244   :  { %v5324_v60 = vpop.permute.xlu1 %1601  ;;  %v797_v22 = vsel %vm765_vm4, %v749_v52, %v781_v21  ;;  %v5336_v21 = vpop.xlane.xlu0 %1255  ;;  %v2052_v52 = vadd.f32 %v4956_v51, %v5087_v43  ;;  %v5374_v37 = vadd.f32 %v5098_v1, %v2103_v9  ;;  %vm1638_vm14 = vcmp.gt.f32.partialorder %v1622_v30, 0.0 }
 0x245   :  { %2137 = vmax.xlane.f32.xlu0 %v5322_v11  ;;  %v5328_v4 = vadd.f32 %v5319_v0, %v797_v22  ;;  %v2054_v54 = vadd.f32 %v4956_v51, %v5211_v61  ;;  %v882_v1 = vmul.f32 1.442695, %v864_v58  ;;  %vm2073_vm2 = vcmp.gt.f32.partialorder %v2057_v8, 0.0 }
 0x246   :  { %v2084_v43 = vmul.f32 0.2, %v2052_v52  ;;  %vm2068_vm11 = vcmp.gt.f32.partialorder %v2052_v52, 0.0 }
 0x247   :  { %860 = vmax.xlane.f32.xlu1 %v5328_v4  ;;  %vm2070_vm3 = vcmp.gt.f32.partialorder %v2054_v54, 0.0  ;;  %4201 = vpow2.f32 %v882_v1 }
 0x248   :  { %v1693_v6 = vpop.xlane.xlu0 %1692  ;;  %v2100_v31 = vsel %vm2068_vm11, %v2052_v52, %v2084_v43 }
 0x249   :  { %v1157_v22 = vpop.permute.xlu1 %1156  ;;  %1704 = vmax.xlane.f32.xlu0 %v5332_v7  ;;  %v1722_v43 = vsub.f32 %v4978_v46, %v1693_v6  ;;  %v2086_v46 = vmul.f32 0.2, %v2054_v54 }
 0x24a   :  { %v1184_v45 = vadd.f32 %v4934_v12, %v1157_v22  ;;  %v1617_v12 = vadd.f32 %v4939_v16, %v5208_v50 }
 0x24b   :  { %1281 = vmax.xlane.f32.xlu1 %v5342_v32  ;;  %v1740_v9 = vmul.f32 1.442695, %v1722_v43  ;;  %v1285_v43 = vsub.f32 %v4969_v62, %v5336_v21 }
 0x24c   :  { %vm1200_vm9 = vcmp.gt.f32.partialorder %v1184_v45, 0.0  ;;  %v1216_v53 = vmul.f32 0.2, %v1184_v45  ;;  %v1649_v50 = vmul.f32 0.2, %v1617_v12  ;;  %vm1633_vm13 = vcmp.gt.f32.partialorder %v1617_v12, 0.0  ;;  %v2130_v35 = vpop.xlane.xlu0 %2129 }
 0x24d   :  { %1708 = vmax.xlane.f32.xlu0 %v5349_v18  ;;  %4203 = vpow2.f32 %v1740_v9 }
 0x24e   :  { %v1232_v26 = vsel %vm1200_vm9, %v1184_v45, %v1216_v53  ;;  %v1619_v45 = vadd.f32 %v4939_v16, %v5189_v25  ;;  %v1668_v53 = vsel %vm1636_vm12, %v1620_v47, %v1652_v49  ;;  %v5380_v25 = vadd.f32 %v5193_v24, %v2100_v31  ;;  %v2031_v1 = vpop.permute.xlu1 %2030 }
 0x24f   :  { %856 = vmax.xlane.f32.xlu1 %v5354_v2  ;;  %v5366_v22 = vadd.f32 %v5338_v41, %v1232_v26  ;;  %v1665_v29 = vsel %vm1633_vm13, %v1617_v12, %v1649_v50  ;;  %v5387_v13 = vadd.f32 %v5290_v57, %v1668_v53  ;;  %v2089_v47 = vmul.f32 0.2, %v2057_v8 }
 0x250   :  { %v1651_v52 = vmul.f32 0.2, %v1619_v45  ;;  %vm1635_vm15 = vcmp.gt.f32.partialorder %v1619_v45, 0.0  ;;  %v2059_v26 = vadd.f32 %v4956_v51, %v5263_v15  ;;  %v1670_v24 = vsel %vm1638_vm14, %v1622_v30, %v1654_v33  ;;  %v5397_v6 = vpop.xlane.xlu0 %1251 }
 0x251   :  { %2141 = vmax.xlane.f32.xlu0 %v5360_v17  ;;  %v5393_v61 = vadd.f32 %v5275_v48, %v1665_v29  ;;  %v2056_v12 = vadd.f32 %v4956_v51, %v5180_v28  ;;  %v2159_v50 = vsub.f32 %v4988_v14, %v2130_v35  ;;  %v5402_v15 = vadd.f32 %v5232_v34, %v1670_v24 }
 0x252   :  { %v1667_v49 = vsel %vm1635_vm15, %v1619_v45, %v1651_v52  ;;  %v2091_v30 = vmul.f32 0.2, %v2059_v26  ;;  %v2105_v31 = vsel %vm2073_vm2, %v2057_v8, %v2089_v47  ;;  %vm2075_vm4 = vcmp.gt.f32.partialorder %v2059_v26, 0.0 }
 0x253   :  { %1277 = vmax.xlane.f32.xlu1 %v5366_v22  ;;  %v5406_v28 = vadd.f32 %v5260_v36, %v1667_v49  ;;  %v2088_v58 = vmul.f32 0.2, %v2056_v12  ;;  %v1623_v45 = vadd.f32 %v4939_v16, %v5324_v60  ;;  %v2102_v33 = vsel %vm2070_vm3, %v2054_v54, %v2086_v46 }
 0x254   :  { %vm2072_vm5 = vcmp.gt.f32.partialorder %v2056_v12, 0.0  ;;  %v2177_v14 = vmul.f32 1.442695, %v2159_v50  ;;  %v5413_v35 = vadd.f32 %v5290_v57, %v2105_v31  ;;  %v5415_v8 = vpop.xlane.xlu0 %1688  ;;  %v2107_v53 = vsel %vm2075_vm4, %v2059_v26, %v2091_v30  ;;  %v5435_v24 = vpop.eup %4201 }
 0x255   :  { %2145 = vmax.xlane.f32.xlu0 %v5374_v37  ;;  %v5419_v52 = vadd.f32 %v5275_v48, %v2102_v33  ;;  %v1621_v60 = vadd.f32 %v4939_v16, %v5303_v55  ;;  %v1655_v54 = vmul.f32 0.2, %v1623_v45  ;;  %v2104_v29 = vsel %vm2072_vm5, %v2056_v12, %v2088_v58 }
 0x256   :  { %4205 = vpow2.f32 %v2177_v14  ;;  %vm1639_vm6 = vcmp.gt.f32.partialorder %v1623_v45, 0.0  ;;  %v5425_v57 = vadd.f32 %v5232_v34, %v2107_v53  ;;  %v5431_v48 = vadd.f32 %v5260_v36, %v2104_v29 }
 0x257   :  { %2139 = vmax.xlane.f32.xlu1 %v5380_v25  ;;  %v1653_v47 = vmul.f32 0.2, %v1621_v60  ;;  %v2058_v16 = vadd.f32 %v4956_v51, %v2031_v1  ;;  %v1671_v26 = vsel %vm1639_vm6, %v1623_v45, %v1655_v54  ;;  %vm1637_vm7 = vcmp.gt.f32.partialorder %v1621_v60, 0.0 }
 0x258   :  { %v2126_v55 = vpop.xlane.xlu0 %2125  ;;  %v1303_v34 = vmul.f32 1.442695, %v1285_v43  ;;  %v5440_v62 = vadd.f32 %v5319_v0, %v1671_v26  ;;  %v2060_v36 = vadd.f32 %v4956_v51, %v5268_v38 }
 0x259   :  { %1712 = vmax.xlane.f32.xlu0 %v5387_v13  ;;  %v2157_v12 = vsub.f32 %v5011_v44, %v2126_v55  ;;  %v2090_v21 = vmul.f32 0.2, %v2058_v16  ;;  %v1669_v46 = vsel %vm1637_vm7, %v1621_v60, %v1653_v47  ;;  %vm2074_vm8 = vcmp.gt.f32.partialorder %v2058_v16, 0.0 }
 0x25a   :  { %v5445_v49 = vpop.eup %4203  ;;  %4207 = vpow2.f32 %v1303_v34  ;;  %v5449_v44 = vadd.f32 %v5338_v41, %v1669_v46  ;;  %v2092_v50 = vmul.f32 0.2, %v2060_v36  ;;  %vm2076_vm9 = vcmp.gt.f32.partialorder %v2060_v36, 0.0 }
 0x25b   :  { %1706 = vmax.xlane.f32.xlu1 %v5393_v61  ;;  %v2173_v9 = vmul.f32 1.442695, %v2157_v12  ;;  %v2106_v30 = vsel %vm2074_vm8, %v2058_v16, %v2090_v21 }
 0x25c   :  { %v5456_v38 = vadd.f32 %v5338_v41, %v2106_v30  ;;  %v2108_v31 = vsel %vm2076_vm9, %v2060_v36, %v2092_v50  ;;  %v833_v33 = vpop.xlane.xlu0 %832 }
 0x25d   :  { %1716 = vmax.xlane.f32.xlu0 %v5402_v15  ;;  %4209 = vpow2.f32 %v2173_v9  ;;  %v5460_v58 = vadd.f32 %v5319_v0, %v2108_v31  ;;  %v863_v14 = vsub.f32 %v5024_v20, %v833_v33  ;;  %v1283_v0 = vsub.f32 %v4997_v23, %v5397_v6 }
 0x25e   :  { %v1720_v20 = vsub.f32 %v5004_v59, %v5415_v8 }
 0x25f   :  { %1710 = vmax.xlane.f32.xlu1 %v5406_v28  ;;  %v880_v54 = vmul.f32 1.442695, %v863_v14  ;;  %v1299_v16 = vmul.f32 1.442695, %v1283_v0 }
 0x260   :  { %v843_v41 = vpop.xlane.xlu0 %842 }
 0x261   :  { %2149 = vmax.xlane.f32.xlu0 %v5413_v35  ;;  %4211 = vpow2.f32 %v880_v54 }
 0x263   :  { %2143 = vmax.xlane.f32.xlu1 %v5419_v52  ;;  %v5452_v51 = vpop.eup %4205 }
 0x264   :  { %v1264_v55 = vpop.xlane.xlu0 %1263 }
 0x265   :  { %2153 = vmax.xlane.f32.xlu0 %v5425_v57 }
 0x267   :  { %2147 = vmax.xlane.f32.xlu1 %v5431_v48  ;;  %v5463_v45 = vpop.eup %4207 }
 0x268   :  { %v1701_v23 = vpop.xlane.xlu0 %1700 }
 0x269   :  { %914 = vadd.xlane.f32.xlu0 %v5435_v24 }
 0x26a   :  { %v5467_v53 = vpop.eup %4209 }
 0x26b   :  { %1718 = vmax.xlane.f32.xlu1 %v5440_v62 }
 0x26c   :  { %v839_v9 = vpop.xlane.xlu0 %838 }
 0x26d   :  { %1772 = vadd.xlane.f32.xlu0 %v5445_v49 }
 0x26e   :  { %v4212_v8 = vpop.eup %4211 }
 0x26f   :  { %1714 = vmax.xlane.f32.xlu1 %v5449_v44 }
 0x271   :  { %2209 = vadd.xlane.f32.xlu0 %v5452_v51 }
 0x273   :  { %2151 = vmax.xlane.f32.xlu1 %v5456_v38 }
 0x277   :  { %2155 = vmax.xlane.f32.xlu1 %v5460_v58 }
 0x27b   :  { %1335 = vadd.xlane.f32.xlu1 %v5463_v45 }
 0x27f   :  { %2205 = vadd.xlane.f32.xlu1 %v5467_v53 }
 0x280   :  { %v831_v60 = vpop.xlane.xlu1 %830 }
 0x281   :  { %v862_v29 = vsub.f32 %v5109_v39, %v831_v60  ;;  %v1736_v39 = vmul.f32 1.442695, %v1720_v20 }
 0x283   :  { %v878_v1 = vmul.f32 1.442695, %v862_v29  ;;  %v5481_v29 = vpop.xlane.xlu0 %1259 }
 0x284   :  { %v837_v43 = vpop.xlane.xlu1 %836 }
 0x285   :  { %v865_v47 = vsub.f32 %v5120_v40, %v837_v43  ;;  %4213 = vpow2.f32 %v878_v1  ;;  %v868_v43 = vsub.f32 %v5037_v19, %v843_v41  ;;  %v6660_v19 = vld [vmem:[#allocation19_spill] sm:$0xff] }
 0x286   :  { %v1726_v41 = vsub.f32 %v6660_v19, %v1701_v23 }
 0x287   :  { %v884_v26 = vmul.f32 1.442695, %v865_v47 }
 0x288   :  { %v1258_v34 = vpop.xlane.xlu1 %1257  ;;  %v1748_v23 = vmul.f32 1.442695, %v1726_v41  ;;  %v6669_v41 = vld [vmem:[#allocation7_spill] sm:$0xff] }
 0x289   :  { %4215 = vpow2.f32 %v884_v26  ;;  %v1286_v12 = vsub.f32 %v5131_v3, %v1258_v34  ;;  %v6659_v26 = vld [vmem:[#allocation28_spill] sm:$0xff] }
 0x28a   :  { %4217 = vpow2.f32 %v1299_v16  ;;  %v6658_v16 = vld [vmem:[#allocation18_spill] sm:$0xff] }
 0x28b   :  { %v1305_v36 = vmul.f32 1.442695, %v1286_v12  ;;  %v1289_v20 = vsub.f32 %v6658_v16, %v1264_v55  ;;  %v890_v12 = vmul.f32 1.442695, %v868_v43 }
 0x28c   :  { %v1695_v6 = vpop.xlane.xlu1 %1694 }
 0x28d   :  { %4219 = vpow2.f32 %v1305_v36  ;;  %v1723_v21 = vsub.f32 %v5138_v63, %v1695_v6  ;;  %v6661_v36 = vld [vmem:[#allocation13_spill] sm:$0xff] }
 0x28e   :  { %4221 = vpow2.f32 %v1736_v39  ;;  %v1697_v39 = vpop.xlane.xlu0 %1696 }
 0x28f   :  { %v1742_v40 = vmul.f32 1.442695, %v1723_v21  ;;  %v1311_v21 = vmul.f32 1.442695, %v1289_v20 }
 0x290   :  { %v2132_v46 = vpop.xlane.xlu1 %2131 }
 0x291   :  { %4223 = vpow2.f32 %v1742_v40  ;;  %v2160_v59 = vsub.f32 %v5150_v5, %v2132_v46  ;;  %v6662_v46 = vld [vmem:[#allocation20_spill] sm:$0xff] }
 0x292   :  { %v4214_v50 = vpop.eup %4213 }
 0x293   :  { %v2179_v30 = vmul.f32 1.442695, %v2160_v59  ;;  %910 = vadd.xlane.f32.xlu0 %v4214_v50  ;;  %v942_v31 = vpack.c.bf16 %v4212_v8, %v4214_v50  ;;  %v866_v59 = vsub.f32 %v6662_v46, %v839_v9 }
 0x294   :  { %v1254_v3 = vpop.xlane.xlu1 %1253 }
 0x295   :  { %4225 = vpow2.f32 %v2179_v30  ;;  %v1284_v33 = vsub.f32 %v5166_v10, %v1254_v3  ;;  %3849 = vmatprep.mubr.bf16.mxu0 %v942_v31  ;;  %v5507_v30 = vpop.xlane.xlu0 %2133  ;;  %v886_v31 = vmul.f32 1.442695, %v866_v59 }
 0x296   :  { %v4216_v14 = vpop.eup %4215 }
 0x297   :  { %v4218_v60 = vpop.eup %4217  ;;  %v1301_v63 = vmul.f32 1.442695, %v1284_v33  ;;  %v943_v54 = vpack.c.bf16 %v4216_v14, %v5435_v24  ;;  %v6664_v33 = vld [vmem:[#allocation22_spill] sm:$0xff] }
 0x298   :  { %1331 = vadd.xlane.f32.xlu0 %v4218_v60  ;;  %v1691_v5 = vpop.xlane.xlu1 %1690 }
 0x299   :  { %v1721_v0 = vsub.f32 %v5176_v42, %v1691_v5  ;;  %3850 = vmatmul.mubr.bf16.vlgmr.msra.gmra.mxu0 %v943_v54  ;;  %4227 = vpow2.f32 %v1301_v63  ;;  %v6665_v63 = vld [vmem:[#allocation9_spill] sm:$0xff]  ;;  %v5513_v54 = vpop.xlane.xlu0 %850 }
 0x29a   :  { %v4220_v1 = vpop.eup %4219  ;;  %3898 = vmatpush3.bf16.msra.mxu0 %v4854_v56 }
 0x29b   :  { %v5486_v10 = vpop.eup %4221  ;;  %v1738_v47 = vmul.f32 1.442695, %v1721_v0  ;;  %3899 = vmatprep.subr.bf16.mxu0 %v4827_v27  ;;  %1337 = vadd.xlane.f32.xlu1 %v4220_v1  ;;  %v1364_v16 = vpack.c.bf16 %v4220_v1, %v5463_v45 }
 0x29c   :  { %1768 = vadd.xlane.f32.xlu0 %v5486_v10  ;;  %v2128_v24 = vpop.xlane.xlu1 %2127 }
 0x29d   :  { %v2158_v42 = vsub.f32 %v6659_v26, %v2128_v24  ;;  %4229 = vpow2.f32 %v1738_v47  ;;  %v6667_v47 = vld [vmem:[#allocation31_spill] sm:$0xff]  ;;  %v5533_v46 = vpop.xlane.xlu0 %1271 }
 0x29e   :  { %v5492_v34 = vpop.eup %4223  ;;  %3900 = vmatpush3.bf16.msra.mxu0 %v4827_v27  ;;  %v6663_v27 = vld [vmem:[#allocation11_spill] sm:$0xff] }
 0x29f   :  { %v2175_v56 = vmul.f32 1.442695, %v2158_v42  ;;  %3901 = vmatprep.subr.bf16.mxu0 %v6661_v36  ;;  %1774 = vadd.xlane.f32.xlu1 %v5492_v34  ;;  %v6668_v42 = vld [vmem:[#allocation21_spill] sm:$0xff] }
 0x2a0   :  { %916 = vadd.xlane.f32.xlu0 %v4216_v14  ;;  %v845_v55 = vpop.xlane.xlu1 %844  ;;  %v1724_v14 = vsub.f32 %v6664_v33, %v1697_v39 }
 0x2a1   :  { %4231 = vpow2.f32 %v2175_v56 }
 0x2a2   :  { %v5500_v40 = vpop.eup %4225  ;;  %4233 = vpow2.f32 %v890_v12  ;;  %3902 = vmatpush3.bf16.msra.mxu0 %v6661_v36  ;;  %v1744_v20 = vmul.f32 1.442695, %v1724_v14  ;;  %v1287_v12 = vsub.f32 %v6668_v42, %v5481_v29  ;;  %v6671_v36 = vld [vmem:[#allocation16_spill] sm:$0xff] }
 0x2a3   :  { %3903 = vmatprep.subr.bf16.mxu0 %v6663_v27  ;;  %912 = vadd.xlane.f32.xlu1 %v4212_v8  ;;  %4235 = vpow2.f32 %v1311_v21  ;;  %v6666_v8 = vld [vmem:[#allocation29_spill] sm:$0xff]  ;;  %v6673_v21 = vld [vmem:[#allocation32_spill] sm:$0xff] }
 0x2a4   :  { %2211 = vadd.xlane.f32.xlu0 %v5500_v40  ;;  %v1266_v3 = vpop.xlane.xlu1 %1265  ;;  %4237 = vpow2.f32 %v1748_v23  ;;  %v869_v5 = vsub.f32 %v6666_v8, %v845_v55  ;;  %v6672_v55 = vld [vmem:[#allocation15_spill] sm:$0xff]  ;;  %v6676_v8 = vld [vmem:[#allocation33_spill] sm:$0xff]  ;;  %v6678_v42 = vld [vmem:[#allocation12_spill] sm:$0xff] }
 0x2a5   :  { %4239 = vpow2.f32 %v886_v31  ;;  %v6674_v31 = vld [vmem:[#allocation5_spill] sm:$0xff] }
 0x2a6   :  { %3904 = vmatpush3.bf16.msra.mxu0 %v6663_v27  ;;  %v4228_v9 = vpop.eup %4227  ;;  %v892_v39 = vmul.f32 1.442695, %v869_v5  ;;  %v1307_v27 = vmul.f32 1.442695, %v1287_v12  ;;  %v6679_v12 = vld [vmem:[#allocation35_spill] sm:$0xff] }
 0x2a7   :  { %3905 = vmatprep.subr.bf16.mxu0 %v6665_v63  ;;  %1333 = vadd.xlane.f32.xlu1 %v4228_v9  ;;  %v1363_v43 = vpack.c.bf16 %v4228_v9, %v4218_v60  ;;  %v6670_v60 = vld [vmem:[#allocation30_spill] sm:$0xff] }
 0x2a8   :  { %v1703_v0 = vpop.xlane.xlu1 %1702  ;;  %v1290_v56 = vsub.f32 %v6670_v60, %v1266_v3 }
 0x2a9   :  { %v1727_v24 = vsub.f32 %v6667_v47, %v1703_v0  ;;  %3881 = vmatprep.mubr.bf16.mxu1 %v1363_v43  ;;  %v847_v43 = vpop.xlane.xlu0 %846 }
 0x2aa   :  { %3906 = vmatpush3.bf16.msra.mxu0 %v6665_v63  ;;  %v5519_v26 = vpop.eup %4229  ;;  %3882 = vmatmul.mubr.bf16.vlgmr.msra.gmra.mxu1 %v1364_v16  ;;  %v1313_v14 = vmul.f32 1.442695, %v1290_v56  ;;  %v6675_v63 = vld [vmem:[#allocation14_spill] sm:$0xff]  ;;  %v6677_v16 = vld [vmem:[#allocation3_spill] sm:$0xff] }
 0x2ab   :  { %v1750_v19 = vmul.f32 1.442695, %v1727_v24  ;;  %3907 = vmatprep.subr.bf16.mxu0 %v6669_v41  ;;  %3930 = vmatpush3.bf16.msra.mxu1 %v6671_v36  ;;  %v1800_v1 = vpack.c.bf16 %v5519_v26, %v5486_v10  ;;  %v6680_v56 = vld [vmem:[#allocation10_spill] sm:$0xff] }
 0x2ac   :  { %1770 = vadd.xlane.f32.xlu1 %v5519_v26  ;;  %v841_v45 = vpop.xlane.xlu1 %840  ;;  %3931 = vmatprep.subr.bf16.mxu1 %v6672_v55 }
 0x2ad   :  { %4241 = vpow2.f32 %v1750_v19  ;;  %v867_v29 = vsub.f32 %v6673_v21, %v841_v45  ;;  %v6681_v45 = vld [vmem:[#allocation24_spill] sm:$0xff] }
 0x2ae   :  { %v5531_v23 = vpop.eup %4231  ;;  %4243 = vpow2.f32 %v1744_v20  ;;  %3908 = vmatpush3.bf16.msra.mxu0 %v6669_v41 }
 0x2af   :  { %v5536_v59 = vpop.eup %4233  ;;  %v888_v3 = vmul.f32 1.442695, %v867_v29  ;;  %3909 = vmatprep.subr.bf16.mxu0 %v6674_v31  ;;  %2207 = vadd.xlane.f32.xlu0 %v5531_v23  ;;  %v2237_v33 = vpack.c.bf16 %v5531_v23, %v5467_v53  ;;  %4245 = vpow2.f32 %v892_v39  ;;  %v1268_v39 = vpop.xlane.xlu0 %1267 }
 0x2b0   :  { %3932 = vmatpush3.bf16.msra.mxu1 %v6672_v55  ;;  %922 = vadd.xlane.f32.xlu1 %v5536_v59  ;;  %v1262_v9 = vpop.xlane.xlu1 %1261  ;;  %v5546_v0 = vpop.eup %4235  ;;  %v872_v55 = vsub.f32 %v6681_v45, %v5513_v54  ;;  %v6683_v54 = vld [vmem:[#allocation26_spill] sm:$0xff] }
 0x2b1   :  { %4247 = vpow2.f32 %v888_v3  ;;  %3933 = vmatprep.subr.bf16.mxu1 %v6675_v63  ;;  %v1288_v5 = vsub.f32 %v6676_v8, %v1262_v9  ;;  %v5549_v47 = vpop.eup %4237  ;;  %v6682_v9 = vld [vmem:[#allocation8_spill] sm:$0xff]  ;;  %v6685_v45 = vld [vmem:[#allocation6_spill] sm:$0xff] }
 0x2b2   :  { %3910 = vmatpush3.bf16.msra.mxu0 %v6674_v31  ;;  %4249 = vpow2.f32 %v1307_v27  ;;  %v4240_v41 = vpop.eup %4239  ;;  %v898_v8 = vmul.f32 1.442695, %v872_v55 }
 0x2b3   :  { %v1309_v24 = vmul.f32 1.442695, %v1288_v5  ;;  %3911 = vmatprep.subr.bf16.mxu0 %v6677_v16  ;;  %1343 = vadd.xlane.f32.xlu0 %v5546_v0  ;;  %4251 = vpow2.f32 %v1313_v14  ;;  %v5570_v3 = vpop.xlane.xlu0 %858  ;;  %v870_v5 = vsub.f32 %v6683_v54, %v847_v43 }
 0x2b4   :  { %3934 = vmatpush3.bf16.msra.mxu1 %v6675_v63  ;;  %1780 = vadd.xlane.f32.xlu1 %v5549_v47  ;;  %v1699_v20 = vpop.xlane.xlu1 %1698 }
 0x2b5   :  { %4253 = vpow2.f32 %v1309_v24  ;;  %3935 = vmatprep.subr.bf16.mxu1 %v6678_v42  ;;  %v1725_v19 = vsub.f32 %v6679_v12, %v1699_v20  ;;  %v6684_v20 = vld [vmem:[#allocation38_spill] sm:$0xff] }
 0x2b6   :  { %3912 = vmatpush3.bf16.msra.mxu0 %v6677_v16 }
 0x2b7   :  { %v1746_v21 = vmul.f32 1.442695, %v1725_v19  ;;  %v5586_v43 = vpop.xlane.xlu0 %1279 }
 0x2b8   :  { %3936 = vmatpush3.bf16.msra.mxu1 %v6678_v42  ;;  %918 = vadd.xlane.f32.xlu1 %v4240_v41  ;;  %v5559_v60 = vpop.xlane.xlu1 %2135 }
 0x2b9   :  { %3937 = vmatprep.subr.bf16.mxu1 %v6680_v56  ;;  %4255 = vpow2.f32 %v1746_v21  ;;  %v6686_v21 = vld [vmem:[#allocation27_spill] sm:$0xff] }
 0x2ba   :  { %v5562_v36 = vpop.eup %4241  ;;  %4257 = vpow2.f32 %v898_v8 }
 0x2bb   :  { %v5566_v29 = vpop.eup %4243 }
 0x2bc   :  { %3938 = vmatpush3.bf16.msra.mxu1 %v6680_v56  ;;  %1776 = vadd.xlane.f32.xlu1 %v5566_v29  ;;  %v853_v31 = vpop.xlane.xlu1 %852  ;;  %v4246_v14 = vpop.eup %4245 }
 0x2bd   :  { %3939 = vmatprep.subr.bf16.mxu1 %v6682_v9  ;;  %v873_v42 = vsub.f32 %v6684_v20, %v853_v31  ;;  %v945_v19 = vpack.c.bf16 %v4246_v14, %v5536_v59  ;;  %v1291_v31 = vsub.f32 %v6686_v21, %v1268_v39  ;;  %v6687_v20 = vld [vmem:[#allocation39_spill] sm:$0xff]  ;;  %v6690_v39 = vld [vmem:[#allocation25_spill] sm:$0xff] }
 0x2be   :  { %v4248_v63 = vpop.eup %4247  ;;  %v1293_v21 = vsub.f32 %v6690_v39, %v5533_v46 }
 0x2bf   :  { %v944_v24 = vpack.c.bf16 %v4248_v63, %v4240_v41  ;;  %v5576_v16 = vpop.eup %4249  ;;  %v894_v41 = vmul.f32 1.442695, %v870_v5  ;;  %v900_v54 = vmul.f32 1.442695, %v873_v42  ;;  %v1315_v42 = vmul.f32 1.442695, %v1291_v31 }
 0x2c0   :  { %3940 = vmatpush3.bf16.msra.mxu1 %v6682_v9  ;;  %924 = vadd.xlane.f32.xlu1 %v4246_v14  ;;  %v1274_v12 = vpop.xlane.xlu1 %1273  ;;  %v5581_v56 = vpop.eup %4251  ;;  %v1319_v6 = vmul.f32 1.442695, %v1293_v21 }
 0x2c1   :  { %3941 = vmatprep.subr.bf16.mxu1 %v6685_v45  ;;  %3853 = vmatprep.mubr.bf16.mxu0 %v944_v24  ;;  %v1294_v59 = vsub.f32 %v6687_v20, %v1274_v12  ;;  %v1366_v8 = vpack.c.bf16 %v5581_v56, %v5546_v0  ;;  %v6688_v24 = vld [vmem:[#allocation4_spill] sm:$0xff]  ;;  %4259 = vpow2.f32 %v894_v41  ;;  %v6691_v0 = vld [vmem:[#allocation42_spill] sm:$0xff] }
 0x2c2   :  { %v5584_v55 = vpop.eup %4253  ;;  %3854 = vmatmul.mubr.bf16.gmra.mxu0 %v945_v19  ;;  %v6689_v19 = vld [vmem:[#allocation40_spill] sm:$0xff]  ;;  %4261 = vpow2.f32 %v900_v54 }
 0x2c3   :  { %v1365_v9 = vpack.c.bf16 %v5584_v55, %v5576_v16 }
 0x2c4   :  { %3942 = vmatpush3.bf16.msra.mxu1 %v6685_v45  ;;  %1782 = vadd.xlane.f32.xlu1 %v5562_v36  ;;  %v849_v14 = vpop.xlane.xlu1 %848  ;;  %v1321_v45 = vmul.f32 1.442695, %v1294_v59  ;;  %v6692_v59 = vld [vmem:[#allocation23_spill] sm:$0xff] }
 0x2c5   :  { %3943 = vmatprep.subr.bf16.mxu1 %v6688_v24  ;;  %v871_v5 = vsub.f32 %v6689_v19, %v849_v14  ;;  %3885 = vmatprep.mubr.bf16.mxu1 %v1365_v9  ;;  %v6693_v19 = vld [vmem:[#allocation41_spill] sm:$0xff] }
 0x2c6   :  { %v855_v27 = vpop.xlane.xlu0 %854  ;;  %3886 = vmatmul.mubr.bf16.gmra.mxu1 %v1366_v8  ;;  %v5602_v9 = vpop.eup %4255  ;;  %v2161_v8 = vsub.f32 %v6692_v59, %v5507_v30  ;;  %v6695_v30 = vld [vmem:[#allocation43_spill] sm:$0xff] }
 0x2c7   :  { %v896_v12 = vmul.f32 1.442695, %v871_v5  ;;  %v4258_v31 = vpop.eup %4257  ;;  %v874_v5 = vsub.f32 %v6693_v19, %v855_v27 }
 0x2c8   :  { %3944 = vmatpush3.bf16.msra.mxu1 %v6688_v24  ;;  %920 = vadd.xlane.f32.xlu1 %v4248_v63  ;;  %v1270_v20 = vpop.xlane.xlu1 %1269 }
 0x2c9   :  { %4263 = vpow2.f32 %v896_v12  ;;  %v1292_v50 = vsub.f32 %v6691_v0, %v1270_v20  ;;  %v2181_v12 = vmul.f32 1.442695, %v2161_v8  ;;  %v902_v0 = vmul.f32 1.442695, %v874_v5 }
 0x2ca   :  { %v1276_v14 = vpop.xlane.xlu0 %1275  ;;  %4265 = vpow2.f32 %v1315_v42 }
 0x2cb   :  { %v1317_v46 = vmul.f32 1.442695, %v1292_v50  ;;  %4267 = vpow2.f32 %v1321_v45 }
 0x2cc   :  { %1778 = vadd.xlane.f32.xlu1 %v5602_v9 }
 0x2cd   :  { %4269 = vpow2.f32 %v1317_v46  ;;  %v1295_v46 = vsub.f32 %v6695_v30, %v1276_v14 }
 0x2ce   :  { %4271 = vpow2.f32 %v1319_v6  ;;  %v2138_v41 = vpop.xlane.xlu0 %2137  ;;  %v5609_v50 = vpop.eup %4259 }
 0x2cf   :  { %v2163_v54 = vsub.f32 %v5322_v11, %v2138_v41  ;;  %v5612_v6 = vpop.eup %4261  ;;  %v6694_v11 = vld [vmem:[#allocation34_spill] sm:$0xff] }
 0x2d0   :  { %930 = vadd.xlane.f32.xlu1 %v4258_v31  ;;  %v861_v63 = vpop.xlane.xlu1 %860  ;;  %v876_v20 = vsub.f32 %v6694_v11, %v5570_v3  ;;  %v6696_v11 = vld [vmem:[#allocation36_spill] sm:$0xff] }
 0x2d1   :  { %v2185_v24 = vmul.f32 1.442695, %v2163_v54  ;;  %v877_v21 = vsub.f32 %v5328_v4, %v861_v63  ;;  %v1297_v30 = vsub.f32 %v6696_v11, %v5586_v43 }
 0x2d2   :  { %v1705_v39 = vpop.xlane.xlu0 %1704 }
 0x2d3   :  { %4273 = vpow2.f32 %v2185_v24  ;;  %v908_v4 = vmul.f32 1.442695, %v877_v21  ;;  %v947_v24 = vpack.c.bf16 %v5612_v6, %v4258_v31  ;;  %v1323_v21 = vmul.f32 1.442695, %v1295_v46 }
 0x2d4   :  { %v1282_v42 = vpop.xlane.xlu1 %1281  ;;  %4275 = vpow2.f32 %v2181_v12  ;;  %v1728_v31 = vsub.f32 %v5332_v7, %v1705_v39 }
 0x2d5   :  { %v1298_v63 = vsub.f32 %v5342_v32, %v1282_v42  ;;  %4277 = vpow2.f32 %v902_v0  ;;  %v1327_v0 = vmul.f32 1.442695, %v1297_v30 }
 0x2d6   :  { %v5614_v45 = vpop.eup %4263  ;;  %v1709_v41 = vpop.xlane.xlu0 %1708  ;;  %v1752_v7 = vmul.f32 1.442695, %v1728_v31 }
 0x2d7   :  { %v1730_v27 = vsub.f32 %v5349_v18, %v1709_v41  ;;  %v946_v54 = vpack.c.bf16 %v5614_v45, %v5609_v50  ;;  %v5622_v59 = vpop.eup %4265  ;;  %v906_v18 = vmul.f32 1.442695, %v876_v20  ;;  %v1329_v41 = vmul.f32 1.442695, %v1298_v63 }
 0x2d8   :  { %v857_v8 = vpop.xlane.xlu1 %856  ;;  %v5626_v19 = vpop.eup %4267 }
 0x2d9   :  { %v1756_v3 = vmul.f32 1.442695, %v1730_v27  ;;  %v875_v14 = vsub.f32 %v5354_v2, %v857_v8  ;;  %3857 = vmatprep.mubr.bf16.mxu0 %v946_v54 }
 0x2da   :  { %v5629_v5 = vpop.eup %4269  ;;  %3858 = vmatmul.mubr.bf16.gmra.mxu0 %v947_v24  ;;  %v2142_v12 = vpop.xlane.xlu0 %2141 }
 0x2db   :  { %v5633_v32 = vpop.eup %4271  ;;  %4279 = vpow2.f32 %v1756_v3  ;;  %v904_v42 = vmul.f32 1.442695, %v875_v14  ;;  %v1367_v2 = vpack.c.bf16 %v5629_v5, %v5622_v59 }
 0x2dc   :  { %4281 = vpow2.f32 %v908_v4  ;;  %v1278_v27 = vpop.xlane.xlu1 %1277  ;;  %v1368_v20 = vpack.c.bf16 %v5626_v19, %v5633_v32  ;;  %v6697_v4 = vld [vmem:[#allocation37_spill] sm:$0xff] }
 0x2dd   :  { %4283 = vpow2.f32 %v904_v42  ;;  %v1296_v43 = vsub.f32 %v5366_v22, %v1278_v27  ;;  %3889 = vmatprep.mubr.bf16.mxu1 %v1367_v2  ;;  %v2162_v63 = vsub.f32 %v6697_v4, %v5559_v60 }
 0x2de   :  { %4285 = vpow2.f32 %v906_v18  ;;  %3890 = vmatmul.mubr.bf16.gmra.mxu1 %v1368_v20  ;;  %v2146_v8 = vpop.xlane.xlu0 %2145 }
 0x2df   :  { %4287 = vpow2.f32 %v1323_v21  ;;  %v1325_v39 = vmul.f32 1.442695, %v1296_v43  ;;  %v2183_v14 = vmul.f32 1.442695, %v2162_v63 }
 0x2e0   :  { %v5641_v46 = vpop.eup %4273  ;;  %4289 = vpow2.f32 %v1329_v41  ;;  %v2140_v54 = vpop.xlane.xlu1 %2139 }
 0x2e1   :  { %4291 = vpow2.f32 %v1325_v39  ;;  %v2164_v24 = vsub.f32 %v5380_v25, %v2140_v54  ;;  %2217 = vadd.xlane.f32.xlu0 %v5641_v46  ;;  %v5648_v18 = vpop.eup %4275 }
 0x2e2   :  { %4293 = vpow2.f32 %v1327_v0  ;;  %v5651_v30 = vpop.eup %4277  ;;  %v1713_v60 = vpop.xlane.xlu0 %1712 }
 0x2e3   :  { %4295 = vpow2.f32 %v1752_v7  ;;  %v2187_v22 = vmul.f32 1.442695, %v2164_v24 }
 0x2e4   :  { %v1707_v3 = vpop.xlane.xlu1 %1706 }
 0x2e5   :  { %4297 = vpow2.f32 %v2187_v22  ;;  %1339 = vadd.xlane.f32.xlu0 %v5576_v16  ;;  %v1729_v11 = vsub.f32 %v5393_v61, %v1707_v3  ;;  %v2165_v61 = vsub.f32 %v5360_v17, %v2142_v12 }
 0x2e6   :  { %4299 = vpow2.f32 %v2183_v14  ;;  %v1717_v39 = vpop.xlane.xlu0 %1716  ;;  %v1732_v14 = vsub.f32 %v5387_v13, %v1713_v60  ;;  %v6698_v60 = vpack.c.bf16 %v5492_v34, %v5445_v49 }
 0x2e7   :  { %v1754_v2 = vmul.f32 1.442695, %v1729_v11  ;;  %v2189_v63 = vmul.f32 1.442695, %v2165_v61 }
 0x2e8   :  { %v5653_v21 = vpop.eup %4279  ;;  %v1711_v25 = vpop.xlane.xlu1 %1710  ;;  %v1760_v13 = vmul.f32 1.442695, %v1732_v14 }
 0x2e9   :  { %v5655_v31 = vpop.eup %4281  ;;  %v1731_v42 = vsub.f32 %v5406_v28, %v1711_v25  ;;  %2213 = vadd.xlane.f32.xlu0 %v5648_v18  ;;  %1788 = vadd.xlane.f32.xlu1 %v5653_v21  ;;  %v2167_v28 = vsub.f32 %v5374_v37, %v2146_v8  ;;  %v1734_v25 = vsub.f32 %v5402_v15, %v1717_v39 }
 0x2ea   :  { %v5660_v16 = vpop.eup %4283  ;;  %v2150_v11 = vpop.xlane.xlu0 %2149 }
 0x2eb   :  { %v5662_v41 = vpop.eup %4285  ;;  %v1758_v27 = vmul.f32 1.442695, %v1731_v42  ;;  %v948_v20 = vpack.c.bf16 %v5660_v16, %v5651_v30  ;;  %v2193_v8 = vmul.f32 1.442695, %v2167_v28  ;;  %v1802_v42 = vpack.c.bf16 %v5602_v9, %v5566_v29 }
 0x2ec   :  { %v5667_v43 = vpop.eup %4287  ;;  %v2144_v0 = vpop.xlane.xlu1 %2143  ;;  %v949_v17 = vpack.c.bf16 %v5655_v31, %v5662_v41  ;;  %v2169_v53 = vsub.f32 %v5413_v35, %v2150_v11  ;;  %v1764_v29 = vmul.f32 1.442695, %v1734_v25  ;;  %v6699_v9 = vpack.c.bf16 %v5500_v40, %v5452_v51 }
 0x2ed   :  { %v5669_v7 = vpop.eup %4289  ;;  %4301 = vpow2.f32 %v1758_v27  ;;  %v2166_v54 = vsub.f32 %v5419_v52, %v2144_v0  ;;  %1345 = vadd.xlane.f32.xlu0 %v5581_v56  ;;  %926 = vadd.xlane.f32.xlu1 %v5609_v50  ;;  %v6700_v51 = vpack.c.bf16 %v5562_v36, %v5549_v47 }
 0x2ee   :  { %v5677_v12 = vpop.eup %4291  ;;  %4303 = vpow2.f32 %v1754_v2  ;;  %3861 = vmatprep.mubr.bf16.mxu0 %v948_v20  ;;  %v2197_v35 = vmul.f32 1.442695, %v2169_v53 }
 0x2ef   :  { %v5679_v4 = vpop.eup %4293  ;;  %v2191_v24 = vmul.f32 1.442695, %v2166_v54  ;;  %3862 = vmatmul.mubr.bf16.gmra.mxu0 %v949_v17  ;;  %v1369_v37 = vpack.c.bf16 %v5677_v12, %v5667_v43 }
 0x2f0   :  { %v4296_v52 = vpop.eup %4295  ;;  %3913 = vmatprep.mubr.bf16.mxu0 %v1800_v1  ;;  %v2148_v56 = vpop.xlane.xlu1 %2147  ;;  %v1370_v50 = vpack.c.bf16 %v5669_v7, %v5679_v4 }
 0x2f1   :  { %4305 = vpow2.f32 %v2191_v24  ;;  %v2168_v22 = vsub.f32 %v5431_v48, %v2148_v56  ;;  %1784 = vadd.xlane.f32.xlu1 %v4296_v52  ;;  %3893 = vmatprep.mubr.bf16.mxu1 %v1369_v37 }
 0x2f2   :  { %v4298_v3 = vpop.eup %4297  ;;  %3894 = vmatmul.mubr.bf16.gmra.mxu1 %v1370_v50  ;;  %4307 = vpow2.f32 %v2189_v63 }
 0x2f3   :  { %3945 = vmatprep.mubr.bf16.mxu1 %v2237_v33  ;;  %2219 = vadd.xlane.f32.xlu0 %v4298_v3  ;;  %v2195_v10 = vmul.f32 1.442695, %v2168_v22  ;;  %4309 = vpow2.f32 %v2193_v8  ;;  %v4300_v48 = vpop.eup %4299  ;;  %v2154_v33 = vpop.xlane.xlu0 %2153  ;;  %v2240_v28 = vpack.c.bf16 %v4298_v3, %v5641_v46 }
 0x2f4   :  { %v1719_v26 = vpop.xlane.xlu1 %1718  ;;  %v2239_v15 = vpack.c.bf16 %v4300_v48, %v5648_v18 }
 0x2f5   :  { %v1735_v1 = vsub.f32 %v5440_v62, %v1719_v26  ;;  %932 = vadd.xlane.f32.xlu1 %v5612_v6  ;;  %4311 = vpow2.f32 %v2195_v10 }
 0x2f6   :  { %4313 = vpow2.f32 %v1760_v13 }
 0x2f7   :  { %3914 = vmatmul.mubr.bf16.vlgmr.msra.gmra.mxu0 %v6698_v60  ;;  %1341 = vadd.xlane.f32.xlu0 %v5584_v55  ;;  %v1766_v23 = vmul.f32 1.442695, %v1735_v1  ;;  %v2171_v55 = vsub.f32 %v5425_v57, %v2154_v33  ;;  %v915_v3 = vpop.xlane.xlu0 %914 }
 0x2f8   :  { %3917 = vmatprep.mubr.bf16.mxu0 %v1802_v42  ;;  %v1715_v62 = vpop.xlane.xlu1 %1714 }
 0x2f9   :  { %v1733_v6 = vsub.f32 %v5449_v44, %v1715_v62  ;;  %4315 = vpow2.f32 %v1766_v23  ;;  %v2201_v0 = vmul.f32 1.442695, %v2171_v55 }
 0x2fa   :  { %v4302_v2 = vpop.eup %4301  ;;  %3946 = vmatmul.mubr.bf16.vlgmr.msra.gmra.mxu1 %v6699_v9 }
 0x2fb   :  { %v4304_v49 = vpop.eup %4303  ;;  %v1762_v34 = vmul.f32 1.442695, %v1733_v6  ;;  %3949 = vmatprep.mubr.bf16.mxu1 %v2239_v15  ;;  %2215 = vadd.xlane.f32.xlu0 %v4300_v48  ;;  %v1805_v36 = vpack.c.bf16 %v4302_v2, %v5653_v21 }
 0x2fc   :  { %1790 = vadd.xlane.f32.xlu1 %v4302_v2  ;;  %v2152_v61 = vpop.xlane.xlu1 %2151  ;;  %v1804_v27 = vpack.c.bf16 %v4304_v49, %v4296_v52 }
 0x2fd   :  { %4317 = vpow2.f32 %v1762_v34  ;;  %v2170_v44 = vsub.f32 %v5456_v38, %v2152_v61 }
 0x2fe   :  { %v4306_v18 = vpop.eup %4305  ;;  %4319 = vpow2.f32 %v1764_v29 }
 0x2ff   :  { %v2199_v20 = vmul.f32 1.442695, %v2170_v44  ;;  %3918 = vmatmul.mubr.bf16.gmra.mxu0 %v6700_v51  ;;  %1351 = vadd.xlane.f32.xlu0 %v5633_v32  ;;  %v4308_v40 = vpop.eup %4307  ;;  %4321 = vpow2.f32 %v2197_v35 }
 0x300   :  { %3921 = vmatprep.mubr.bf16.mxu0 %v1804_v27  ;;  %928 = vadd.xlane.f32.xlu1 %v5614_v45  ;;  %v2156_v57 = vpop.xlane.xlu1 %2155  ;;  %v2241_v39 = vpack.c.bf16 %v4306_v18, %v4308_v40  ;;  %v4310_v54 = vpop.eup %4309 }
 0x301   :  { %4323 = vpow2.f32 %v2199_v20  ;;  %v2172_v38 = vsub.f32 %v5460_v58, %v2156_v57 }
 0x302   :  { %3950 = vmatmul.mubr.bf16.gmra.mxu1 %v2240_v28  ;;  %4325 = vpow2.f32 %v2201_v0  ;;  %v4312_v47 = vpop.eup %4311 }
 0x303   :  { %v2203_v17 = vmul.f32 1.442695, %v2172_v38  ;;  %2225 = vadd.xlane.f32.xlu0 %v4310_v54  ;;  %3953 = vmatprep.mubr.bf16.mxu1 %v2241_v39  ;;  %v4314_v45 = vpop.eup %4313  ;;  %v2242_v32 = vpack.c.bf16 %v4312_v47, %v4310_v54 }
 0x304   :  { %1786 = vadd.xlane.f32.xlu1 %v4304_v49  ;;  %v1336_v8 = vpop.xlane.xlu1 %1335 }
 0x305   :  { %4327 = vpow2.f32 %v2203_v17 }
 0x306   :  { %v4316_v58 = vpop.eup %4315  ;;  %4329 = vrcp.f32 %v915_v3 }
 0x307   :  { %3922 = vmatmul.mubr.bf16.gmra.mxu0 %v1805_v36  ;;  %1347 = vadd.xlane.f32.xlu0 %v5622_v59 }
 0x308   :  { %938 = vadd.xlane.f32.xlu1 %v5662_v41 }
 0x30a   :  { %v4318_v46 = vpop.eup %4317  ;;  %3954 = vmatmul.mubr.bf16.gmra.mxu1 %v2242_v32 }
 0x30b   :  { %v4320_v63 = vpop.eup %4319  ;;  %2221 = vadd.xlane.f32.xlu0 %v4308_v40  ;;  %v1806_v24 = vpack.c.bf16 %v4318_v46, %v4314_v45 }
 0x30c   :  { %1796 = vadd.xlane.f32.xlu1 %v4320_v63  ;;  %v4322_v37 = vpop.eup %4321  ;;  %v1807_v52 = vpack.c.bf16 %v4316_v58, %v4320_v63 }
 0x30d   :  { %3925 = vmatprep.mubr.bf16.mxu0 %v1806_v24 }
 0x30e   :  { %v4324_v56 = vpop.eup %4323 }
 0x30f   :  { %3926 = vmatmul.mubr.bf16.gmra.mxu0 %v1807_v52  ;;  %1353 = vadd.xlane.f32.xlu0 %v5626_v19  ;;  %v2243_v21 = vpack.c.bf16 %v4324_v56, %v4322_v37  ;;  %v4326_v59 = vpop.eup %4325  ;;  %v2206_v19 = vpop.xlane.xlu1 %2205 }
 0x310   :  { %934 = vadd.xlane.f32.xlu1 %v5651_v30 }
 0x311   :  { %3957 = vmatprep.mubr.bf16.mxu1 %v2243_v21 }
 0x312   :  { %v4328_v41 = vpop.eup %4327 }
 0x313   :  { %2227 = vadd.xlane.f32.xlu0 %v4312_v47  ;;  %v2244_v50 = vpack.c.bf16 %v4328_v41, %v4326_v59  ;;  %v4330_v47 = vpop.eup %4329 }
 0x314   :  { %1792 = vadd.xlane.f32.xlu1 %v4314_v45 }
 0x315   :  { %3958 = vmatmul.mubr.bf16.gmra.mxu1 %v2244_v50 }
 0x317   :  { %1349 = vadd.xlane.f32.xlu0 %v5629_v5 }
 0x318   :  { %940 = vadd.xlane.f32.xlu1 %v5655_v31 }
 0x31b   :  { %2223 = vadd.xlane.f32.xlu0 %v4306_v18 }
 0x31c   :  { %936 = vadd.xlane.f32.xlu1 %v5660_v16 }
 0x31f   :  { %1359 = vadd.xlane.f32.xlu0 %v5679_v4  ;;  %v1773_v4 = vpop.xlane.xlu0 %1772 }
 0x320   :  { %1794 = vadd.xlane.f32.xlu1 %v4318_v46  ;;  %4331 = vrcp.f32 %v1773_v4 }
 0x323   :  { %1355 = vadd.xlane.f32.xlu0 %v5667_v43  ;;  %v19_v43 = vstv %s6563_s8  ;;  %v2210_v11 = vpop.xlane.xlu0 %2209 }
 0x324   :  { %1798 = vadd.xlane.f32.xlu1 %v4316_v58  ;;  %v1338_v30 = vpop.xlane.xlu1 %1337  ;;  %20 = vst [vmem:[#allocation2] sm:$0x1] %v19_v43  ;;  %4333 = vrcp.f32 %v2210_v11 }
 0x325   :  { %4335 = vrcp.f32 %v1336_v8 }
 0x326   :  { %4337 = vrcp.f32 %v2206_v19 }
 0x327   :  { %2229 = vadd.xlane.f32.xlu0 %v4322_v37  ;;  %v911_v10 = vpop.xlane.xlu0 %910 }
 0x328   :  { %2235 = vadd.xlane.f32.xlu1 %v4328_v41  ;;  %v1775_v22 = vpop.xlane.xlu1 %1774  ;;  %4339 = vrcp.f32 %v911_v10 }
 0x32b   :  { %1361 = vadd.xlane.f32.xlu0 %v5669_v7  ;;  %v1332_v7 = vpop.xlane.xlu0 %1331 }
 0x32c   :  { %v913_v5 = vpop.xlane.xlu1 %912  ;;  %4341 = vrcp.f32 %v1332_v7 }
 0x32d   :  { %4343 = vrcp.f32 %v1338_v30  ;;  %v5790_v36 = vpop.eup %4331 }
 0x32f   :  { %1357 = vadd.xlane.f32.xlu0 %v5677_v12  ;;  %v3551_v12 = vld [vmem:[#allocation2] ss:$0 sm:$0xff]  ;;  %v1769_v48 = vpop.xlane.xlu0 %1768 }
 0x330   :  { %v1334_v31 = vpop.xlane.xlu1 %1333  ;;  %4345 = vrcp.f32 %v1769_v48 }
 0x331   :  { %4347 = vrcp.f32 %v1775_v22  ;;  %v5796_v58 = vpop.eup %4333 }
 0x332   :  { %v4336_v24 = vpop.eup %4335 }
 0x333   :  { %2231 = vadd.xlane.f32.xlu0 %v4324_v56  ;;  %v917_v42 = vpop.xlane.xlu0 %916  ;;  %v5801_v37 = vpop.eup %4337 }
 0x334   :  { %4349 = vrcp.f32 %v917_v42 }
 0x335   :  { %v1771_v16 = vpop.xlane.xlu1 %1770  ;;  %4351 = vrcp.f32 %v913_v5  ;;  %v4340_v56 = vpop.eup %4339 }
 0x337   :  { %2233 = vadd.xlane.f32.xlu0 %v4326_v59  ;;  %v2212_v60 = vpop.xlane.xlu0 %2211 }
 0x338   :  { %4353 = vrcp.f32 %v2212_v60 }
 0x339   :  { %v5732_v14 = vpop.xlane.xlu1 %922  ;;  %4355 = vrcp.f32 %v1334_v31  ;;  %v4342_v41 = vpop.eup %4341 }
 0x33a   :  { %4357 = vrcp.f32 %v1771_v16  ;;  %v4344_v8 = vpop.eup %4343 }
 0x33b   :  { %v2208_v23 = vpop.xlane.xlu0 %2207 }
 0x33c   :  { %4359 = vrcp.f32 %v2208_v23 }
 0x33d   :  { %v5734_v26 = vpop.xlane.xlu1 %1780  ;;  %4361 = vrcp.f32 %v5732_v14  ;;  %v5816_v30 = vpop.eup %4345 }
 0x33e   :  { %v5821_v5 = vpop.eup %4347 }
 0x33f   :  { %v1344_v33 = vpop.xlane.xlu0 %1343 }
 0x340   :  { %4363 = vrcp.f32 %v1344_v33 }
 0x341   :  { %v5736_v1 = vpop.xlane.xlu1 %918  ;;  %4365 = vrcp.f32 %v5734_v26  ;;  %v4350_v3 = vpop.eup %4349 }
 0x342   :  { %4367 = vrcp.f32 %v5736_v1  ;;  %v4352_v4 = vpop.eup %4351 }
 0x345   :  { %v5738_v25 = vpop.xlane.xlu1 %1776  ;;  %v5830_v14 = vpop.eup %4353 }
 0x346   :  { %4369 = vrcp.f32 %v5738_v25  ;;  %v4356_v10 = vpop.eup %4355 }
 0x347   :  { %v5838_v7 = vpop.eup %4357 }
 0x349   :  { %v5740_v13 = vpop.xlane.xlu1 %924 }
 0x34a   :  { %4371 = vrcp.f32 %v5740_v13 }
 0x34d   :  { %2593 = vperm.xlu0 %4147, %v3551_v12   ;;  %v5742_v53 = vpop.xlane.xlu1 %1782  ;;  %v5843_v12 = vpop.eup %4359 }
 0x34e   :  { %4373 = vrcp.f32 %v5742_v53  ;;  %v4362_v25 = vpop.eup %4361 }
 0x34f   :  { %v4364_v13 = vpop.eup %4363 }
 0x351   :  { %v5744_v62 = vpop.xlane.xlu1 %920 }
 0x352   :  { %4375 = vrcp.f32 %v5744_v62  ;;  %v5854_v62 = vpop.eup %4365 }
 0x355   :  { %v5746_v6 = vpop.xlane.xlu1 %1778 }
 0x356   :  { %4377 = vrcp.f32 %v5746_v6 }
 0x359   :  { %v5750_v2 = vpop.xlane.xlu1 %930  ;;  %v5772_v20 = vpop.f32.mrf.mxu0 }
 0x35a   :  { %4379 = vrcp.f32 %v5750_v2  ;;  %v1065_v60 = vmul.f32 %v4330_v47, %v5772_v20  ;;  %v4368_v2 = vpop.eup %4367 }
 0x35b   :  { %v5780_v57 = vpop.f32.mrf.mxu0 }
 0x35c   :  { %v1063_v53 = vmul.f32 %v4340_v56, %v5780_v57  ;;  %v5868_v57 = vmul.f32 0.25, %v1065_v60 }
 0x35d   :  { %v3852_v54 = vpop.f32.mrf.mxu0 }
 0x35e   :  { %v1066_v33 = vmul.f32 %v4350_v3, %v3852_v54 }
 0x35f   :  { %v987_v46 = vpop.f32.mrf.mxu0 }
 0x36a   :  { %v5748_v15 = vpop.xlane.xlu0 %2217  ;;  %v5776_v40 = vpop.f32.mrf.mxu1 }
 0x36b   :  { %4381 = vrcp.f32 %v5748_v15 }
 0x36c   :  { %v5784_v38 = vpop.f32.mrf.mxu1 }
 0x36d   :  { %v1484_v56 = vmul.f32 %v4342_v41, %v5784_v38  ;;  %v4186_v41 = vld [vmem:[%s6565_s10 + $0x38] sm:$0xff]  }
 0x36e   :  { %v5752_v29 = vpop.xlane.xlu0 %1339  ;;  %v5792_v45 = vpop.f32.mrf.mxu1  ;;  %3993 = vmatprep.subr.bf16.mxu1 %v4186_v41 }
 0x36f   :  { %4383 = vrcp.f32 %v5752_v29  ;;  %v1064_v29 = vmul.f32 %v4352_v4, %v987_v46  ;;  %v4185_v4 = vld [vmem:[%s6564_s9 + $0x38] sm:$0xff]   ;;  %3994 = vmatpush3.bf16.msra.mxu1 %v4186_v41 }
 0x370   :  { %v5806_v21 = vpop.f32.mrf.mxu1  ;;  %3961 = vmatprep.subr.bf16.mxu0 %v4185_v4 }
 0x371   :  { %v5887_v3 = vmul.f32 0.25, %v1064_v29  ;;  %3962 = vmatpush3.bf16.msra.mxu0 %v4185_v4  ;;  %v4187_v29 = vld [vmem:[%s6564_s9 + $0x30] sm:$0xff]  }
 0x372   :  { %v5754_v9 = vpop.xlane.xlu0 %2213  ;;  %v5756_v49 = vpop.xlane.xlu1 %1788  ;;  %3963 = vmatprep.subr.bf16.mxu0 %v4187_v29 }
 0x373   :  { %4385 = vrcp.f32 %v5754_v9 }
 0x375   :  { %3964 = vmatpush3.bf16.msra.mxu0 %v4187_v29 }
 0x376   :  { %v5758_v34 = vpop.xlane.xlu1 %926  ;;  %v5760_v35 = vpop.xlane.xlu0 %1345 }
 0x37a   :  { %v5762_v55 = vpop.xlane.xlu1 %1784 }
 0x37c   :  { %v5764_v61 = vpop.xlane.xlu0 %2219 }
 0x37e   :  { %v5768_v18 = vpop.xlane.xlu1 %932 }
 0x380   :  { %v5766_v44 = vpop.xlane.xlu0 %1341 }
 0x381   :  { %4387 = vrcp.f32 %v5766_v44  ;;  %v5864_v44 = vpop.eup %4369 }
 0x382   :  { %v5803_v52 = vpop.f32.mrf.mxu0  ;;  %4389 = vrcp.f32 %v5760_v35  ;;  %v1486_v35 = vmul.f32 %v4336_v24, %v5776_v40  ;;  %v4372_v20 = vpop.eup %4371  ;;  %v1487_v40 = vmul.f32 %v4344_v8, %v5792_v45 }
 0x383   :  { %4391 = vrcp.f32 %v5756_v49  ;;  %v5870_v49 = vmul.f32 0.25, %v1063_v53  ;;  %v5876_v46 = vpop.eup %4373  ;;  %v1069_v45 = vmul.f32 %v4362_v25, %v5803_v52 }
 0x384   :  { %v5770_v27 = vpop.xlane.xlu0 %2215  ;;  %v5819_v22 = vpop.f32.mrf.mxu0  ;;  %4393 = vrcp.f32 %v5758_v34  ;;  %v5878_v34 = vmul.f32 0.25, %v1066_v33  ;;  %v1502_v38 = vmul.f32 0.25, %v1486_v35 }
 0x385   :  { %v5774_v51 = vpop.xlane.xlu1 %1790  ;;  %v5885_v24 = vpop.eup %4375 }
 0x386   :  { %v5814_v19 = vpop.f32.mrf.mxu1  ;;  %v5833_v11 = vpop.f32.mrf.mxu0 }
 0x387   :  { %v5893_v60 = vpop.eup %4377  ;;  %v1070_v4 = vmul.f32 %v4372_v20, %v5833_v11 }
 0x388   :  { %v5778_v0 = vpop.xlane.xlu0 %1351  ;;  %v5828_v43 = vpop.f32.mrf.mxu1 }
 0x389   :  { %v5782_v28 = vpop.xlane.xlu1 %928  ;;  %v5849_v42 = vpop.f32.mrf.mxu0  ;;  %4395 = vrcp.f32 %v5778_v0 }
 0x38a   :  { %v5846_v48 = vpop.f32.mrf.mxu1  ;;  %v5902_v8 = vpop.eup %4379 }
 0x38b   :  { %v5909_v53 = vpop.eup %4381 }
 0x38c   :  { %v5786_v39 = vpop.xlane.xlu0 %2225  ;;  %v5862_v9 = vpop.f32.mrf.mxu1 }
 0x38d   :  { %v5788_v17 = vpop.xlane.xlu1 %1786  ;;  %v4384_v25 = vpop.eup %4383 }
 0x38e   :  { %v5919_v35 = vpop.eup %4385 }
 0x390   :  { %v5794_v32 = vpop.xlane.xlu0 %1347 }
 0x391   :  { %v5798_v63 = vpop.xlane.xlu1 %938 }
 0x394   :  { %v5808_v59 = vpop.xlane.xlu0 %2221 }
 0x395   :  { %v5811_v50 = vpop.xlane.xlu1 %1796 }
 0x398   :  { %v1354_v31 = vpop.xlane.xlu0 %1353 }
 0x399   :  { %v5825_v16 = vpop.xlane.xlu1 %934  ;;  %4397 = vrcp.f32 %v1354_v31  ;;  %v1485_v31 = vmul.f32 %v4356_v10, %v5806_v21 }
 0x39a   :  { %v5857_v6 = vpop.f32.mrf.mxu0  ;;  %4399 = vrcp.f32 %v5794_v32 }
 0x39b   :  { %v1501_v33 = vmul.f32 0.25, %v1485_v31  ;;  %v4388_v31 = vpop.eup %4387 }
 0x39c   :  { %v5836_v26 = vpop.xlane.xlu0 %2227  ;;  %v5883_v0 = vpop.f32.mrf.mxu0  ;;  %v1489_v20 = vmul.f32 %v4388_v31, %v5862_v9  ;;  %v1086_v9 = vmul.f32 0.25, %v1070_v4  ;;  %v1068_v31 = vmul.f32 %v5885_v24, %v5849_v42  ;;  %v4191_v42 = vld [vmem:[%s6564_s9 + $0x20] sm:$0xff]  }
 0x39d   :  { %v5841_v1 = vpop.xlane.xlu1 %1792  ;;  %v5975_v24 = vadd.f32 %v1501_v33, %v5887_v3 }
 0x39e   :  { %v5872_v54 = vpop.f32.mrf.mxu1  ;;  %v5912_v52 = vpop.f32.mrf.mxu0 }
 0x3a0   :  { %v1350_v23 = vpop.xlane.xlu0 %1349  ;;  %v5905_v21 = vpop.f32.mrf.mxu1 }
 0x3a1   :  { %v5859_v15 = vpop.xlane.xlu1 %940  ;;  %4401 = vrcp.f32 %v1350_v23  ;;  %v1503_v23 = vmul.f32 0.25, %v1487_v40  ;;  %v4188_v40 = vld [vmem:[%s6565_s10 + $0x30] sm:$0xff]  }
 0x3a2   :  { %4403 = vrcp.f32 %v5768_v18  ;;  %v1500_v18 = vmul.f32 0.25, %v1484_v56  ;;  %v1085_v56 = vmul.f32 0.25, %v1069_v45  ;;  %v1488_v45 = vmul.f32 %v4384_v25, %v5828_v43  ;;  %3995 = vmatprep.subr.bf16.mxu1 %v4188_v40  ;;  %v4189_v43 = vld [vmem:[%s6564_s9 + $0x28] sm:$0xff]  }
 0x3a3   :  { %4405 = vrcp.f32 %v5762_v55  ;;  %v1067_v55 = vmul.f32 %v4368_v2, %v5819_v22  ;;  %v4390_v2 = vpop.eup %4389  ;;  %3996 = vmatpush3.bf16.msra.mxu1 %v4188_v40  ;;  %3965 = vmatprep.subr.bf16.mxu0 %v4189_v43 }
 0x3a4   :  { %v5874_v47 = vpop.xlane.xlu0 %2223  ;;  %4407 = vrcp.f32 %v5782_v28  ;;  %v1490_v28 = vmul.f32 %v4364_v13, %v5814_v19  ;;  %v5932_v19 = vpop.f32.mrf.mxu0  ;;  %v1491_v41 = vmul.f32 %v4390_v2, %v5846_v48  ;;  %v5951_v48 = vadd.f32 %v1502_v38, %v5868_v57  ;;  %3966 = vmatpush3.bf16.msra.mxu0 %v4189_v43 }
 0x3a5   :  { %v5897_v32 = vpop.xlane.xlu1 %936  ;;  %4409 = vrcp.f32 %v5764_v61  ;;  %v3892_v61 = vpop.f32.mrf.mxu1  ;;  %v5954_v29 = vadd.f32 %v1500_v18, %v5870_v49  ;;  %v1504_v2 = vmul.f32 0.25, %v1488_v45  ;;  %v5965_v49 = vadd.f32 %v1503_v23, %v5878_v34  ;;  %3967 = vmatprep.subr.bf16.mxu0 %v4191_v42 }
 0x3a6   :  { %4411 = vrcp.f32 %v5798_v63  ;;  %v5936_v13 = vpop.eup %4391  ;;  %v1505_v34 = vmul.f32 0.25, %v1489_v20 }
 0x3a7   :  { %4413 = vrcp.f32 %v5770_v27  ;;  %6701 = vst [vmem:[#allocation18_spill] sm:$0xff] %v5936_v13  ;;  %v1083_v27 = vmul.f32 0.25, %v1067_v55  ;;  %v4394_v11 = vpop.eup %4393  ;;  %v4190_v55 = vld [vmem:[%s6565_s10 + $0x28] sm:$0xff]  }
 0x3a8   :  { %v5907_v10 = vpop.xlane.xlu0 %1359  ;;  %4415 = vrcp.f32 %v5825_v16  ;;  %v1506_v16 = vmul.f32 0.25, %v1490_v28  ;;  %v1440_v28 = vpop.f32.mrf.mxu1  ;;  %3997 = vmatprep.subr.bf16.mxu1 %v4190_v55  ;;  %v1071_v20 = vmul.f32 %v4394_v11, %v5883_v0  ;;  %3968 = vmatpush3.bf16.msra.mxu0 %v4191_v42  ;;  %v4193_v0 = vld [vmem:[%s6564_s9 + $0x18] sm:$0xff]  }
 0x3a9   :  { %v5934_v63 = vpop.xlane.xlu1 %1794  ;;  %4417 = vrcp.f32 %v5774_v51  ;;  %v4396_v51 = vpop.eup %4395  ;;  %3998 = vmatpush3.bf16.msra.mxu1 %v4190_v55  ;;  %3969 = vmatprep.subr.bf16.mxu0 %v4193_v0 }
 0x3aa   :  { %4419 = vrcp.f32 %v5786_v39  ;;  %v4398_v39 = vpop.eup %4397  ;;  %v1494_v38 = vmul.f32 %v4396_v51, %v5872_v54  ;;  %v5977_v4 = vadd.f32 %v1506_v16, %v1085_v56  ;;  %v4192_v54 = vld [vmem:[%s6565_s10 + $0x20] sm:$0xff]   ;;  %v1084_v16 = vmul.f32 0.25, %v1068_v31 }
 0x3ab   :  { %4421 = vrcp.f32 %v5788_v17  ;;  %v4400_v57 = vpop.eup %4399  ;;  %v1507_v17 = vmul.f32 0.25, %v1491_v41  ;;  %v1073_v41 = vmul.f32 %v5902_v8, %v5857_v6  ;;  %v1495_v33 = vmul.f32 %v4398_v39, %v3892_v61  ;;  %3999 = vmatprep.subr.bf16.mxu1 %v4192_v54 }
 0x3ac   :  { %v5927_v22 = vpop.xlane.xlu0 %1355  ;;  %4423 = vrcp.f32 %v5859_v15  ;;  %v1492_v3 = vmul.f32 %v4400_v57, %v5905_v21  ;;  %v6000_v8 = vadd.f32 %v1504_v2, %v1083_v27  ;;  %v1510_v21 = vmul.f32 0.25, %v1494_v38  ;;  %3970 = vmatpush3.bf16.msra.mxu0 %v4193_v0 }
 0x3ad   :  { %4425 = vrcp.f32 %v5808_v59  ;;  %v1799_v23 = vpop.xlane.xlu1 %1798  ;;  %4000 = vmatpush3.bf16.msra.mxu1 %v4192_v54  ;;  %v6012_v11 = vadd.f32 %v1505_v34, %v1084_v16  ;;  %v1089_v31 = vmul.f32 0.25, %v1073_v41  ;;  %v1511_v57 = vmul.f32 0.25, %v1495_v33 }
 0x3ae   :  { %v4402_v15 = vpop.eup %4401  ;;  %4427 = vrcp.f32 %v5811_v50  ;;  %v1508_v2 = vmul.f32 0.25, %v1492_v3 }
 0x3af   :  { %v5945_v25 = vpop.f32.mrf.mxu0  ;;  %v4404_v45 = vpop.eup %4403  ;;  %4429 = vrcp.f32 %v5836_v26  ;;  %v1493_v61 = vmul.f32 %v4402_v15, %v1440_v28  ;;  %v6026_v54 = vadd.f32 %v1510_v21, %v1089_v31 }
 0x3b0   :  { %v5957_v40 = vpop.xlane.xlu0 %2229  ;;  %v5993_v50 = vpop.eup %4405  ;;  %v1074_v55 = vmul.f32 %v4404_v45, %v5912_v52  ;;  %4431 = vrcp.f32 %v5897_v32  ;;  %v6010_v32 = vadd.f32 %v1507_v17, %v1086_v9  ;;  %v1087_v17 = vmul.f32 0.25, %v1071_v20 }
 0x3b1   :  { %v5962_v13 = vpop.f32.mrf.mxu0  ;;  %v4408_v26 = vpop.eup %4407  ;;  %4433 = vrcp.f32 %v5907_v10  ;;  %v4194_v10 = vld [vmem:[%s6565_s10 + $0x18] sm:$0xff]  }
 0x3b2   :  { %v5969_v18 = vpop.f32.mrf.mxu1  ;;  %v6008_v52 = vpop.eup %4409  ;;  %v1072_v27 = vmul.f32 %v4408_v26, %v5932_v19  ;;  %4435 = vrcp.f32 %v5927_v22  ;;  %v1090_v19 = vmul.f32 0.25, %v1074_v55  ;;  %4001 = vmatprep.subr.bf16.mxu1 %v4194_v10  ;;  %v6042_v26 = vadd.f32 %v1508_v2, %v1087_v17 }
 0x3b3   :  { %v5980_v59 = vpop.f32.mrf.mxu0  ;;  %v4412_v39 = vpop.eup %4411  ;;  %4437 = vrcp.f32 %v5841_v1  ;;  %v1509_v1 = vmul.f32 0.25, %v1493_v61  ;;  %4002 = vmatpush3.bf16.msra.mxu1 %v4194_v10 }
 0x3b4   :  { %v5989_v56 = vpop.xlane.xlu0 %1361  ;;  %v5991_v43 = vpop.f32.mrf.mxu1  ;;  %4439 = vrcp.f32 %v5874_v47  ;;  %v1077_v22 = vmul.f32 %v4412_v39, %v5945_v25  ;;  %v4195_v47 = vld [vmem:[%s6564_s9 + $0x10] sm:$0xff]   ;;  %v1088_v33 = vmul.f32 0.25, %v1072_v27  ;;  %v6044_v21 = vadd.f32 %v1511_v57, %v1090_v19  ;;  %v4197_v57 = vld [vmem:[%s6564_s9 + $0x8] sm:$0xff]  }
 0x3b5   :  { %v5998_v6 = vpop.f32.mrf.mxu0  ;;  %v6022_v9 = vpop.eup %4413  ;;  %4441 = vrcp.f32 %v5934_v63  ;;  %3971 = vmatprep.subr.bf16.mxu0 %v4195_v47 }
 0x3b6   :  { %v6003_v51 = vpop.f32.mrf.mxu1  ;;  %v2236_v42 = vpop.xlane.xlu1 %2235  ;;  %4443 = vrcp.f32 %v1799_v23  ;;  %3972 = vmatpush3.bf16.msra.mxu0 %v4195_v47  ;;  %v6054_v39 = vadd.f32 %v1509_v1, %v1088_v33 }
 0x3b7   :  { %v3915_v28 = vpop.f32.mrf.mxu0  ;;  %v4416_v34 = vpop.eup %4415  ;;  %4445 = vrcp.f32 %v5957_v40  ;;  %3973 = vmatprep.subr.bf16.mxu0 %v4197_v57 }
 0x3b8   :  { %v6020_v38 = vpop.f32.mrf.mxu1  ;;  %v1358_v41 = vpop.xlane.xlu0 %1357  ;;  %v1075_v16 = vmul.f32 %v4416_v34, %v5962_v13  ;;  %v1923_v20 = vmul.f32 %v5790_v36, %v3915_v28  ;;  %v6050_v36 = vmul.f32 0.25, %v1077_v22  ;;  %4447 = vrcp.f32 %v2236_v42  ;;  %v4200_v34 = vld [vmem:[%s6565_s10] sm:$0xff]  }
 0x3b9   :  { %v1842_v15 = vpop.f32.mrf.mxu0  ;;  %v6033_v25 = vpop.eup %4417  ;;  %4449 = vrcp.f32 %v5989_v56 }
 0x3ba   :  { %v1921_v45 = vmul.f32 %v5816_v30, %v1842_v15  ;;  %v3947_v3 = vpop.f32.mrf.mxu1  ;;  %v4196_v30 = vld [vmem:[%s6565_s10 + $0x10] sm:$0xff]   ;;  %v6040_v63 = vpop.eup %4419  ;;  %v6068_v19 = vmul.f32 0.25, %v1075_v16  ;;  %v1939_v22 = vmul.f32 0.25, %v1923_v20  ;;  %4451 = vrcp.f32 %v1358_v41  ;;  %3974 = vmatpush3.bf16.msra.mxu0 %v4197_v57 }
 0x3bb   :  { %v3916_v55 = vpop.f32.mrf.mxu0  ;;  %v6048_v13 = vpop.eup %4421  ;;  %v2360_v0 = vmul.f32 %v5796_v58, %v3947_v3  ;;  %4003 = vmatprep.subr.bf16.mxu1 %v4196_v30  ;;  %v4198_v58 = vld [vmem:[%s6565_s10 + $0x8] sm:$0xff]  }
 0x3bc   :  { %v1924_v61 = vmul.f32 %v5821_v5, %v3916_v55  ;;  %v2279_v23 = vpop.f32.mrf.mxu1  ;;  %v4424_v10 = vpop.eup %4423  ;;  %v1937_v40 = vmul.f32 0.25, %v1921_v45  ;;  %4004 = vmatpush3.bf16.msra.mxu1 %v4196_v30 }
 0x3bd   :  { %v1845_v27 = vpop.f32.mrf.mxu0  ;;  %v2358_v28 = vmul.f32 %v5801_v37, %v2279_v23  ;;  %v4199_v37 = vld [vmem:[%s6564_s9] sm:$0xff]   ;;  %v6066_v17 = vpop.eup %4425  ;;  %4005 = vmatprep.subr.bf16.mxu1 %v4198_v58  ;;  %v2376_v20 = vmul.f32 0.25, %v2360_v0 }
 0x3be   :  { %v1940_v31 = vmul.f32 0.25, %v1924_v61  ;;  %v1922_v5 = vmul.f32 %v5838_v7, %v1845_v27  ;;  %v3948_v2 = vpop.f32.mrf.mxu1  ;;  %v1078_v7 = vmul.f32 %v4424_v10, %v5980_v59  ;;  %v6075_v1 = vpop.eup %4427  ;;  %v1953_v56 = vadd.f32 %v1937_v40, %v5954_v29  ;;  %3975 = vmatprep.subr.bf16.mxu0 %v4199_v37 }
 0x3bf   :  { %v3919_v42 = vpop.f32.mrf.mxu0  ;;  %v2361_v15 = vmul.f32 %v5830_v14, %v3948_v2  ;;  %v6078_v3 = vpop.xlane.xlu0 %2231  ;;  %v2374_v47 = vmul.f32 0.25, %v2358_v28  ;;  %3976 = vmatpush3.bf16.msra.mxu0 %v4199_v37 }
 0x3c0   :  { %v1938_v45 = vmul.f32 0.25, %v1922_v5  ;;  %v1927_v33 = vmul.f32 %v5854_v62, %v3919_v42  ;;  %v2282_v16 = vpop.f32.mrf.mxu1  ;;  %v6081_v59 = vpop.eup %4429  ;;  %v1956_v14 = vadd.f32 %v1940_v31, %v5965_v49  ;;  %4006 = vmatpush3.bf16.msra.mxu1 %v4198_v58  ;;  %v1955_v49 = vadd.f32 %v1939_v22, %v5951_v48 }
 0x3c1   :  { %v2377_v55 = vmul.f32 0.25, %v2361_v15  ;;  %v1858_v30 = vpop.f32.mrf.mxu0  ;;  %v4432_v61 = vpop.eup %4431  ;;  %v2359_v62 = vmul.f32 %v5843_v12, %v2282_v16  ;;  %4007 = vmatprep.subr.bf16.mxu1 %v4200_v34  ;;  %v2390_v40 = vadd.f32 %v2374_v47, %v1953_v56 }
 0x3c2   :  { %v1943_v23 = vmul.f32 0.25, %v1927_v33  ;;  %v1925_v27 = vmul.f32 %v5864_v44, %v1858_v30  ;;  %v3951_v28 = vpop.f32.mrf.mxu1  ;;  %v4434_v10 = vpop.eup %4433  ;;  %v1076_v41 = vmul.f32 %v4432_v61, %v5998_v6  ;;  %v1954_v29 = vadd.f32 %v1938_v45, %v5975_v24  ;;  %v6102_v24 = vld [vmem:[%s6566_s5] ss:$0 sm:$0xff] }
 0x3c3   :  { %v2393_v0 = vadd.f32 %v2377_v55, %v1956_v14  ;;  %v3920_v31 = vpop.f32.mrf.mxu0  ;;  %v2364_v5 = vmul.f32 %v5909_v53, %v3951_v28  ;;  %v4436_v2 = vpop.eup %4435  ;;  %v2375_v57 = vmul.f32 0.25, %v2359_v62  ;;  %v2392_v58 = vadd.f32 %v2376_v20, %v1955_v49 }
 0x3c4   :  { %v1941_v44 = vmul.f32 0.25, %v1925_v27  ;;  %v2295_v12 = vpop.f32.mrf.mxu1  ;;  %v6091_v42 = vpop.eup %4437  ;;  %v1959_v15 = vadd.f32 %v1943_v23, %v5977_v4  ;;  %v6097_v53 = vmul.f32 0.25, %v1078_v7  ;;  %v1928_v16 = vmul.f32 %v5876_v46, %v3920_v31  ;;  %4008 = vmatpush3.bf16.msra.mxu1 %v4200_v34 }
 0x3c5   :  { %v2380_v6 = vmul.f32 0.25, %v2364_v5  ;;  %v1861_v33 = vpop.f32.mrf.mxu0  ;;  %v2362_v48 = vmul.f32 %v5919_v35, %v2295_v12  ;;  %v6095_v22 = vpop.eup %4439  ;;  %v2391_v47 = vadd.f32 %v2375_v57, %v1954_v29  ;;  %v6702_v20 = vmov 0.0  }
 0x3c6   :  { %v2234_v45 = vpop.xlane.xlu0 %2233  ;;  %v1926_v4 = vmul.f32 %v5893_v60, %v1861_v33  ;;  %v3952_v14 = vpop.f32.mrf.mxu1  ;;  %4025 = vmatprep.subr.bf16.mxu0 %v6702_v20  ;;  %v1498_v37 = vmul.f32 %v4434_v10, %v5969_v18  ;;  %v1496_v7 = vmul.f32 %v4436_v2, %v5991_v43  ;;  %v6114_v23 = vadd.f32 %v6102_v24, %v2390_v40 }
 0x3c7   :  { %v6107_v35 = vpop.eup %4441  ;;  %v2396_v55 = vadd.f32 %v2380_v6, %v1959_v15  ;;  %v2378_v30 = vmul.f32 0.25, %v2362_v48  ;;  %v3923_v61 = vpop.f32.mrf.mxu0  ;;  %v1957_v46 = vadd.f32 %v1941_v44, %v6000_v8  ;;  %v6118_v60 = vadd.f32 %v6102_v24, %v2391_v47  ;;  %v6703_v15 = vld [vmem:[#allocation18_spill] sm:$0xff] }
 0x3c8   :  { %v6111_v56 = vpop.eup %4443  ;;  %v1942_v34 = vmul.f32 0.25, %v1926_v4  ;;  %v2298_v27 = vpop.f32.mrf.mxu1  ;;  %v6122_v18 = vmul.f32 0.25, %v1076_v41  ;;  %v6125_v43 = vadd.f32 %v6102_v24, %v2392_v58  ;;  %4453 = vrcp.f32 %v2234_v45 }
 0x3c9   :  { %v6120_v62 = vpop.eup %4445  ;;  %v2365_v28 = vmul.f32 %v6008_v52, %v3952_v14  ;;  %v1874_v10 = vpop.f32.mrf.mxu0  ;;  %v2429_v8 = vadd.f32 %v6118_v60, %v6114_v23  ;;  %v1944_v31 = vmul.f32 0.25, %v1928_v16  ;;  %v2394_v5 = vadd.f32 %v2378_v30, %v1957_v46 }
 0x3ca   :  { %v6128_v49 = vpop.eup %4447  ;;  %v1929_v2 = vmul.f32 %v5993_v50, %v1874_v10  ;;  %v3955_v29 = vpop.f32.mrf.mxu1  ;;  %v6133_v40 = vmul.f32 0.25, %v1498_v37  ;;  %v1512_v41 = vmul.f32 0.25, %v1496_v7  ;;  %4455 = vrcp.f32 %v6078_v3 }
 0x3cb   :  { %v2363_v44 = vmul.f32 %v6022_v9, %v2298_v27  ;;  %v3924_v57 = vpop.f32.mrf.mxu0  ;;  %v6138_v52 = vadd.f32 %v6102_v24, %v2393_v0  ;;  %v2430_v12 = vadd.f32 %v2429_v8, %v6125_v43  ;;  %v1958_v58 = vadd.f32 %v1942_v34, %v6012_v11  ;;  %v4450_v50 = vpop.eup %4449 }
 0x3cc   :  { %v1931_v6 = vmul.f32 %v6703_v15, %v3923_v61  ;;  %v2311_v33 = vpop.f32.mrf.mxu1  ;;  %v2381_v48 = vmul.f32 0.25, %v2365_v28  ;;  %v1945_v45 = vmul.f32 0.25, %v1929_v2  ;;  %v4452_v4 = vpop.eup %4451  ;;  %v1960_v9 = vadd.f32 %v1944_v31, %v6010_v32 }
 0x3cd   :  { %v2379_v47 = vmul.f32 0.25, %v2363_v44  ;;  %v1877_v16 = vpop.f32.mrf.mxu0  ;;  %v2366_v3 = vmul.f32 %v6066_v17, %v2311_v33  ;;  %v6146_v0 = vadd.f32 %v6102_v24, %v2394_v5  ;;  %v2431_v14 = vadd.f32 %v2430_v12, %v6138_v52 }
 0x3ce   :  { %v1930_v11 = vmul.f32 %v6048_v13, %v1877_v16  ;;  %v3956_v37 = vpop.f32.mrf.mxu1  ;;  %v1932_v30 = vmul.f32 %v6033_v25, %v3924_v57  ;;  %v2368_v61 = vmul.f32 %v6040_v63, %v3955_v29  ;;  %v1528_v17 = vadd.f32 %v1512_v41, %v6068_v19 }
 0x3cf   :  { %v2395_v7 = vadd.f32 %v2379_v47, %v1958_v58  ;;  %v2382_v46 = vmul.f32 0.25, %v2366_v3  ;;  %v3927_v34 = vpop.f32.mrf.mxu0  ;;  %v2432_v27 = vadd.f32 %v2431_v14, %v6146_v0  ;;  %v1947_v32 = vmul.f32 0.25, %v1931_v6 }
 0x3d0   :  { %v1946_v28 = vmul.f32 0.25, %v1930_v11  ;;  %v2314_v10 = vpop.f32.mrf.mxu1  ;;  %v2397_v8 = vadd.f32 %v2381_v48, %v1960_v9  ;;  %v1961_v31 = vadd.f32 %v1945_v45, %v6042_v26  ;;  %v2369_v5 = vmul.f32 %v6081_v59, %v3956_v37 }
 0x3d1   :  { %v6156_v13 = vadd.f32 %v6102_v24, %v2395_v7  ;;  %v1890_v25 = vpop.f32.mrf.mxu0  ;;  %v1497_v63 = vmul.f32 %v4452_v4, %v6020_v38  ;;  %v6161_v2 = vadd.f32 %v6102_v24, %v2396_v55  ;;  %v2367_v29 = vmul.f32 %v6095_v22, %v2314_v10 }
 0x3d2   :  { %v1933_v19 = vmul.f32 %v6091_v42, %v1890_v25  ;;  %v1948_v44 = vmul.f32 0.25, %v1932_v30  ;;  %v2384_v57 = vmul.f32 0.25, %v2368_v61  ;;  %v2398_v26 = vadd.f32 %v2382_v46, %v1961_v31 }
 0x3d3   :  { %v2433_v41 = vadd.f32 %v2432_v27, %v6156_v13  ;;  %v3928_v12 = vpop.f32.mrf.mxu0  ;;  %v1499_v58 = vmul.f32 %v4450_v50, %v6003_v51  ;;  %v1963_v59 = vadd.f32 %v1947_v32, %v6026_v54  ;;  %v1962_v15 = vadd.f32 %v1946_v28, %v6054_v39 }
 0x3d4   :  { %v2383_v38 = vmul.f32 0.25, %v2367_v29  ;;  %v6170_v55 = vadd.f32 %v6102_v24, %v2397_v8  ;;  %v1935_v22 = vmul.f32 %v6075_v1, %v3927_v34  ;;  %v2385_v6 = vmul.f32 0.25, %v2369_v5 }
 0x3d5   :  { %v2434_v42 = vadd.f32 %v2433_v41, %v6161_v2  ;;  %v1893_v33 = vpop.f32.mrf.mxu0  ;;  %v3959_v48 = vpop.f32.mrf.mxu1  ;;  %v1513_v47 = vmul.f32 0.25, %v1497_v63  ;;  %v1949_v16 = vmul.f32 0.25, %v1933_v19  ;;  %v1964_v54 = vadd.f32 %v1948_v44, %v6044_v21 }
 0x3d6   :  { %v4454_v45 = vpop.eup %4453  ;;  %v2399_v3 = vadd.f32 %v2383_v38, %v1962_v15  ;;  %v1934_v51 = vmul.f32 %v6107_v35, %v1893_v33  ;;  %v2400_v39 = vadd.f32 %v2384_v57, %v1963_v59  ;;  %v6177_v50 = vadd.f32 %v6102_v24, %v2398_v26 }
 0x3d7   :  { %v2435_v4 = vadd.f32 %v2434_v42, %v6170_v55  ;;  %v2327_v9 = vpop.f32.mrf.mxu1  ;;  %v4456_v14 = vpop.eup %4455  ;;  %v1936_v11 = vmul.f32 %v6111_v56, %v3928_v12  ;;  %v2372_v37 = vmul.f32 %v4454_v45, %v3959_v48  ;;  %v1515_v30 = vmul.f32 0.25, %v1499_v58 }
 0x3d8   :  { %v6181_v1 = vadd.f32 %v6102_v24, %v2399_v3  ;;  %v2370_v7 = vmul.f32 %v6120_v62, %v2327_v9  ;;  %v1951_v21 = vmul.f32 0.25, %v1935_v22  ;;  %v2401_v61 = vadd.f32 %v2385_v6, %v1964_v54 }
 0x3d9   :  { %v2436_v35 = vadd.f32 %v2435_v4, %v6177_v50  ;;  %v3960_v46 = vpop.f32.mrf.mxu1  ;;  %v1965_v34 = vadd.f32 %v1949_v16, %v1528_v17  ;;  %v1950_v27 = vmul.f32 0.25, %v1934_v51  ;;  %v1530_v10 = vadd.f32 %v6133_v40, %v6050_v36 }
 0x3da   :  { %v2386_v32 = vmul.f32 0.25, %v2370_v7  ;;  %v2373_v28 = vmul.f32 %v6128_v49, %v3960_v46  ;;  %v1529_v8 = vadd.f32 %v1513_v47, %v6122_v18  ;;  %v2423_v56 = vadd.f32 %v6102_v24, %v2400_v39 }
 0x3db   :  { %v2437_v62 = vadd.f32 %v2436_v35, %v6181_v1  ;;  %v2330_v31 = vpop.f32.mrf.mxu1  ;;  %v1952_v5 = vmul.f32 0.25, %v1936_v11  ;;  %v2388_v25 = vmul.f32 0.25, %v2372_v37  ;;  %v1531_v17 = vadd.f32 %v1515_v30, %v6097_v53 }
 0x3dc   :  { %v2402_v63 = vadd.f32 %v2386_v32, %v1965_v34  ;;  %v2371_v19 = vmul.f32 %v4456_v14, %v2330_v31  ;;  %v1967_v29 = vadd.f32 %v1951_v21, %v1530_v10  ;;  %v2424_v41 = vadd.f32 %v6102_v24, %v2401_v61 }
 0x3dd   :  { %v2438_v49 = vadd.f32 %v2437_v62, %v2423_v56  ;;  %v1966_v44 = vadd.f32 %v1950_v27, %v1529_v8  ;;  %v2389_v40 = vmul.f32 0.25, %v2373_v28  ;;  %v1968_v26 = vadd.f32 %v1952_v5, %v1531_v17 }
 0x3de   :  { %v2425_v36 = vadd.f32 %v6102_v24, %v2402_v63  ;;  %v2387_v18 = vmul.f32 0.25, %v2371_v19  ;;  %v2404_v12 = vadd.f32 %v2388_v25, %v1967_v29 }
 0x3df   :  { %v2439_v57 = vadd.f32 %v2438_v49, %v2424_v41  ;;  %v2405_v15 = vadd.f32 %v2389_v40, %v1968_v26 }
 0x3e0   :  { %v2403_v58 = vadd.f32 %v2387_v18, %v1966_v44  ;;  %v2427_v42 = vadd.f32 %v6102_v24, %v2404_v12 }
 0x3e1   :  { %v2440_v59 = vadd.f32 %v2439_v57, %v2425_v36  ;;  %v2428_v22 = vadd.f32 %v6102_v24, %v2405_v15 }
 0x3e2   :  { %v2426_v38 = vadd.f32 %v6102_v24, %v2403_v58 }
 0x3e4   :  { %v2441_v53 = vadd.f32 %v2440_v59, %v2426_v38 }
 0x3e6   :  { %v2442_v6 = vadd.f32 %v2441_v53, %v2427_v42 }
 0x3e8   :  { %v2443_v33 = vadd.f32 %v2442_v6, %v2428_v22 }
 0x3ea   :  { %v2444_v48 = vrot.slane %v2443_v33, 4 }
 0x3ec   :  { %v2445_v45 = vadd.f32 %v2444_v48, %v2443_v33 }
 0x3ee   :  { %v2446_v47 = vrot.slane %v2445_v45, 2 }
 0x3f0   :  { %v2447_v16 = vadd.f32 %v2446_v47, %v2445_v45 }
 0x3f2   :  { %v2448_v3 = vrot.slane %v2447_v16, 1 }
 0x3f4   :  { %v2449_v51 = vadd.f32 %v2448_v3, %v2447_v16 }
 0x3f6   :  { %v2451_v54 = vmul.f32 0.0078125, %v2449_v51  ;;  %v6258_v51 = vld [vmem:[%s6568_s7] ss:$0 sm:$0xff] }
 0x3f8   :  { %v2452_v39 = vsub.f32 %v6114_v23, %v2451_v54  ;;  %v2453_v4 = vsub.f32 %v6118_v60, %v2451_v54  ;;  %v6201_v9 = vsub.f32 %v6138_v52, %v2451_v54  ;;  %v6204_v14 = vsub.f32 %v6161_v2, %v2451_v54 }
 0x3f9   :  { %v2454_v24 = vsub.f32 %v6125_v43, %v2451_v54  ;;  %v2456_v7 = vsub.f32 %v6146_v0, %v2451_v54  ;;  %v6209_v21 = vsub.f32 %v6156_v13, %v2451_v54  ;;  %v6214_v2 = vsub.f32 %v6170_v55, %v2451_v54 }
 0x3fa   :  { %v2468_v11 = vmul.f32 %v2452_v39, %v2452_v39  ;;  %v2469_v37 = vmul.f32 %v2453_v4, %v2453_v4  ;;  %v2471_v23 = vmul.f32 %v6201_v9, %v6201_v9  ;;  %v6219_v0 = vsub.f32 %v6177_v50, %v2451_v54 }
 0x3fb   :  { %v2470_v30 = vmul.f32 %v2454_v24, %v2454_v24  ;;  %v2472_v52 = vmul.f32 %v2456_v7, %v2456_v7  ;;  %v2473_v43 = vmul.f32 %v6209_v21, %v6209_v21  ;;  %v2474_v13 = vmul.f32 %v6204_v14, %v6204_v14 }
 0x3fc   :  { %v2484_v35 = vadd.f32 %v2469_v37, %v2468_v11  ;;  %v6224_v27 = vsub.f32 %v6181_v1, %v2451_v54  ;;  %v2475_v32 = vmul.f32 %v6214_v2, %v6214_v2  ;;  %v6228_v55 = vsub.f32 %v2423_v56, %v2451_v54 }
 0x3fd   :  { %v2476_v10 = vmul.f32 %v6219_v0, %v6219_v0  ;;  %v6232_v62 = vsub.f32 %v2424_v41, %v2451_v54  ;;  %v6236_v5 = vsub.f32 %v2425_v36, %v2451_v54  ;;  %v2465_v63 = vsub.f32 %v2426_v38, %v2451_v54 }
 0x3fe   :  { %v2485_v60 = vadd.f32 %v2484_v35, %v2470_v30  ;;  %v2477_v50 = vmul.f32 %v6224_v27, %v6224_v27  ;;  %v2478_v1 = vmul.f32 %v6228_v55, %v6228_v55  ;;  %v2466_v17 = vsub.f32 %v2427_v42, %v2451_v54 }
 0x3ff   :  { %v2479_v56 = vmul.f32 %v6232_v62, %v6232_v62  ;;  %v2480_v29 = vmul.f32 %v6236_v5, %v6236_v5  ;;  %v2467_v49 = vsub.f32 %v2428_v22, %v2451_v54  ;;  %v2481_v44 = vmul.f32 %v2465_v63, %v2465_v63  ;;  %v6249_v22 = vld [vmem:[%s6567_s6] ss:$0 sm:$0xff] }
 0x400   :  { %v2486_v61 = vadd.f32 %v2485_v60, %v2471_v23  ;;  %v2482_v18 = vmul.f32 %v2466_v17, %v2466_v17  ;;  %v6269_v23 = vpop.permute.xlu0 %2593 }
 0x401   :  { %v2483_v57 = vmul.f32 %v2467_v49, %v2467_v49 }
 0x402   :  { %v2487_v46 = vadd.f32 %v2486_v61, %v2472_v52 }
 0x404   :  { %v2488_v34 = vadd.f32 %v2487_v46, %v2473_v43 }
 0x406   :  { %v2489_v28 = vadd.f32 %v2488_v34, %v2474_v13 }
 0x408   :  { %v2490_v8 = vadd.f32 %v2489_v28, %v2475_v32 }
 0x40a   :  { %v2491_v31 = vadd.f32 %v2490_v8, %v2476_v10 }
 0x40c   :  { %v2492_v25 = vadd.f32 %v2491_v31, %v2477_v50 }
 0x40e   :  { %v2493_v19 = vadd.f32 %v2492_v25, %v2478_v1 }
 0x410   :  { %v2494_v41 = vadd.f32 %v2493_v19, %v2479_v56 }
 0x412   :  { %v2495_v40 = vadd.f32 %v2494_v41, %v2480_v29 }
 0x414   :  { %v2496_v36 = vadd.f32 %v2495_v40, %v2481_v44 }
 0x416   :  { %v2497_v26 = vadd.f32 %v2496_v36, %v2482_v18 }
 0x418   :  { %v2498_v12 = vadd.f32 %v2497_v26, %v2483_v57 }
 0x41a   :  { %v2499_v58 = vrot.slane %v2498_v12, 4 }
 0x41c   :  { %v2500_v59 = vadd.f32 %v2499_v58, %v2498_v12 }
 0x41e   :  { %v2501_v15 = vrot.slane %v2500_v59, 2 }
 0x420   :  { %v2502_v38 = vadd.f32 %v2501_v15, %v2500_v59 }
 0x422   :  { %v2503_v53 = vrot.slane %v2502_v38, 1 }
 0x424   :  { %v2504_v6 = vadd.f32 %v2503_v53, %v2502_v38 }
 0x426   :  { %v2505_v33 = vmul.f32 0.0078125, %v2504_v6 }
 0x428   :  { %v2506_v42 = vadd.f32 1e-05, %v2505_v33 }
 0x42a   :  { %4457 = vrsqrt.f32 %v2506_v42 }
 0x437   :  { %v6244_v48 = vpop.eup %4457 }
 0x438   :  { %v2521_v45 = vmul.f32 %v6244_v48, %v2465_v63  ;;  %v2508_v47 = vmul.f32 %v6244_v48, %v2452_v39  ;;  %v2509_v16 = vmul.f32 %v6244_v48, %v2453_v4  ;;  %v2510_v3 = vmul.f32 %v6244_v48, %v2454_v24 }
 0x439   :  { %v2511_v54 = vmul.f32 %v6244_v48, %v6201_v9  ;;  %v2522_v11 = vmul.f32 %v6244_v48, %v2466_v17  ;;  %v2523_v37 = vmul.f32 %v6244_v48, %v2467_v49  ;;  %v2512_v30 = vmul.f32 %v6244_v48, %v2456_v7 }
 0x43a   :  { %v2544_v39 = vmul.f32 %v6249_v22, %v2521_v45  ;;  %v2531_v4 = vmul.f32 %v6249_v22, %v2508_v47  ;;  %v2532_v24 = vmul.f32 %v6249_v22, %v2509_v16  ;;  %v2533_v35 = vmul.f32 %v6249_v22, %v2510_v3 }
 0x43b   :  { %v2534_v60 = vmul.f32 %v6249_v22, %v2511_v54  ;;  %v2545_v9 = vmul.f32 %v6249_v22, %v2522_v11  ;;  %v2546_v52 = vmul.f32 %v6249_v22, %v2523_v37  ;;  %v2513_v61 = vmul.f32 %v6244_v48, %v6209_v21 }
 0x43c   :  { %v2554_v7 = vadd.f32 %v6258_v51, %v2531_v4  ;;  %v2555_v43 = vadd.f32 %v6258_v51, %v2532_v24  ;;  %v2556_v46 = vadd.f32 %v6258_v51, %v2533_v35  ;;  %v2535_v13 = vmul.f32 %v6249_v22, %v2512_v30 }
 0x43d   :  { %v2557_v34 = vadd.f32 %v6258_v51, %v2534_v60  ;;  %v2568_v32 = vadd.f32 %v6258_v51, %v2545_v9  ;;  %v2569_v28 = vadd.f32 %v6258_v51, %v2546_v52  ;;  %v2536_v10 = vmul.f32 %v6249_v22, %v2513_v61 }
 0x43e   :  { %vm2571_vm10 = vcmp.gt.f32.partialorder %v2554_v7, 0.0  ;;  %vm2572_vm11 = vcmp.gt.f32.partialorder %v2555_v43, 0.0  ;;  %v2596_v21 = vmul.f32 %v6269_v23, %v2554_v7  ;;  %v2597_v8 = vmul.f32 %v6269_v23, %v2555_v43 }
 0x43f   :  { %vm2573_vm12 = vcmp.gt.f32.partialorder %v2556_v46, 0.0  ;;  %vm2574_vm13 = vcmp.gt.f32.partialorder %v2557_v34, 0.0  ;;  %v2598_v50 = vmul.f32 %v6269_v23, %v2556_v46  ;;  %v2599_v31 = vmul.f32 %v6269_v23, %v2557_v34 }
 0x440   :  { %v2612_v1 = vsel %vm2571_vm10, %v2554_v7, %v2596_v21  ;;  %v2613_v25 = vsel %vm2572_vm11, %v2555_v43, %v2597_v8  ;;  %vm2585_vm14 = vcmp.gt.f32.partialorder %v2568_v32, 0.0  ;;  %vm2586_vm15 = vcmp.gt.f32.partialorder %v2569_v28, 0.0 }
 0x441   :  { %v6288_v63 = vpack.c.bf16 %v2613_v25, %v2612_v1  ;;  %v2614_v56 = vsel %vm2573_vm12, %v2556_v46, %v2598_v50  ;;  %v2615_v19 = vsel %vm2574_vm13, %v2557_v34, %v2599_v31  ;;  %v2610_v17 = vmul.f32 %v6269_v23, %v2568_v32 }
 0x442   :  { %v6291_v29 = vpack.c.bf16 %v2615_v19, %v2614_v56  ;;  %v2611_v41 = vmul.f32 %v6269_v23, %v2569_v28  ;;  %v2558_v49 = vadd.f32 %v6258_v51, %v2535_v13  ;;  %v2559_v44 = vadd.f32 %v6258_v51, %v2536_v10 }
 0x443   :  { %3977 = vmatprep.mubr.bf16.mxu0 %v6288_v63  ;;  %4009 = vmatprep.mubr.bf16.mxu1 %v6288_v63  ;;  %v2626_v40 = vsel %vm2585_vm14, %v2568_v32, %v2610_v17  ;;  %v2514_v18 = vmul.f32 %v6244_v48, %v6204_v14  ;;  %v2515_v36 = vmul.f32 %v6244_v48, %v6214_v2 }
 0x444   :  { %3978 = vmatmul.mubr.bf16.vlgmr.msra.gmra.mxu0 %v6291_v29  ;;  %4010 = vmatmul.mubr.bf16.vlgmr.msra.gmra.mxu1 %v6291_v29  ;;  %v2627_v57 = vsel %vm2586_vm15, %v2569_v28, %v2611_v41  ;;  %vm2575_vm2 = vcmp.gt.f32.partialorder %v2558_v49, 0.0  ;;  %vm2576_vm3 = vcmp.gt.f32.partialorder %v2559_v44, 0.0  ;;  %v2600_v26 = vmul.f32 %v6269_v23, %v2558_v49 }
 0x445   :  { %v6306_v12 = vpack.c.bf16 %v2627_v57, %v2626_v40  ;;  %v2601_v58 = vmul.f32 %v6269_v23, %v2559_v44  ;;  %v2537_v59 = vmul.f32 %v6249_v22, %v2514_v18  ;;  %v2538_v14 = vmul.f32 %v6249_v22, %v2515_v36 }
 0x446   :  { %v2616_v15 = vsel %vm2575_vm2, %v2558_v49, %v2600_v26  ;;  %v2520_v2 = vmul.f32 %v6244_v48, %v6236_v5  ;;  %v2567_v38 = vadd.f32 %v6258_v51, %v2544_v39  ;;  %v2516_v53 = vmul.f32 %v6244_v48, %v6219_v0 }
 0x447   :  { %4026 = vmatpush3.bf16.xpose.msra.mxu0 %v6306_v12  ;;  %v2617_v6 = vsel %vm2576_vm3, %v2559_v44, %v2601_v58  ;;  %v2560_v33 = vadd.f32 %v6258_v51, %v2537_v59  ;;  %v2561_v42 = vadd.f32 %v6258_v51, %v2538_v14  ;;  %v2517_v45 = vmul.f32 %v6244_v48, %v6224_v27 }
 0x448   :  { %v2630_v47 = vpack.c.bf16 %v2617_v6, %v2616_v15  ;;  %4027 = vmatprep.subr.bf16.mxu0 %v6702_v20  ;;  %v2543_v5 = vmul.f32 %v6249_v22, %v2520_v2  ;;  %vm2584_vm4 = vcmp.gt.f32.partialorder %v2567_v38, 0.0  ;;  %v2609_v16 = vmul.f32 %v6269_v23, %v2567_v38 }
 0x449   :  { %vm2577_vm5 = vcmp.gt.f32.partialorder %v2560_v33, 0.0  ;;  %vm2578_vm6 = vcmp.gt.f32.partialorder %v2561_v42, 0.0  ;;  %v2602_v0 = vmul.f32 %v6269_v23, %v2560_v33  ;;  %v2603_v3 = vmul.f32 %v6269_v23, %v2561_v42 }
 0x44a   :  { %3981 = vmatprep.mubr.bf16.mxu0 %v2630_v47  ;;  %4013 = vmatprep.mubr.bf16.mxu1 %v2630_v47  ;;  %v2566_v54 = vadd.f32 %v6258_v51, %v2543_v5  ;;  %v2625_v11 = vsel %vm2584_vm4, %v2567_v38, %v2609_v16  ;;  %v2539_v27 = vmul.f32 %v6249_v22, %v2516_v53 }
 0x44b   :  { %v2618_v37 = vsel %vm2577_vm5, %v2560_v33, %v2602_v0  ;;  %v2619_v30 = vsel %vm2578_vm6, %v2561_v42, %v2603_v3  ;;  %v2540_v39 = vmul.f32 %v6249_v22, %v2517_v45  ;;  %v2518_v4 = vmul.f32 %v6244_v48, %v6228_v55 }
 0x44c   :  { %v2631_v24 = vpack.c.bf16 %v2619_v30, %v2618_v37  ;;  %vm2583_vm7 = vcmp.gt.f32.partialorder %v2566_v54, 0.0  ;;  %v2608_v35 = vmul.f32 %v6269_v23, %v2566_v54  ;;  %v2562_v60 = vadd.f32 %v6258_v51, %v2539_v27 }
 0x44d   :  { %v2563_v9 = vadd.f32 %v6258_v51, %v2540_v39  ;;  %v2519_v52 = vmul.f32 %v6244_v48, %v6232_v62  ;;  %v2541_v61 = vmul.f32 %v6249_v22, %v2518_v4 }
 0x44e   :  { %3982 = vmatmul.mubr.bf16.gmra.mxu0 %v2631_v24  ;;  %4014 = vmatmul.mubr.bf16.gmra.mxu1 %v2631_v24  ;;  %v2624_v7 = vsel %vm2583_vm7, %v2566_v54, %v2608_v35  ;;  %vm2579_vm8 = vcmp.gt.f32.partialorder %v2562_v60, 0.0  ;;  %v2604_v43 = vmul.f32 %v6269_v23, %v2562_v60 }
 0x44f   :  { %v2634_v55 = vpack.c.bf16 %v2625_v11, %v2624_v7  ;;  %vm2580_vm9 = vcmp.gt.f32.partialorder %v2563_v9, 0.0  ;;  %v2605_v46 = vmul.f32 %v6269_v23, %v2563_v9  ;;  %v2542_v13 = vmul.f32 %v6249_v22, %v2519_v52 }
 0x450   :  { %v2620_v34 = vsel %vm2579_vm8, %v2562_v60, %v2604_v43  ;;  %v2564_v32 = vadd.f32 %v6258_v51, %v2541_v61  ;;  %v6704_v60 = vld [vmem:[#allocation17_spill] sm:$0xff]  ;;  %v3602_v43 = vld [vmem:[%s6570_s12] sm:$0xff]  }
 0x451   :  { %4028 = vmatpush3.bf16.xpose.msra.mxu0 %v2634_v55  ;;  %v2621_v28 = vsel %vm2580_vm9, %v2563_v9, %v2605_v46  ;;  %v2565_v62 = vadd.f32 %v6258_v51, %v2542_v13  ;;  %v2668_v51 = vld [vmem:[%s6569_s11] sm:$0x1]  ;;  %v6705_v9 = vsub.s32 0, %v6704_v60  ;;  %v3603_v13 = vunpack.c.l.bf16 %v3602_v43 }
 0x452   :  { %v2632_v48 = vpack.c.bf16 %v2621_v28, %v2620_v34  ;;  %4029 = vmatprep.subr.bf16.mxu0 %v6702_v20  ;;  %vm2581_vm10 = vcmp.gt.f32.partialorder %v2564_v32, 0.0  ;;  %v2606_v10 = vmul.f32 %v6269_v23, %v2564_v32  ;;  %v3640_v28 = vld [vmem:[%s6570_s12 + $0x8] sm:$0xff]  }
 0x453   :  { %vm2582_vm11 = vcmp.gt.f32.partialorder %v2565_v62, 0.0  ;;  %v2607_v21 = vmul.f32 %v6269_v23, %v2565_v62 }
 0x454   :  { %3985 = vmatprep.mubr.bf16.mxu0 %v2632_v48  ;;  %4017 = vmatprep.mubr.bf16.mxu1 %v2632_v48  ;;  %v2622_v8 = vsel %vm2581_vm10, %v2564_v32, %v2606_v10 }
 0x455   :  { %v2623_v22 = vsel %vm2582_vm11, %v2565_v62, %v2607_v21 }
 0x456   :  { %v2633_v50 = vpack.c.bf16 %v2623_v22, %v2622_v8  ;;  %v3607_v8 = vunpack.c.l.bf16 %v3640_v28 }
 0x458   :  { %3986 = vmatmul.mubr.bf16.gmra.mxu0 %v2633_v50  ;;  %4018 = vmatmul.mubr.bf16.gmra.mxu1 %v2633_v50 }
 0x459   :  { %4030 = vmatpush3.bf16.xpose.msra.mxu0 %v2633_v50  ;;  %3989 = vmatprep.mubr.bf16.mxu0 %v2634_v55 }
 0x45a   :  { %4021 = vmatprep.mubr.bf16.mxu1 %v2634_v55  ;;  %4031 = vmatprep.subr.bf16.mxu0 %v6702_v20 }
 0x460   :  { %3990 = vmatmul.mubr.bf16.gmra.mxu0 %v6306_v12  ;;  %4022 = vmatmul.mubr.bf16.gmra.mxu1 %v6306_v12 }
 0x461   :  { %4032 = vmatpush3.bf16.xpose.msra.mxu0 %v2632_v48  ;;  %4041 = vmatprep.mubr.msk.bf16.mxu0 %vm4525_vm1, %v6702_v20 }
 0x462   :  { %4033 = vmatprep.subr.bf16.mxu0 %v6702_v20 }
 0x469   :  { %4034 = vmatpush3.bf16.xpose.msra.mxu0 %v2631_v24 }
 0x46a   :  { %4035 = vmatprep.subr.bf16.mxu0 %v6702_v20 }
 0x471   :  { %4036 = vmatpush3.bf16.xpose.msra.mxu0 %v2630_v47 }
 0x472   :  { %4037 = vmatprep.subr.bf16.mxu0 %v6702_v20 }
 0x479   :  { %4038 = vmatpush3.bf16.xpose.msra.mxu0 %v6291_v29 }
 0x47a   :  { %4039 = vmatprep.subr.bf16.mxu0 %v6702_v20 }
 0x481   :  { %4040 = vmatpush3.bf16.xpose.msra.mxu0 %v6288_v63 }
 0x488   :  { %4042 = vmatmul.mubr.bf16.vlgmr.msra.gmra.mxu0 %v2668_v51 }
 0x504   :  { %v6359_v23 = vpop.f32.mrf.mxu0  ;;  %v4011_v31 = vpop.f32.mrf.mxu1 }
 0x505   :  { %3035 = vperm.xlu1 %4148, %v4011_v31  }
 0x506   :  { %v6361_v1 = vpop.f32.mrf.mxu0  ;;  %v2912_v25 = vpop.f32.mrf.mxu1 }
 0x508   :  { %v3980_v56 = vpop.f32.mrf.mxu0  ;;  %v4012_v19 = vpop.f32.mrf.mxu1 }
 0x509   :  { %3025 = vperm.xlu1 %4148, %v2912_v25   ;;  %v3016_v37 = vpack.c.bf16 %v3980_v56, %v6359_v23  ;;  %v3608_v25 = vunpack.c.h.bf16 %v3640_v28 }
 0x50a   :  { %v2770_v17 = vpop.f32.mrf.mxu0  ;;  %v2915_v29 = vpop.f32.mrf.mxu1 }
 0x50b   :  { %v3015_v30 = vpack.c.bf16 %v2770_v17, %v6361_v1  ;;  %v3604_v1 = vunpack.c.h.bf16 %v3602_v43 }
 0x50d   :  { %3040 = vperm.xlu1 %4148, %v4012_v19  }
 0x50e   :  { %v3983_v20 = vpop.f32.mrf.mxu0  ;;  %v4015_v63 = vpop.f32.mrf.mxu1 }
 0x510   :  { %v2783_v41 = vpop.f32.mrf.mxu0  ;;  %v2928_v49 = vpop.f32.mrf.mxu1 }
 0x511   :  { %3030 = vperm.xlu1 %4148, %v2915_v29  }
 0x512   :  { %v3984_v44 = vpop.f32.mrf.mxu0  ;;  %v4016_v40 = vpop.f32.mrf.mxu1 }
 0x513   :  { %v3018_v11 = vpack.c.bf16 %v3984_v44, %v3983_v20 }
 0x514   :  { %v2786_v18 = vpop.f32.mrf.mxu0  ;;  %v2931_v36 = vpop.f32.mrf.mxu1 }
 0x515   :  { %3055 = vperm.xlu1 %4148, %v4015_v63   ;;  %v3017_v27 = vpack.c.bf16 %v2786_v18, %v2783_v41 }
 0x518   :  { %v3987_v57 = vpop.f32.mrf.mxu0  ;;  %v4019_v26 = vpop.f32.mrf.mxu1 }
 0x519   :  { %3075 = vperm.xlu0 %4147, %v4019_v26   ;;  %3045 = vperm.xlu1 %4148, %v2928_v49   ;;  %v3641_v49 = vld [vmem:[%s6570_s12 + $0x10] sm:$0xff]  }
 0x51a   :  { %v2799_v12 = vpop.f32.mrf.mxu0  ;;  %v2944_v58 = vpop.f32.mrf.mxu1 }
 0x51c   :  { %v3988_v59 = vpop.f32.mrf.mxu0  ;;  %v4020_v14 = vpop.f32.mrf.mxu1 }
 0x51d   :  { %3065 = vperm.xlu0 %4147, %v2944_v58   ;;  %3050 = vperm.xlu1 %4148, %v2931_v36   ;;  %v3020_v0 = vpack.c.bf16 %v3988_v59, %v3987_v57  ;;  %v3611_v36 = vunpack.c.l.bf16 %v3641_v49 }
 0x51e   :  { %v2802_v15 = vpop.f32.mrf.mxu0  ;;  %v2947_v2 = vpop.f32.mrf.mxu1 }
 0x51f   :  { %v3019_v54 = vpack.c.bf16 %v2802_v15, %v2799_v12  ;;  %v3642_v12 = vld [vmem:[%s6570_s12 + $0x18] sm:$0xff]  }
 0x520   :  { %v3991_v38 = vpop.f32.mrf.mxu0  ;;  %v4023_v53 = vpop.f32.mrf.mxu1 }
 0x521   :  { %3095 = vperm.xlu0 %4147, %v4023_v53   ;;  %3060 = vperm.xlu1 %4148, %v4016_v40  }
 0x522   :  { %v2815_v6 = vpop.f32.mrf.mxu0  ;;  %v2960_v33 = vpop.f32.mrf.mxu1 }
 0x524   :  { %v3992_v42 = vpop.f32.mrf.mxu0  ;;  %v4024_v16 = vpop.f32.mrf.mxu1 }
 0x525   :  { %v3022_v45 = vpack.c.bf16 %v3992_v42, %v3991_v38  ;;  %3085 = vperm.xlu0 %4147, %v2960_v33   ;;  %3070 = vperm.xlu1 %4148, %v2947_v2   ;;  %v3612_v33 = vunpack.c.h.bf16 %v3641_v49 }
 0x526   :  { %v2818_v47 = vpop.f32.mrf.mxu0  ;;  %v2963_v3 = vpop.f32.mrf.mxu1 }
 0x527   :  { %v3021_v5 = vpack.c.bf16 %v2818_v47, %v2815_v6  ;;  %4045 = vmatprep.subr.bf16.mxu1 %v3022_v45  ;;  %v3615_v6 = vunpack.c.l.bf16 %v3642_v12 }
 0x528   :  { %4046 = vmatpush3.bf16.msra.mxu1 %v3022_v45 }
 0x529   :  { %4047 = vmatprep.subr.bf16.mxu1 %v3021_v5  ;;  %3080 = vperm.xlu1 %4148, %v4020_v14  }
 0x52c   :  { %4048 = vmatpush3.bf16.msra.mxu1 %v3021_v5  ;;  %v3643_v5 = vld [vmem:[%s6570_s12 + $0x20] sm:$0xff]  }
 0x52d   :  { %4049 = vmatprep.subr.bf16.mxu1 %v3020_v0  ;;  %3090 = vperm.xlu1 %4148, %v2963_v3  }
 0x530   :  { %4050 = vmatpush3.bf16.msra.mxu1 %v3020_v0 }
 0x531   :  { %4051 = vmatprep.subr.bf16.mxu1 %v3019_v54  ;;  %3100 = vperm.xlu1 %4148, %v4024_v16  }
 0x534   :  { %4052 = vmatpush3.bf16.msra.mxu1 %v3019_v54 }
 0x535   :  { %4053 = vmatprep.subr.bf16.mxu1 %v3018_v11 }
 0x538   :  { %4054 = vmatpush3.bf16.msra.mxu1 %v3018_v11  ;;  %v3616_v11 = vunpack.c.h.bf16 %v3642_v12 }
 0x539   :  { %4055 = vmatprep.subr.bf16.mxu1 %v3017_v27 }
 0x53c   :  { %4056 = vmatpush3.bf16.msra.mxu1 %v3017_v27 }
 0x53d   :  { %4057 = vmatprep.subr.bf16.mxu1 %v3016_v37 }
 0x540   :  { %4058 = vmatpush3.bf16.msra.mxu1 %v3016_v37 }
 0x541   :  { %4059 = vmatprep.subr.bf16.mxu1 %v3015_v30 }
 0x544   :  { %4060 = vmatpush3.bf16.msra.mxu1 %v3015_v30 }
 0x548   :  { %v3009_v39 = vpop.f32.mrf.mxu0 }
 0x549   :  { %v6367_v52 = vrot.slane %v3009_v39, %v6705_v9  ;;  %v3619_v39 = vunpack.c.l.bf16 %v3643_v5 }
 0x54a   :  { %v4043_v4 = vpop.f32.mrf.mxu0 }
 0x54b   :  { %v3644_v4 = vld [vmem:[%s6570_s12 + $0x28] sm:$0xff]  }
 0x54c   :  { %v3012_v24 = vpop.f32.mrf.mxu0 }
 0x54e   :  { %v4044_v35 = vpop.f32.mrf.mxu0 }
 0x580   :  { %v3036_v61 = vpop.permute.xlu1 %3035 }
 0x581   :  { %v3109_v7 = vadd.f32 %v6367_v52, %v3036_v61 }
 0x583   :  { %v3141_v34 = vmul.f32 0.2, %v3109_v7  ;;  %vm3125_vm12 = vcmp.gt.f32.partialorder %v3109_v7, 0.0 }
 0x584   :  { %v3026_v55 = vpop.permute.xlu1 %3025 }
 0x585   :  { %v3107_v46 = vadd.f32 %v6367_v52, %v3026_v55  ;;  %v3157_v50 = vsel %vm3125_vm12, %v3109_v7, %v3141_v34  ;;  %v3623_v55 = vunpack.c.l.bf16 %v3644_v4 }
 0x586   :  { %v6382_v31 = vadd.f32 %v3607_v8, %v3157_v50 }
 0x587   :  { %vm3123_vm1 = vcmp.gt.f32.partialorder %v3107_v46, 0.0  ;;  %v3139_v32 = vmul.f32 0.2, %v3107_v46 }
 0x588   :  { %v3041_v62 = vpop.permute.xlu1 %3040 }
 0x589   :  { %v3110_v48 = vadd.f32 %v6367_v52, %v3041_v62  ;;  %v3155_v10 = vsel %vm3123_vm1, %v3107_v46, %v3139_v32  ;;  %v3620_v32 = vunpack.c.h.bf16 %v3643_v5 }
 0x58a   :  { %v6378_v21 = vadd.f32 %v3603_v13, %v3155_v10  ;;  %v3645_v10 = vld [vmem:[%s6570_s12 + $0x30] sm:$0xff]  }
 0x58b   :  { %v3142_v22 = vmul.f32 0.2, %v3110_v48  ;;  %vm3126_vm13 = vcmp.gt.f32.partialorder %v3110_v48, 0.0 }
 0x58c   :  { %v3031_v51 = vpop.permute.xlu1 %3030  ;;  %3203 = vmax.xlane.f32.xlu0 %v6378_v21 }
 0x58d   :  { %v3108_v23 = vadd.f32 %v6367_v52, %v3031_v51  ;;  %v3158_v19 = vsel %vm3126_vm13, %v3110_v48, %v3142_v22 }
 0x58e   :  { %v6387_v63 = vadd.f32 %v3608_v25, %v3158_v19  ;;  %v3624_v25 = vunpack.c.h.bf16 %v3644_v4 }
 0x58f   :  { %vm3124_vm14 = vcmp.gt.f32.partialorder %v3108_v23, 0.0  ;;  %v3140_v56 = vmul.f32 0.2, %v3108_v23 }
 0x590   :  { %v3056_v17 = vpop.permute.xlu1 %3055  ;;  %3207 = vmax.xlane.f32.xlu0 %v6382_v31 }
 0x591   :  { %v3156_v29 = vsel %vm3124_vm14, %v3108_v23, %v3140_v56  ;;  %v3113_v41 = vadd.f32 %v6367_v52, %v3056_v17 }
 0x592   :  { %v6385_v20 = vadd.f32 %v3604_v1, %v3156_v29  ;;  %v3627_v1 = vunpack.c.l.bf16 %v3645_v10  ;;  %v3646_v29 = vld [vmem:[%s6570_s12 + $0x38] sm:$0xff]  }
 0x593   :  { %v3145_v57 = vmul.f32 0.2, %v3113_v41  ;;  %vm3129_vm2 = vcmp.gt.f32.partialorder %v3113_v41, 0.0 }
 0x594   :  { %v3076_v44 = vpop.permute.xlu0 %3075  ;;  %v3046_v40 = vpop.permute.xlu1 %3045  ;;  %3205 = vmax.xlane.f32.xlu1 %v6385_v20  ;;  %3209 = vmax.xlane.f32.xlu0 %v6387_v63 }
 0x595   :  { %v3111_v18 = vadd.f32 %v6367_v52, %v3046_v40  ;;  %v3117_v38 = vadd.f32 %v6367_v52, %v3076_v44  ;;  %v3161_v47 = vsel %vm3129_vm2, %v3113_v41, %v3145_v57  ;;  %v3628_v57 = vunpack.c.h.bf16 %v3645_v10 }
 0x596   :  { %v6409_v37 = vadd.f32 %v3615_v6, %v3161_v47 }
 0x597   :  { %vm3127_vm15 = vcmp.gt.f32.partialorder %v3111_v18, 0.0  ;;  %v3143_v26 = vmul.f32 0.2, %v3111_v18  ;;  %v3149_v27 = vmul.f32 0.2, %v3117_v38  ;;  %vm3133_vm5 = vcmp.gt.f32.partialorder %v3117_v38, 0.0 }
 0x598   :  { %v3066_v58 = vpop.permute.xlu0 %3065  ;;  %v3051_v59 = vpop.permute.xlu1 %3050 }
 0x599   :  { %v3115_v14 = vadd.f32 %v6367_v52, %v3066_v58  ;;  %v3112_v15 = vadd.f32 %v6367_v52, %v3051_v59  ;;  %v3159_v2 = vsel %vm3127_vm15, %v3111_v18, %v3143_v26  ;;  %v3165_v34 = vsel %vm3133_vm5, %v3117_v38, %v3149_v27 }
 0x59a   :  { %v6402_v53 = vadd.f32 %v3611_v36, %v3159_v2  ;;  %v6431_v51 = vadd.f32 %v3623_v55, %v3165_v34  ;;  %v3631_v36 = vunpack.c.l.bf16 %v3646_v29  ;;  %v3632_v38 = vunpack.c.h.bf16 %v3646_v29 }
 0x59b   :  { %v3147_v42 = vmul.f32 0.2, %v3115_v14  ;;  %vm3128_vm3 = vcmp.gt.f32.partialorder %v3112_v15, 0.0  ;;  %v3144_v45 = vmul.f32 0.2, %v3112_v15  ;;  %vm3131_vm4 = vcmp.gt.f32.partialorder %v3115_v14, 0.0 }
 0x59c   :  { %v3096_v16 = vpop.permute.xlu0 %3095  ;;  %v3061_v0 = vpop.permute.xlu1 %3060  ;;  %3211 = vmax.xlane.f32.xlu1 %v6402_v53 }
 0x59d   :  { %v3114_v3 = vadd.f32 %v6367_v52, %v3061_v0  ;;  %v3160_v54 = vsel %vm3128_vm3, %v3112_v15, %v3144_v45  ;;  %v3163_v35 = vsel %vm3131_vm4, %v3115_v14, %v3147_v42  ;;  %v3121_v28 = vadd.f32 %v6367_v52, %v3096_v16 }
 0x59e   :  { %v6411_v30 = vadd.f32 %v3612_v33, %v3160_v54  ;;  %v6420_v46 = vadd.f32 %v3619_v39, %v3163_v35 }
 0x59f   :  { %vm3130_vm6 = vcmp.gt.f32.partialorder %v3114_v3, 0.0  ;;  %v3146_v24 = vmul.f32 0.2, %v3114_v3  ;;  %v3153_v56 = vmul.f32 0.2, %v3121_v28  ;;  %vm3137_vm10 = vcmp.gt.f32.partialorder %v3121_v28, 0.0 }
 0x5a0   :  { %v3086_v60 = vpop.permute.xlu0 %3085  ;;  %v3071_v9 = vpop.permute.xlu1 %3070  ;;  %3215 = vmax.xlane.f32.xlu1 %v6409_v37  ;;  %3213 = vmax.xlane.f32.xlu0 %v6411_v30 }
 0x5a1   :  { %v3119_v61 = vadd.f32 %v6367_v52, %v3086_v60  ;;  %v3116_v7 = vadd.f32 %v6367_v52, %v3071_v9  ;;  %v3162_v43 = vsel %vm3130_vm6, %v3114_v3, %v3146_v24  ;;  %v3169_v12 = vsel %vm3137_vm10, %v3121_v28, %v3153_v56 }
 0x5a2   :  { %v6422_v13 = vadd.f32 %v3616_v11, %v3162_v43  ;;  %v6448_v15 = vadd.f32 %v3631_v36, %v3169_v12 }
 0x5a3   :  { %v3151_v62 = vmul.f32 0.2, %v3119_v61  ;;  %vm3132_vm7 = vcmp.gt.f32.partialorder %v3116_v7, 0.0  ;;  %v3148_v48 = vmul.f32 0.2, %v3116_v7  ;;  %vm3135_vm8 = vcmp.gt.f32.partialorder %v3119_v61, 0.0 }
 0x5a4   :  { %v3081_v8 = vpop.permute.xlu1 %3080  ;;  %3219 = vmax.xlane.f32.xlu1 %v6420_v46  ;;  %3217 = vmax.xlane.f32.xlu0 %v6422_v13 }
 0x5a5   :  { %v3118_v22 = vadd.f32 %v6367_v52, %v3081_v8  ;;  %v3164_v50 = vsel %vm3132_vm7, %v3116_v7, %v3148_v48  ;;  %v3167_v17 = vsel %vm3135_vm8, %v3119_v61, %v3151_v62 }
 0x5a6   :  { %v6433_v23 = vadd.f32 %v3620_v32, %v3164_v50  ;;  %v6441_v40 = vadd.f32 %v3627_v1, %v3167_v17 }
 0x5a7   :  { %vm3134_vm9 = vcmp.gt.f32.partialorder %v3118_v22, 0.0  ;;  %v3150_v19 = vmul.f32 0.2, %v3118_v22 }
 0x5a8   :  { %v3091_v41 = vpop.permute.xlu1 %3090  ;;  %3223 = vmax.xlane.f32.xlu1 %v6431_v51  ;;  %3221 = vmax.xlane.f32.xlu0 %v6433_v23 }
 0x5a9   :  { %v3120_v49 = vadd.f32 %v6367_v52, %v3091_v41  ;;  %v3166_v44 = vsel %vm3134_vm9, %v3118_v22, %v3150_v19 }
 0x5aa   :  { %v6443_v18 = vadd.f32 %v3624_v25, %v3166_v44 }
 0x5ab   :  { %vm3136_vm11 = vcmp.gt.f32.partialorder %v3120_v49, 0.0  ;;  %v3152_v26 = vmul.f32 0.2, %v3120_v49 }
 0x5ac   :  { %v3101_v58 = vpop.permute.xlu1 %3100  ;;  %3227 = vmax.xlane.f32.xlu1 %v6441_v40  ;;  %3225 = vmax.xlane.f32.xlu0 %v6443_v18 }
 0x5ad   :  { %v3122_v59 = vadd.f32 %v6367_v52, %v3101_v58  ;;  %v3168_v14 = vsel %vm3136_vm11, %v3120_v49, %v3152_v26 }
 0x5ae   :  { %v6450_v2 = vadd.f32 %v3628_v57, %v3168_v14 }
 0x5af   :  { %vm3138_vm1 = vcmp.gt.f32.partialorder %v3122_v59, 0.0  ;;  %v3154_v6 = vmul.f32 0.2, %v3122_v59 }
 0x5b0   :  { %3231 = vmax.xlane.f32.xlu1 %v6448_v15  ;;  %3229 = vmax.xlane.f32.xlu0 %v6450_v2 }
 0x5b1   :  { %v3170_v33 = vsel %vm3138_vm1, %v3122_v59, %v3154_v6 }
 0x5b2   :  { %v6454_v42 = vadd.f32 %v3632_v38, %v3170_v33 }
 0x5b4   :  { %3233 = vmax.xlane.f32.xlu0 %v6454_v42 }
 0x615   :  { %v3204_v45 = vpop.xlane.xlu0 %3203 }
 0x616   :  { %v3235_v52 = vsub.f32 %v6378_v21, %v3204_v45 }
 0x618   :  { %v3251_v0 = vmul.f32 1.442695, %v3235_v52 }
 0x619   :  { %v3208_v47 = vpop.xlane.xlu0 %3207 }
 0x61a   :  { %v3237_v5 = vsub.f32 %v6382_v31, %v3208_v47 }
 0x61c   :  { %v3255_v16 = vmul.f32 1.442695, %v3237_v5 }
 0x61d   :  { %v3206_v3 = vpop.xlane.xlu1 %3205  ;;  %v3210_v54 = vpop.xlane.xlu0 %3209 }
 0x61e   :  { %4459 = vpow2.f32 %v3255_v16  ;;  %v3236_v11 = vsub.f32 %v6385_v20, %v3206_v3  ;;  %v3238_v27 = vsub.f32 %v6387_v63, %v3210_v54 }
 0x61f   :  { %4461 = vpow2.f32 %v3251_v0 }
 0x620   :  { %v3253_v39 = vmul.f32 1.442695, %v3236_v11  ;;  %v3257_v4 = vmul.f32 1.442695, %v3238_v27 }
 0x622   :  { %4463 = vpow2.f32 %v3253_v39 }
 0x623   :  { %4465 = vpow2.f32 %v3257_v4 }
 0x625   :  { %v3212_v24 = vpop.xlane.xlu1 %3211 }
 0x626   :  { %v3239_v21 = vsub.f32 %v6402_v53, %v3212_v24 }
 0x628   :  { %v3259_v35 = vmul.f32 1.442695, %v3239_v21 }
 0x629   :  { %v3216_v60 = vpop.xlane.xlu1 %3215  ;;  %v3214_v31 = vpop.xlane.xlu0 %3213 }
 0x62a   :  { %v3241_v9 = vsub.f32 %v6409_v37, %v3216_v60  ;;  %v3240_v61 = vsub.f32 %v6411_v30, %v3214_v31  ;;  %4467 = vpow2.f32 %v3259_v35 }
 0x62b   :  { %v4460_v7 = vpop.eup %4459 }
 0x62c   :  { %v3263_v43 = vmul.f32 1.442695, %v3241_v9  ;;  %v3261_v20 = vmul.f32 1.442695, %v3240_v61  ;;  %3287 = vadd.xlane.f32.xlu1 %v4460_v7  ;;  %v4462_v34 = vpop.eup %4461 }
 0x62d   :  { %v3220_v63 = vpop.xlane.xlu1 %3219  ;;  %v3218_v55 = vpop.xlane.xlu0 %3217 }
 0x62e   :  { %4469 = vpow2.f32 %v3263_v43  ;;  %v3243_v32 = vsub.f32 %v6420_v46, %v3220_v63  ;;  %v3242_v53 = vsub.f32 %v6422_v13, %v3218_v55 }
 0x62f   :  { %v4464_v28 = vpop.eup %4463  ;;  %4471 = vpow2.f32 %v3261_v20 }
 0x630   :  { %v4466_v62 = vpop.eup %4465  ;;  %v3265_v48 = vmul.f32 1.442695, %v3242_v53  ;;  %3283 = vadd.xlane.f32.xlu1 %v4462_v34  ;;  %v3315_v37 = vpack.c.bf16 %v4464_v28, %v4462_v34  ;;  %v3267_v30 = vmul.f32 1.442695, %v3243_v32 }
 0x631   :  { %3289 = vadd.xlane.f32.xlu0 %v4466_v62  ;;  %v3224_v10 = vpop.xlane.xlu1 %3223  ;;  %v3222_v8 = vpop.xlane.xlu0 %3221  ;;  %v3316_v22 = vpack.c.bf16 %v4466_v62, %v4460_v7  ;;  %v6476_v7 = vld [vmem:[%s6571_s13] ss:$0 sm:$0xff] }
 0x632   :  { %v3245_v50 = vsub.f32 %v6431_v51, %v3224_v10  ;;  %v3244_v1 = vsub.f32 %v6433_v23, %v3222_v8  ;;  %4061 = vmatprep.mubr.bf16.mxu1 %v3315_v37  ;;  %4473 = vpow2.f32 %v3265_v48 }
 0x633   :  { %4062 = vmatmul.mubr.bf16.vlgmr.msra.gmra.mxu1 %v3316_v22  ;;  %4475 = vpow2.f32 %v3267_v30 }
 0x634   :  { %v3271_v46 = vmul.f32 1.442695, %v3245_v50  ;;  %v3269_v13 = vmul.f32 1.442695, %v3244_v1 }
 0x635   :  { %3285 = vadd.xlane.f32.xlu0 %v4464_v28  ;;  %v3228_v25 = vpop.xlane.xlu1 %3227  ;;  %v3226_v56 = vpop.xlane.xlu0 %3225 }
 0x636   :  { %4477 = vpow2.f32 %v3271_v46  ;;  %v3247_v19 = vsub.f32 %v6441_v40, %v3228_v25  ;;  %v3246_v17 = vsub.f32 %v6443_v18, %v3226_v56 }
 0x637   :  { %4479 = vpow2.f32 %v3269_v13  ;;  %v4468_v49 = vpop.eup %4467 }
 0x638   :  { %v3273_v29 = vmul.f32 1.442695, %v3246_v17  ;;  %v3275_v23 = vmul.f32 1.442695, %v3247_v19 }
 0x639   :  { %v3232_v41 = vpop.xlane.xlu1 %3231  ;;  %v3230_v51 = vpop.xlane.xlu0 %3229 }
 0x63a   :  { %v3249_v44 = vsub.f32 %v6448_v15, %v3232_v41  ;;  %v3248_v36 = vsub.f32 %v6450_v2, %v3230_v51  ;;  %4481 = vpow2.f32 %v3273_v29 }
 0x63b   :  { %v4470_v57 = vpop.eup %4469  ;;  %4483 = vpow2.f32 %v3275_v23 }
 0x63c   :  { %v4472_v26 = vpop.eup %4471  ;;  %v3277_v12 = vmul.f32 1.442695, %v3248_v36  ;;  %3295 = vadd.xlane.f32.xlu1 %v4470_v57  ;;  %v3279_v58 = vmul.f32 1.442695, %v3249_v44 }
 0x63d   :  { %v3234_v59 = vpop.xlane.xlu0 %3233  ;;  %v3317_v40 = vpack.c.bf16 %v4472_v26, %v4468_v49 }
 0x63e   :  { %v3250_v18 = vsub.f32 %v6454_v42, %v3234_v59  ;;  %4485 = vpow2.f32 %v3277_v12 }
 0x63f   :  { %4065 = vmatprep.mubr.bf16.mxu1 %v3317_v40  ;;  %v4474_v14 = vpop.eup %4473  ;;  %4487 = vpow2.f32 %v3279_v58 }
 0x640   :  { %v3281_v38 = vmul.f32 1.442695, %v3250_v18  ;;  %3291 = vadd.xlane.f32.xlu1 %v4468_v49  ;;  %3297 = vadd.xlane.f32.xlu0 %v4474_v14  ;;  %v3318_v15 = vpack.c.bf16 %v4474_v14, %v4470_v57  ;;  %v4476_v2 = vpop.eup %4475 }
 0x642   :  { %4489 = vpow2.f32 %v3281_v38  ;;  %4066 = vmatmul.mubr.bf16.gmra.mxu1 %v3318_v15 }
 0x643   :  { %v4478_v6 = vpop.eup %4477 }
 0x644   :  { %v4480_v33 = vpop.eup %4479  ;;  %3303 = vadd.xlane.f32.xlu1 %v4478_v6  ;;  %3293 = vadd.xlane.f32.xlu0 %v4472_v26 }
 0x645   :  { %v3319_v45 = vpack.c.bf16 %v4480_v33, %v4476_v2 }
 0x647   :  { %4069 = vmatprep.mubr.bf16.mxu1 %v3319_v45  ;;  %v4482_v52 = vpop.eup %4481 }
 0x648   :  { %3299 = vadd.xlane.f32.xlu1 %v4476_v2  ;;  %3305 = vadd.xlane.f32.xlu0 %v4482_v52  ;;  %v3320_v42 = vpack.c.bf16 %v4482_v52, %v4478_v6  ;;  %v4484_v47 = vpop.eup %4483 }
 0x64a   :  { %4070 = vmatmul.mubr.bf16.gmra.mxu1 %v3320_v42 }
 0x64b   :  { %v4486_v5 = vpop.eup %4485 }
 0x64c   :  { %3307 = vadd.xlane.f32.xlu1 %v4484_v47  ;;  %3301 = vadd.xlane.f32.xlu0 %v4480_v33  ;;  %v3321_v16 = vpack.c.bf16 %v4486_v5, %v4484_v47  ;;  %v4488_v0 = vpop.eup %4487 }
 0x64e   :  { %4073 = vmatprep.mubr.bf16.mxu1 %v3321_v16 }
 0x64f   :  { %v4490_v3 = vpop.eup %4489 }
 0x650   :  { %3311 = vadd.xlane.f32.xlu1 %v4488_v0  ;;  %v3322_v54 = vpack.c.bf16 %v4490_v3, %v4488_v0  ;;  %3309 = vadd.xlane.f32.xlu0 %v4486_v5 }
 0x652   :  { %4074 = vmatmul.mubr.bf16.gmra.mxu1 %v3322_v54 }
 0x654   :  { %3313 = vadd.xlane.f32.xlu0 %v4490_v3 }
 0x6b5   :  { %v3288_v11 = vpop.xlane.xlu1 %3287 }
 0x6b6   :  { %4491 = vrcp.f32 %v3288_v11 }
 0x6b9   :  { %v3284_v39 = vpop.xlane.xlu1 %3283 }
 0x6ba   :  { %v3290_v27 = vpop.xlane.xlu0 %3289  ;;  %4493 = vrcp.f32 %v3284_v39 }
 0x6bb   :  { %4495 = vrcp.f32 %v3290_v27 }
 0x6be   :  { %v3286_v4 = vpop.xlane.xlu0 %3285 }
 0x6bf   :  { %4497 = vrcp.f32 %v3286_v4 }
 0x6c3   :  { %v4492_v9 = vpop.eup %4491 }
 0x6c5   :  { %v3296_v24 = vpop.xlane.xlu1 %3295 }
 0x6c6   :  { %4499 = vrcp.f32 %v3296_v24 }
 0x6c7   :  { %v4494_v20 = vpop.eup %4493 }
 0x6c8   :  { %v4496_v53 = vpop.eup %4495 }
 0x6c9   :  { %v3298_v21 = vpop.xlane.xlu0 %3297  ;;  %v3292_v35 = vpop.xlane.xlu1 %3291 }
 0x6ca   :  { %4501 = vrcp.f32 %v3292_v35 }
 0x6cb   :  { %4503 = vrcp.f32 %v3298_v21 }
 0x6cc   :  { %v4498_v30 = vpop.eup %4497 }
 0x6cd   :  { %v3294_v60 = vpop.xlane.xlu0 %3293  ;;  %v3304_v31 = vpop.xlane.xlu1 %3303 }
 0x6ce   :  { %4505 = vrcp.f32 %v3294_v60 }
 0x6cf   :  { %4507 = vrcp.f32 %v3304_v31 }
 0x6d1   :  { %v3306_v63 = vpop.xlane.xlu0 %3305  ;;  %v3300_v28 = vpop.xlane.xlu1 %3299 }
 0x6d2   :  { %4509 = vrcp.f32 %v3300_v28 }
 0x6d3   :  { %4511 = vrcp.f32 %v3306_v63  ;;  %v4500_v25 = vpop.eup %4499 }
 0x6d5   :  { %v3302_v50 = vpop.xlane.xlu0 %3301  ;;  %v3308_v46 = vpop.xlane.xlu1 %3307 }
 0x6d6   :  { %4513 = vrcp.f32 %v3302_v50 }
 0x6d7   :  { %v4502_v29 = vpop.eup %4501 }
 0x6d8   :  { %v4504_v23 = vpop.eup %4503 }
 0x6d9   :  { %v3310_v13 = vpop.xlane.xlu0 %3309  ;;  %v3312_v56 = vpop.xlane.xlu1 %3311 }
 0x6da   :  { %4515 = vrcp.f32 %v3312_v56 }
 0x6db   :  { %4517 = vrcp.f32 %v3308_v46  ;;  %v4506_v12 = vpop.eup %4505 }
 0x6dc   :  { %v4508_v18 = vpop.eup %4507 }
 0x6dd   :  { %v3314_v44 = vpop.xlane.xlu0 %3313 }
 0x6de   :  { %4519 = vrcp.f32 %v3314_v44 }
 0x6df   :  { %4521 = vrcp.f32 %v3310_v13  ;;  %v4510_v2 = vpop.eup %4509 }
 0x6e0   :  { %v4512_v52 = vpop.eup %4511 }
 0x6e3   :  { %v4514_v16 = vpop.eup %4513 }
 0x6e7   :  { %v4516_v11 = vpop.eup %4515 }
 0x6e8   :  { %v4518_v24 = vpop.eup %4517 }
 0x6eb   :  { %v4520_v31 = vpop.eup %4519 }
 0x6f3   :  { %v4063_v61 = vpop.f32.mrf.mxu1 }
 0x6f4   :  { %v3438_v43 = vmul.f32 %v4492_v9, %v4063_v61 }
 0x6f5   :  { %v3357_v55 = vpop.f32.mrf.mxu1 }
 0x6f6   :  { %v3461_v34 = vadd.f32 %v6476_v7, %v3438_v43  ;;  %v3436_v32 = vmul.f32 %v4494_v20, %v3357_v55  ;;  %v4522_v20 = vpop.eup %4521 }
 0x6f7   :  { %v4064_v62 = vpop.f32.mrf.mxu1 }
 0x6f8   :  { %3477 = vst.msk [vmem:[%s6572_s14 + $0x10] sm:$0xff] %vm227_vm0, %v3461_v34  ;;  %v3459_v48 = vadd.f32 %v6476_v7, %v3436_v32  ;;  %v3439_v37 = vmul.f32 %v4496_v53, %v4064_v62 }
 0x6f9   :  { %v3360_v10 = vpop.f32.mrf.mxu1 }
 0x6fa   :  { %3475 = vst.msk [vmem:[%s6572_s14] sm:$0xff] %vm227_vm0, %v3459_v48  ;;  %v3462_v8 = vadd.f32 %v6476_v7, %v3439_v37  ;;  %v3437_v22 = vmul.f32 %v4498_v30, %v3360_v10 }
 0x6fc   :  { %3478 = vst.msk [vmem:[%s6572_s14 + $0x18] sm:$0xff] %vm227_vm0, %v3462_v8  ;;  %v3460_v1 = vadd.f32 %v6476_v7, %v3437_v22 }
 0x6fe   :  { %3476 = vst.msk [vmem:[%s6572_s14 + $0x8] sm:$0xff] %vm227_vm0, %v3460_v1 }
 0x702   :  { %v4067_v19 = vpop.f32.mrf.mxu1 }
 0x703   :  { %v3442_v17 = vmul.f32 %v4500_v25, %v4067_v19 }
 0x704   :  { %v3373_v41 = vpop.f32.mrf.mxu1 }
 0x705   :  { %v3465_v51 = vadd.f32 %v6476_v7, %v3442_v17  ;;  %v3440_v49 = vmul.f32 %v4502_v29, %v3373_v41 }
 0x706   :  { %v4068_v36 = vpop.f32.mrf.mxu1 }
 0x707   :  { %3481 = vst.msk [vmem:[%s6572_s14 + $0x30] sm:$0xff] %vm227_vm0, %v3465_v51  ;;  %v3463_v57 = vadd.f32 %v6476_v7, %v3440_v49  ;;  %v3443_v26 = vmul.f32 %v4504_v23, %v4068_v36 }
 0x708   :  { %v3376_v58 = vpop.f32.mrf.mxu1 }
 0x709   :  { %3479 = vst.msk [vmem:[%s6572_s14 + $0x20] sm:$0xff] %vm227_vm0, %v3463_v57  ;;  %v3466_v59 = vadd.f32 %v6476_v7, %v3443_v26  ;;  %v3441_v40 = vmul.f32 %v4506_v12, %v3376_v58 }
 0x70a   :  { %v4071_v14 = vpop.f32.mrf.mxu1 }
 0x70b   :  { %3482 = vst.msk [vmem:[%s6572_s14 + $0x38] sm:$0xff] %vm227_vm0, %v3466_v59  ;;  %v3464_v38 = vadd.f32 %v6476_v7, %v3441_v40  ;;  %v3446_v15 = vmul.f32 %v4508_v18, %v4071_v14 }
 0x70c   :  { %v3389_v6 = vpop.f32.mrf.mxu1 }
 0x70d   :  { %3480 = vst.msk [vmem:[%s6572_s14 + $0x28] sm:$0xff] %vm227_vm0, %v3464_v38  ;;  %v3469_v33 = vadd.f32 %v6476_v7, %v3446_v15  ;;  %v3444_v45 = vmul.f32 %v4510_v2, %v3389_v6 }
 0x70e   :  { %v4072_v42 = vpop.f32.mrf.mxu1 }
 0x70f   :  { %3485 = vst.msk [vmem:[%s6572_s14 + $0x50] sm:$0xff] %vm227_vm0, %v3469_v33  ;;  %v3467_v47 = vadd.f32 %v6476_v7, %v3444_v45  ;;  %v3447_v5 = vmul.f32 %v4512_v52, %v4072_v42 }
 0x710   :  { %v3392_v0 = vpop.f32.mrf.mxu1 }
 0x711   :  { %3483 = vst.msk [vmem:[%s6572_s14 + $0x40] sm:$0xff] %vm227_vm0, %v3467_v47  ;;  %v3470_v3 = vadd.f32 %v6476_v7, %v3447_v5  ;;  %v3445_v54 = vmul.f32 %v4514_v16, %v3392_v0 }
 0x712   :  { %v4075_v27 = vpop.f32.mrf.mxu1 }
 0x713   :  { %3486 = vst.msk [vmem:[%s6572_s14 + $0x58] sm:$0xff] %vm227_vm0, %v3470_v3  ;;  %v3468_v39 = vadd.f32 %v6476_v7, %v3445_v54  ;;  %v3450_v4 = vmul.f32 %v4516_v11, %v4075_v27 }
 0x714   :  { %v3405_v21 = vpop.f32.mrf.mxu1 }
 0x715   :  { %3484 = vst.msk [vmem:[%s6572_s14 + $0x48] sm:$0xff] %vm227_vm0, %v3468_v39  ;;  %v3473_v35 = vadd.f32 %v6476_v7, %v3450_v4  ;;  %v3448_v60 = vmul.f32 %v4518_v24, %v3405_v21 }
 0x716   :  { %v4076_v9 = vpop.f32.mrf.mxu1 }
 0x717   :  { %3489 = vst.msk [vmem:[%s6572_s14 + $0x70] sm:$0xff] %vm227_vm0, %v3473_v35  ;;  %v3471_v61 = vadd.f32 %v6476_v7, %v3448_v60  ;;  %v3451_v43 = vmul.f32 %v4520_v31, %v4076_v9 }
 0x718   :  { %v3408_v63 = vpop.f32.mrf.mxu1 }
 0x719   :  { %3487 = vst.msk [vmem:[%s6572_s14 + $0x60] sm:$0xff] %vm227_vm0, %v3471_v61  ;;  %v3474_v55 = vadd.f32 %v6476_v7, %v3451_v43  ;;  %v3449_v34 = vmul.f32 %v4522_v20, %v3408_v63 }
 0x71b   :  { %3490 = vst.msk [vmem:[%s6572_s14 + $0x78] sm:$0xff] %vm227_vm0, %v3474_v55  ;;  %v3472_v32 = vadd.f32 %v6476_v7, %v3449_v34 }
 0x71d   :  { %3488 = vst.msk [vmem:[%s6572_s14 + $0x68] sm:$0xff] %vm227_vm0, %v3472_v32 }

</bundles_post_ra>
